<compile_context>
chip_gen: v6e
topology: v6e:2x2x1
jax: 0.10.0
libtpu: 0.0.40
codegen_flags: <defaults>
</compile_context>

<pallas_src>
import functools
import numpy as np

import jax
import jax.numpy as jnp
from jax.experimental import pallas as pl
from jax.experimental.pallas import tpu as pltpu


def _round_up(x, m):
    return (x + m - 1) // m * m


# ------------------------------ fused kernel ------------------------------- #

def _text_class_kernel(x_ref, wp_ref, bp_ref,
                       g0w_ref, g0b_ref, g1w_ref, g1b_ref,
                       cls_ref, w1a_ref, w1b_ref, b1_ref,
                       w2_ref, b2_ref, w3_ref, b3_ref,
                       out_ref, *, num_classes):
    f32 = jnp.float32
    bf16 = jnp.bfloat16

    # --- GNN backbone stand-in: emb = model(g) -> (rows, D)  (x already bf16) ---
    h = jnp.dot(x_ref[...], wp_ref[...], preferred_element_type=f32) + bp_ref[...]
    h = jnp.maximum(h, 0.0)
    h = jnp.dot(h.astype(bf16), g0w_ref[...], preferred_element_type=f32) + g0b_ref[...]
    h = jnp.maximum(h, 0.0)
    h = jnp.dot(h.astype(bf16), g1w_ref[...], preferred_element_type=f32) + g1b_ref[...]
    h = jnp.maximum(h, 0.0)                                              # (rows, D)

    # --- MLP layer 1, split across the [node | class] concat ---
    #   cat([emb_n, cls_c]) @ W1 + b1 == (emb_n @ W1a + b1) + (cls_c @ W1b)
    a = jnp.dot(h.astype(bf16), w1a_ref[...],
                preferred_element_type=f32) + b1_ref[...]                # (rows, 2D)
    bcls = jnp.dot(cls_ref[...], w1b_ref[...],
                   preferred_element_type=f32)                           # (C, 2D)

    rows = a.shape[0]
    d2 = a.shape[1]
    c = num_classes

    # --- class-stacked pair activations, node-major row ordering r*C + c ---
    h1 = jnp.maximum(a[:, None, :] + bcls[None, :, :], 0.0)             # (rows, C, 2D)
    h1 = h1.reshape(rows * c, d2)                                        # leading-dim merge

    # --- one tall matmul per remaining MLP layer ---
    h2 = jnp.dot(h1.astype(bf16), w2_ref[...],
                 preferred_element_type=f32) + b2_ref[...]               # (rows*C, D)
    h2 = jnp.maximum(h2, 0.0)
    sc = jnp.dot(h2.astype(bf16), w3_ref[...],
                 preferred_element_type=f32) + b3_ref[...]               # (rows*C, 128) lane-dense

    out_ref[...] = sc.astype(out_ref.dtype)


# ------------------------------ host wrapper -------------------------------- #

def text_class_forward(params, x, target_idx, num_classes, task_dim, tile_rows=256):
    """Same semantics as the PyTorch module: res = MLP(pairs).view(-1, num_classes)."""
    llm_dim = x.shape[1]
    m = int(target_idx.shape[0])
    c = num_classes

    # class_emb-row gather moved BEFORE the (row-independent) backbone: only the M
    # target rows are processed; x is cast to bf16 to halve the dominant HBM stream.
    x_sel = x[target_idx].astype(jnp.bfloat16)                           # (M, LLM_DIM)
    tile_rows = min(tile_rows, _round_up(m, 8))
    m_pad = _round_up(m, tile_rows)
    if m_pad != m:
        x_sel = jnp.pad(x_sel, ((0, m_pad - m), (0, 0)))

    out_lanes = params["mlp_w3"].shape[1]                                # 128-lane padded slab
    grid = (m_pad // tile_rows,)

    weight_args = [params[k] for k in (
        "proj_w", "proj_b", "gnn_w0", "gnn_b0", "gnn_w1", "gnn_b1",
        "class_emb", "mlp_w1a", "mlp_w1b", "mlp_b1",
        "mlp_w2", "mlp_b2", "mlp_w3", "mlp_b3")]

    resident = lambda i: (0, 0)   # constant block index -> DMA'd once, stays resident
    in_specs = ([pl.BlockSpec((tile_rows, llm_dim), lambda i: (i, 0))] +
                [pl.BlockSpec(w.shape, resident) for w in weight_args])

    scores = pl.pallas_call(
        functools.partial(_text_class_kernel, num_classes=c),
        out_shape=jax.ShapeDtypeStruct((m_pad * c, out_lanes), jnp.float32),
        grid=grid,
        in_specs=in_specs,
        out_specs=pl.BlockSpec((tile_rows * c, out_lanes), lambda i: (i, 0)),
        compiler_params=pltpu.CompilerParams(
            dimension_semantics=("parallel",)),
    )(x_sel, *weight_args)                                               # (M_pad*C, 128)

    # Exact PyTorch `.view(-1, num_classes)` semantics (valid for any task_dim):
    # kernel rows are node-major (m*C + c), so a plain row-major reshape matches.
    res = scores[: m * c, :task_dim].reshape(-1, num_classes)            # (M*T, C)
    return res


# --------------------------- parameter initialization ----------------------- #

def _xavier_uniform(key, shape):
    fan_in, fan_out = shape
    a = float(np.sqrt(6.0 / (fan_in + fan_out)))
    return jax.random.uniform(key, shape, jnp.float32, -a, a)


def init_params(key, llm_dim, outdim, task_dim, num_classes):
    ks = jax.random.split(key, 13)   # distinct key per tensor
    bf16 = jnp.bfloat16
    d, d2 = outdim, 2 * outdim
    out_lanes = max(128, _round_up(task_dim, 128))

    # GNN backbone stand-in
    proj_w = _xavier_uniform(ks[0], (llm_dim, d))
    proj_b = jax.random.uniform(ks[1], (1, d), jnp.float32, -0.01, 0.01)
    gnn_w0 = _xavier_uniform(ks[2], (d, d))
    gnn_b0 = jax.random.uniform(ks[3], (1, d), jnp.float32, -0.01, 0.01)
    gnn_w1 = _xavier_uniform(ks[4], (d, d))
    gnn_b1 = jax.random.uniform(ks[5], (1, d), jnp.float32, -0.01, 0.01)

    # self.emb: pre-computed class embeddings (C, D)
    class_emb = jax.random.normal(ks[6], (num_classes, d), jnp.float32)

    # MLP([2D, 2D, D, task_dim]); W1 generated full then split to preserve fan-in/out
    w1 = _xavier_uniform(ks[7], (d2, d2))
    b1 = jax.random.uniform(ks[8], (1, d2), jnp.float32, -0.01, 0.01)
    w2 = _xavier_uniform(ks[9], (d2, d))
    b2 = jax.random.uniform(ks[10], (1, d), jnp.float32, -0.01, 0.01)
    w3 = _xavier_uniform(ks[11], (d, task_dim))
    b3 = jax.random.uniform(ks[12], (1, task_dim), jnp.float32, -0.01, 0.01)

    # Pad the output layer to 128 lanes so the kernel's stores are lane-dense.
    w3_pad = jnp.zeros((d, out_lanes), jnp.float32).at[:, :task_dim].set(w3)
    b3_pad = jnp.zeros((1, out_lanes), jnp.float32).at[:, :task_dim].set(b3)

    return {
        "proj_w": proj_w.astype(bf16), "proj_b": proj_b,
        "gnn_w0": gnn_w0.astype(bf16), "gnn_b0": gnn_b0,
        "gnn_w1": gnn_w1.astype(bf16), "gnn_b1": gnn_b1,
        "class_emb": class_emb.astype(bf16),
        "mlp_w1a": w1[:d, :].astype(bf16),   # node-embedding half of the concat
        "mlp_w1b": w1[d:, :].astype(bf16),   # class-embedding half of the concat
        "mlp_b1": b1,
        "mlp_w2": w2.astype(bf16), "mlp_b2": b2,
        "mlp_w3": w3_pad.astype(bf16), "mlp_b3": b3_pad,
    }


# --------------------------- pure-JAX reference ------------------------------ #

def _reference_forward(params, x, target_idx, num_classes, task_dim):
    """Literal repeat_interleave + cat + MLP + view, with matching bf16 casts."""
    f32, bf16 = jnp.float32, jnp.bfloat16
    xb = x[target_idx].astype(bf16)
    h = jnp.maximum(jnp.dot(xb, params["proj_w"], preferred_element_type=f32)
                    + params["proj_b"], 0.0)
    h = jnp.maximum(jnp.dot(h.astype(bf16), params["gnn_w0"], preferred_element_type=f32)
                    + params["gnn_b0"], 0.0)
    h = jnp.maximum(jnp.dot(h.astype(bf16), params["gnn_w1"], preferred_element_type=f32)
                    + params["gnn_b1"], 0.0)
    m, c = h.shape[0], num_classes
    node_rep = jnp.repeat(h, c, axis=0)                                  # repeat_interleave
    cls_rep = jnp.tile(params["class_emb"].astype(f32), (m, 1))          # .repeat(M, 1)
    h1 = jnp.maximum(
        jnp.dot(node_rep.astype(bf16), params["mlp_w1a"], preferred_element_type=f32)
        + jnp.dot(cls_rep.astype(bf16), params["mlp_w1b"], preferred_element_type=f32)
        + params["mlp_b1"], 0.0)
    h2 = jnp.maximum(jnp.dot(h1.astype(bf16), params["mlp_w2"], preferred_element_type=f32)
                     + params["mlp_b2"], 0.0)
    sc = jnp.dot(h2.astype(bf16), params["mlp_w3"], preferred_element_type=f32) + params["mlp_b3"]
    return sc[:, :task_dim].reshape(-1, num_classes)                     # .view(-1, C)


# ----------------------------------- main ------------------------------------ #

if __name__ == "__main__":
    LLM_DIM = 768        # LLM sentence-embedding width
    OUTDIM = 64          # => MLP layer-1 width 2*OUTDIM = 128 (lane-dense)
    TASK_DIM = 1
    NUM_CLASSES = 8      # len(self.emb)
    N_NODES = 640

    key = jax.random.PRNGKey(0)
    k_params, k_x = jax.random.split(key, 2)

    params = init_params(k_params, LLM_DIM, OUTDIM, TASK_DIM, NUM_CLASSES)

    x = jax.random.normal(k_x, (N_NODES, LLM_DIM), jnp.float32)          # g.x (node features)
    target_node_mask = np.zeros((N_NODES,), dtype=bool)
    target_node_mask[::2] = True                                         # g.target_node_mask
    target_idx = jnp.asarray(np.nonzero(target_node_mask)[0])            # static gather indices

    # tile_rows=128 -> grid of 3 row tiles (with padding) at this demo size.
    res = text_class_forward(params, x, target_idx, NUM_CLASSES, TASK_DIM, tile_rows=128)
    res = jax.block_until_ready(res)

    m = int(target_node_mask.sum())
    assert res.shape == (m * TASK_DIM, NUM_CLASSES), res.shape
    assert bool(jnp.all(jnp.isfinite(res)))

    ref = _reference_forward(params, x, target_idx, NUM_CLASSES, TASK_DIM)
    ref = jax.block_until_ready(ref)
    assert np.allclose(np.asarray(res), np.asarray(ref), rtol=2e-2, atol=2e-2)

    print("KERNEL_OK")
</pallas_src>

<mosaic_0001>
module attributes {stable_mosaic.version = 11 : i64} {
  func.func @_text_class_kernel(%arg0: i32, %arg1: memref<128x768xbf16, #tpu.memory_space<vmem>>, %arg2: memref<768x64xbf16, #tpu.memory_space<vmem>>, %arg3: memref<1x64xf32, #tpu.memory_space<vmem>>, %arg4: memref<64x64xbf16, #tpu.memory_space<vmem>>, %arg5: memref<1x64xf32, #tpu.memory_space<vmem>>, %arg6: memref<64x64xbf16, #tpu.memory_space<vmem>>, %arg7: memref<1x64xf32, #tpu.memory_space<vmem>>, %arg8: memref<8x64xbf16, #tpu.memory_space<vmem>>, %arg9: memref<64x128xbf16, #tpu.memory_space<vmem>>, %arg10: memref<64x128xbf16, #tpu.memory_space<vmem>>, %arg11: memref<1x128xf32, #tpu.memory_space<vmem>>, %arg12: memref<128x64xbf16, #tpu.memory_space<vmem>>, %arg13: memref<1x64xf32, #tpu.memory_space<vmem>>, %arg14: memref<64x128xbf16, #tpu.memory_space<vmem>>, %arg15: memref<1x128xf32, #tpu.memory_space<vmem>>, %arg16: memref<1024x128xf32, #tpu.memory_space<vmem>>) attributes {dimension_semantics = [#tpu.dimension_semantics<parallel>], iteration_bounds = array<i64: 3>, scalar_prefetch = 0 : i64, scratch_operands = 0 : i64, tpu.core_type = #tpu.core_type<tc>, window_params = [{transform_indices = @transform_0, window_bounds = array<i64: 128, 768>}, {pipeline_mode = #tpu.pipeline_mode<synchronous>, transform_indices = @transform_1, window_bounds = array<i64: 768, 64>}, {pipeline_mode = #tpu.pipeline_mode<synchronous>, transform_indices = @transform_2, window_bounds = array<i64: 1, 64>}, {pipeline_mode = #tpu.pipeline_mode<synchronous>, transform_indices = @transform_3, window_bounds = array<i64: 64, 64>}, {pipeline_mode = #tpu.pipeline_mode<synchronous>, transform_indices = @transform_4, window_bounds = array<i64: 1, 64>}, {pipeline_mode = #tpu.pipeline_mode<synchronous>, transform_indices = @transform_5, window_bounds = array<i64: 64, 64>}, {pipeline_mode = #tpu.pipeline_mode<synchronous>, transform_indices = @transform_6, window_bounds = array<i64: 1, 64>}, {pipeline_mode = #tpu.pipeline_mode<synchronous>, transform_indices = @transform_7, window_bounds = array<i64: 8, 64>}, {pipeline_mode = #tpu.pipeline_mode<synchronous>, transform_indices = @transform_8, window_bounds = array<i64: 64, 128>}, {pipeline_mode = #tpu.pipeline_mode<synchronous>, transform_indices = @transform_9, window_bounds = array<i64: 64, 128>}, {pipeline_mode = #tpu.pipeline_mode<synchronous>, transform_indices = @transform_10, window_bounds = array<i64: 1, 128>}, {pipeline_mode = #tpu.pipeline_mode<synchronous>, transform_indices = @transform_11, window_bounds = array<i64: 128, 64>}, {pipeline_mode = #tpu.pipeline_mode<synchronous>, transform_indices = @transform_12, window_bounds = array<i64: 1, 64>}, {pipeline_mode = #tpu.pipeline_mode<synchronous>, transform_indices = @transform_13, window_bounds = array<i64: 64, 128>}, {pipeline_mode = #tpu.pipeline_mode<synchronous>, transform_indices = @transform_14, window_bounds = array<i64: 1, 128>}, {transform_indices = @transform_15, window_bounds = array<i64: 1024, 128>}]} {
    %c0 = arith.constant 0 : index
    %c0_0 = arith.constant 0 : index
    %0 = vector.load %arg1[%c0, %c0_0] : memref<128x768xbf16, #tpu.memory_space<vmem>>, vector<128x768xbf16>
    %c0_1 = arith.constant 0 : index
    %c0_2 = arith.constant 0 : index
    %1 = vector.load %arg2[%c0_1, %c0_2] : memref<768x64xbf16, #tpu.memory_space<vmem>>, vector<768x64xbf16>
    %cst = arith.constant dense<0.000000e+00> : vector<128x64xf32>
    %2 = tpu.matmul %0, %1, %cst {dimension_numbers = #tpu.dot_dimension_numbers<[1], [0], [0], [1], [0, 0, 1, 1], [], []>} : vector<128x768xbf16>, vector<768x64xbf16>, vector<128x64xf32> -> vector<128x64xf32>
    %c0_3 = arith.constant 0 : index
    %c0_4 = arith.constant 0 : index
    %3 = vector.load %arg3[%c0_3, %c0_4] : memref<1x64xf32, #tpu.memory_space<vmem>>, vector<1x64xf32>
    %4 = vector.broadcast %3 : vector<1x64xf32> to vector<128x64xf32>
    %5 = arith.addf %2, %4 : vector<128x64xf32>
    %cst_5 = arith.constant 0.000000e+00 : f32
    %6 = vector.broadcast %cst_5 : f32 to vector<128x64xf32>
    %7 = arith.maximumf %5, %6 : vector<128x64xf32>
    %8 = arith.truncf %7 : vector<128x64xf32> to vector<128x64xbf16>
    %c0_6 = arith.constant 0 : index
    %c0_7 = arith.constant 0 : index
    %9 = vector.load %arg4[%c0_6, %c0_7] : memref<64x64xbf16, #tpu.memory_space<vmem>>, vector<64x64xbf16>
    %cst_8 = arith.constant dense<0.000000e+00> : vector<128x64xf32>
    %10 = tpu.matmul %8, %9, %cst_8 {dimension_numbers = #tpu.dot_dimension_numbers<[1], [0], [0], [1], [0, 0, 1, 1], [], []>} : vector<128x64xbf16>, vector<64x64xbf16>, vector<128x64xf32> -> vector<128x64xf32>
    %c0_9 = arith.constant 0 : index
    %c0_10 = arith.constant 0 : index
    %11 = vector.load %arg5[%c0_9, %c0_10] : memref<1x64xf32, #tpu.memory_space<vmem>>, vector<1x64xf32>
    %12 = vector.broadcast %11 : vector<1x64xf32> to vector<128x64xf32>
    %13 = arith.addf %10, %12 : vector<128x64xf32>
    %cst_11 = arith.constant 0.000000e+00 : f32
    %14 = vector.broadcast %cst_11 : f32 to vector<128x64xf32>
    %15 = arith.maximumf %13, %14 : vector<128x64xf32>
    %16 = arith.truncf %15 : vector<128x64xf32> to vector<128x64xbf16>
    %c0_12 = arith.constant 0 : index
    %c0_13 = arith.constant 0 : index
    %17 = vector.load %arg6[%c0_12, %c0_13] : memref<64x64xbf16, #tpu.memory_space<vmem>>, vector<64x64xbf16>
    %cst_14 = arith.constant dense<0.000000e+00> : vector<128x64xf32>
    %18 = tpu.matmul %16, %17, %cst_14 {dimension_numbers = #tpu.dot_dimension_numbers<[1], [0], [0], [1], [0, 0, 1, 1], [], []>} : vector<128x64xbf16>, vector<64x64xbf16>, vector<128x64xf32> -> vector<128x64xf32>
    %c0_15 = arith.constant 0 : index
    %c0_16 = arith.constant 0 : index
    %19 = vector.load %arg7[%c0_15, %c0_16] : memref<1x64xf32, #tpu.memory_space<vmem>>, vector<1x64xf32>
    %20 = vector.broadcast %19 : vector<1x64xf32> to vector<128x64xf32>
    %21 = arith.addf %18, %20 : vector<128x64xf32>
    %cst_17 = arith.constant 0.000000e+00 : f32
    %22 = vector.broadcast %cst_17 : f32 to vector<128x64xf32>
    %23 = arith.maximumf %21, %22 : vector<128x64xf32>
    %24 = arith.truncf %23 : vector<128x64xf32> to vector<128x64xbf16>
    %c0_18 = arith.constant 0 : index
    %c0_19 = arith.constant 0 : index
    %25 = vector.load %arg9[%c0_18, %c0_19] : memref<64x128xbf16, #tpu.memory_space<vmem>>, vector<64x128xbf16>
    %cst_20 = arith.constant dense<0.000000e+00> : vector<128x128xf32>
    %26 = tpu.matmul %24, %25, %cst_20 {dimension_numbers = #tpu.dot_dimension_numbers<[1], [0], [0], [1], [0, 0, 1, 1], [], []>} : vector<128x64xbf16>, vector<64x128xbf16>, vector<128x128xf32> -> vector<128x128xf32>
    %c0_21 = arith.constant 0 : index
    %c0_22 = arith.constant 0 : index
    %27 = vector.load %arg11[%c0_21, %c0_22] : memref<1x128xf32, #tpu.memory_space<vmem>>, vector<1x128xf32>
    %28 = vector.broadcast %27 : vector<1x128xf32> to vector<128x128xf32>
    %29 = arith.addf %26, %28 : vector<128x128xf32>
    %c0_23 = arith.constant 0 : index
    %c0_24 = arith.constant 0 : index
    %30 = vector.load %arg8[%c0_23, %c0_24] : memref<8x64xbf16, #tpu.memory_space<vmem>>, vector<8x64xbf16>
    %c0_25 = arith.constant 0 : index
    %c0_26 = arith.constant 0 : index
    %31 = vector.load %arg10[%c0_25, %c0_26] : memref<64x128xbf16, #tpu.memory_space<vmem>>, vector<64x128xbf16>
    %cst_27 = arith.constant dense<0.000000e+00> : vector<8x128xf32>
    %32 = tpu.matmul %30, %31, %cst_27 {dimension_numbers = #tpu.dot_dimension_numbers<[1], [0], [0], [1], [0, 0, 1, 1], [], []>} : vector<8x64xbf16>, vector<64x128xbf16>, vector<8x128xf32> -> vector<8x128xf32>
    %33 = vector.shape_cast %29 : vector<128x128xf32> to vector<128x1x128xf32>
    %34 = vector.shape_cast %32 : vector<8x128xf32> to vector<1x8x128xf32>
    %35 = vector.broadcast %33 : vector<128x1x128xf32> to vector<128x8x128xf32>
    %36 = vector.broadcast %34 : vector<1x8x128xf32> to vector<128x8x128xf32>
    %37 = arith.addf %35, %36 : vector<128x8x128xf32>
    %cst_28 = arith.constant 0.000000e+00 : f32
    %38 = vector.broadcast %cst_28 : f32 to vector<128x8x128xf32>
    %39 = arith.maximumf %37, %38 : vector<128x8x128xf32>
    %40 = vector.shape_cast %39 : vector<128x8x128xf32> to vector<1024x128xf32>
    %41 = arith.truncf %40 : vector<1024x128xf32> to vector<1024x128xbf16>
    %c0_29 = arith.constant 0 : index
    %c0_30 = arith.constant 0 : index
    %42 = vector.load %arg12[%c0_29, %c0_30] : memref<128x64xbf16, #tpu.memory_space<vmem>>, vector<128x64xbf16>
    %cst_31 = arith.constant dense<0.000000e+00> : vector<1024x64xf32>
    %43 = tpu.matmul %41, %42, %cst_31 {dimension_numbers = #tpu.dot_dimension_numbers<[1], [0], [0], [1], [0, 0, 1, 1], [], []>} : vector<1024x128xbf16>, vector<128x64xbf16>, vector<1024x64xf32> -> vector<1024x64xf32>
    %c0_32 = arith.constant 0 : index
    %c0_33 = arith.constant 0 : index
    %44 = vector.load %arg13[%c0_32, %c0_33] : memref<1x64xf32, #tpu.memory_space<vmem>>, vector<1x64xf32>
    %45 = vector.broadcast %44 : vector<1x64xf32> to vector<1024x64xf32>
    %46 = arith.addf %43, %45 : vector<1024x64xf32>
    %cst_34 = arith.constant 0.000000e+00 : f32
    %47 = vector.broadcast %cst_34 : f32 to vector<1024x64xf32>
    %48 = arith.maximumf %46, %47 : vector<1024x64xf32>
    %49 = arith.truncf %48 : vector<1024x64xf32> to vector<1024x64xbf16>
    %c0_35 = arith.constant 0 : index
    %c0_36 = arith.constant 0 : index
    %50 = vector.load %arg14[%c0_35, %c0_36] : memref<64x128xbf16, #tpu.memory_space<vmem>>, vector<64x128xbf16>
    %cst_37 = arith.constant dense<0.000000e+00> : vector<1024x128xf32>
    %51 = tpu.matmul %49, %50, %cst_37 {dimension_numbers = #tpu.dot_dimension_numbers<[1], [0], [0], [1], [0, 0, 1, 1], [], []>} : vector<1024x64xbf16>, vector<64x128xbf16>, vector<1024x128xf32> -> vector<1024x128xf32>
    %c0_38 = arith.constant 0 : index
    %c0_39 = arith.constant 0 : index
    %52 = vector.load %arg15[%c0_38, %c0_39] : memref<1x128xf32, #tpu.memory_space<vmem>>, vector<1x128xf32>
    %53 = vector.broadcast %52 : vector<1x128xf32> to vector<1024x128xf32>
    %54 = arith.addf %51, %53 : vector<1024x128xf32>
    %c0_40 = arith.constant 0 : index
    %c0_41 = arith.constant 0 : index
    %55 = vector.load %arg16[%c0_40, %c0_41] : memref<1024x128xf32, #tpu.memory_space<vmem>>, vector<1024x128xf32>
    tpu.vector_store %arg16[%c0_40, %c0_41], %54 {strides = array<i32>} : memref<1024x128xf32, #tpu.memory_space<vmem>>, vector<1024x128xf32>,
    return
  }
  func.func @transform_0(%arg0: i32) -> (i32, i32) {
    %c0_i32 = arith.constant 0 : i32
    %c0_i32_0 = arith.constant 0 : i32
    return %arg0, %c0_i32 : i32, i32
  }
  func.func @transform_1(%arg0: i32) -> (i32, i32) {
    %c0_i32 = arith.constant 0 : i32
    %c0_i32_0 = arith.constant 0 : i32
    %c0_i32_1 = arith.constant 0 : i32
    return %c0_i32, %c0_i32_0 : i32, i32
  }
  func.func @transform_2(%arg0: i32) -> (i32, i32) {
    %c0_i32 = arith.constant 0 : i32
    %c0_i32_0 = arith.constant 0 : i32
    %c0_i32_1 = arith.constant 0 : i32
    return %c0_i32, %c0_i32_0 : i32, i32
  }
  func.func @transform_3(%arg0: i32) -> (i32, i32) {
    %c0_i32 = arith.constant 0 : i32
    %c0_i32_0 = arith.constant 0 : i32
    %c0_i32_1 = arith.constant 0 : i32
    return %c0_i32, %c0_i32_0 : i32, i32
  }
  func.func @transform_4(%arg0: i32) -> (i32, i32) {
    %c0_i32 = arith.constant 0 : i32
    %c0_i32_0 = arith.constant 0 : i32
    %c0_i32_1 = arith.constant 0 : i32
    return %c0_i32, %c0_i32_0 : i32, i32
  }
  func.func @transform_5(%arg0: i32) -> (i32, i32) {
    %c0_i32 = arith.constant 0 : i32
    %c0_i32_0 = arith.constant 0 : i32
    %c0_i32_1 = arith.constant 0 : i32
    return %c0_i32, %c0_i32_0 : i32, i32
  }
  func.func @transform_6(%arg0: i32) -> (i32, i32) {
    %c0_i32 = arith.constant 0 : i32
    %c0_i32_0 = arith.constant 0 : i32
    %c0_i32_1 = arith.constant 0 : i32
    return %c0_i32, %c0_i32_0 : i32, i32
  }
  func.func @transform_7(%arg0: i32) -> (i32, i32) {
    %c0_i32 = arith.constant 0 : i32
    %c0_i32_0 = arith.constant 0 : i32
    %c0_i32_1 = arith.constant 0 : i32
    return %c0_i32, %c0_i32_0 : i32, i32
  }
  func.func @transform_8(%arg0: i32) -> (i32, i32) {
    %c0_i32 = arith.constant 0 : i32
    %c0_i32_0 = arith.constant 0 : i32
    %c0_i32_1 = arith.constant 0 : i32
    return %c0_i32, %c0_i32_0 : i32, i32
  }
  func.func @transform_9(%arg0: i32) -> (i32, i32) {
    %c0_i32 = arith.constant 0 : i32
    %c0_i32_0 = arith.constant 0 : i32
    %c0_i32_1 = arith.constant 0 : i32
    return %c0_i32, %c0_i32_0 : i32, i32
  }
  func.func @transform_10(%arg0: i32) -> (i32, i32) {
    %c0_i32 = arith.constant 0 : i32
    %c0_i32_0 = arith.constant 0 : i32
    %c0_i32_1 = arith.constant 0 : i32
    return %c0_i32, %c0_i32_0 : i32, i32
  }
  func.func @transform_11(%arg0: i32) -> (i32, i32) {
    %c0_i32 = arith.constant 0 : i32
    %c0_i32_0 = arith.constant 0 : i32
    %c0_i32_1 = arith.constant 0 : i32
    return %c0_i32, %c0_i32_0 : i32, i32
  }
  func.func @transform_12(%arg0: i32) -> (i32, i32) {
    %c0_i32 = arith.constant 0 : i32
    %c0_i32_0 = arith.constant 0 : i32
    %c0_i32_1 = arith.constant 0 : i32
    return %c0_i32, %c0_i32_0 : i32, i32
  }
  func.func @transform_13(%arg0: i32) -> (i32, i32) {
    %c0_i32 = arith.constant 0 : i32
    %c0_i32_0 = arith.constant 0 : i32
    %c0_i32_1 = arith.constant 0 : i32
    return %c0_i32, %c0_i32_0 : i32, i32
  }
  func.func @transform_14(%arg0: i32) -> (i32, i32) {
    %c0_i32 = arith.constant 0 : i32
    %c0_i32_0 = arith.constant 0 : i32
    %c0_i32_1 = arith.constant 0 : i32
    return %c0_i32, %c0_i32_0 : i32, i32
  }
  func.func @transform_15(%arg0: i32) -> (i32, i32) {
    %c0_i32 = arith.constant 0 : i32
    %c0_i32_0 = arith.constant 0 : i32
    return %arg0, %c0_i32 : i32, i32
  }
}

</mosaic_0001>

<bundles_post_ra>
// kernel: tpu_custom_call.1
= control target key start
LH: loop header
LB: loop body
LE: loop exit
PB: predicated region body
PF: predicated region fallthrough
CT: control target
= control target key end

     0   :  { %s9336_s0 = inlined_call_operand.hbm [shape: bf16[384,768], index: 0, kind: input, shape index: {}]   ;;  %s9337_s1 = inlined_call_operand.vmem [shape: bf16[768,64], index: 1, kind: input, shape index: {}]   ;;  %s9338_s2 = inlined_call_operand.hbm [shape: f32[1,64], index: 2, kind: input, shape index: {}]   ;;  %s9339_s3 = inlined_call_operand.hbm [shape: bf16[64,64], index: 3, kind: input, shape index: {}]   ;;  %s9340_s4 = inlined_call_operand.hbm [shape: f32[1,64], index: 4, kind: input, shape index: {}]   ;;  %s9341_s5 = inlined_call_operand.hbm [shape: bf16[64,64], index: 5, kind: input, shape index: {}]   ;;  %s9342_s6 = inlined_call_operand.hbm [shape: f32[1,64], index: 6, kind: input, shape index: {}]   ;;  %s9343_s7 = inlined_call_operand.hbm [shape: bf16[8,64], index: 7, kind: input, shape index: {}]   ;;  %s9344_s8 = inlined_call_operand.hbm [shape: bf16[64,128], index: 8, kind: input, shape index: {}]   ;;  %s9345_s9 = inlined_call_operand.hbm [shape: bf16[64,128], index: 9, kind: input, shape index: {}]   ;;  %s9346_s10 = inlined_call_operand.hbm [shape: f32[1,128], index: 10, kind: input, shape index: {}]   ;;  %s9347_s11 = inlined_call_operand.vmem [shape: bf16[128,64], index: 11, kind: input, shape index: {}]   ;;  %s9348_s12 = inlined_call_operand.hbm [shape: f32[1,64], index: 12, kind: input, shape index: {}]   ;;  %s9349_s13 = inlined_call_operand.hbm [shape: bf16[64,128], index: 13, kind: input, shape index: {}]   ;;  %s9350_s14 = inlined_call_operand.hbm [shape: f32[1,128], index: 14, kind: input, shape index: {}]   ;;  %s9351_s15 = inlined_call_operand.hbm [shape: f32[3072,128], index: 15, kind: output, shape index: {}]  }
   0x1   :  { %9362 = sst [smem:[#allocation32_spill]] %s9338_s2 }
   0x2   :  { %9363 = sst [smem:[#allocation33_spill]] %s9339_s3 }
   0x3   :  { %9364 = sst [smem:[#allocation34_spill]] %s9340_s4 }
   0x4   :  { %9365 = sst [smem:[#allocation35_spill]] %s9341_s5 }
   0x5   :  { %9366 = sst [smem:[#allocation36_spill]] %s9342_s6 }
   0x6   :  { %9367 = sst [smem:[#allocation37_spill]] %s9343_s7 }
   0x7   :  { %9368 = sst [smem:[#allocation38_spill]] %s9344_s8 }
   0x8   :  { %9369 = sst [smem:[#allocation39_spill]] %s9347_s11 }
   0x9   :  { %9370 = sst [smem:[#allocation40_spill]] %s9351_s15 }
   0xa   :  { %20 = vsyncpa [#allocation3], 0 }
   0xb   :  { %22 = vsyncpa [#allocation3 + $0x1], 0 }
   0xc   :  { %23 = vsyncpa [#allocation6], 0 }
   0xd   :  { %24 = vsyncpa [#allocation9], 0 }
   0xe   :  { %25 = vsyncpa [#allocation12], 0 }
   0xf   :  { %26 = vsyncpa [#allocation15], 0 }
  0x10   :  { %27 = vsyncpa [#allocation18], 0 }
  0x11   :  { %28 = vsyncpa [#allocation21], 0 }
  0x12   :  { %29 = vsyncpa [#allocation4], 0 }
  0x13   :  { %31 = vsyncpa [#allocation4 + $0x1], 0  ;;  %s7806_s18 = smov 0   ;;  %s7808_s19 = smov 0  }
  0x14   :  { %s7810_s20 = smov 0   ;;  %s7812_s21 = smov 0  }
  0x15 LB: > { %s7703_s22 = smov [#allocation5]   ;;  %s7827_s24 = sadd.s32 4294967295, %s7701_s21   ;;  %s7701_s21 = sphi %s7812_s21, %s9409_s21   ;;  %s7697_s20 = sphi %s7810_s20, %s9408_s20   ;;  %s7693_s19 = sphi %s7808_s19, %s9407_s19   ;;  %s7689_s18 = sphi %s7806_s18, %s9406_s18  }
  0x16   : > { %s404_s23 = sshll.u32 %s7703_s22, 4  ;;  %p5950_p0 = scmp.ge.s32.totalorder %s7701_s21, 1  ;;  %s405_s23 = int_to_ptr.vmem [resolvable:$true] %s404_s23 }
  0x17   : > { %p9354_p1 = scmp.eq.s32.totalorder %s7827_s24, 0  ;;  %p388_p2 = scmp.lt.s32.totalorder %s7701_s21, 4 }
  0x18   : > { %s7704_s26 = smov [#allocation8]   ;;  %s7705_s28 = smov [#allocation11]  }
  0x19   : > { %p7832_p3 = pnand %p5950_p0, %p388_p2  ;;  %s428_s27 = sshll.u32 %s7704_s26, 4  ;;  %s429_s27 = int_to_ptr.vmem [resolvable:$true] %s428_s27 }
  0x1a   : > { %s452_s29 = sshll.u32 %s7705_s28, 4  ;;  %s7284_s17 = scalar_lea.vmem %s405_s23, 16  ;;  %s7844_s29 = int_to_ptr.vmem [resolvable:$true] %s452_s29 }
  0x1b   : > { %s9371_s25 = scalar_select %p7832_p3, 1, 0 }
  0x1c   : > { %p6998_p4 = pneg %p7832_p3  ;;  %p7285_p7 = scmp.ne.s32.totalorder %s405_s23, %s7284_s17 }
  0x1d   : > { %s7291_s22 = scalar_lea.vmem %s405_s23, 32  ;;  %p7292_p10 = scmp.lt.s32.totalorder %s405_s23, %s405_s23 }
  0x1e   : > { %p7840_p5 = pnand %p6998_p4, %p9354_p1  ;;  %p7293_p11 = scmp.lt.s32.totalorder %s7291_s22, %s7284_s17 }
  0x20   : > { %p7848_p6 = pneg %p7840_p5  ;;  %p7294_p12 = por %p7293_p11, %p7292_p10 }
  0x22   : > { %p7287_p8 = pnand %p7285_p7, %p7848_p6 }
  0x24   : > { %p7288_p9 = pneg %p7287_p8 }
  0x26   : > { %p7295_p13 = pnand %p7294_p12, %p7288_p9 }
  0x28   : > { %7298 = shalt.err (!%p7295_p13)
}
  0x29   : > { %s9374_s2 = sld [smem:[#allocation32_spill]]  ;;  %s7310_s15 = scalar_lea.vmem %s429_s27, 16 }
  0x2a   : > { %p7311_p0 = scmp.ne.s32.totalorder %s429_s27, %s7310_s15  ;;  %s7317_s11 = scalar_lea.vmem %s429_s27, 32 }
  0x2b   : > { %p7318_p7 = scmp.lt.s32.totalorder %s429_s27, %s429_s27  ;;  %p7319_p8 = scmp.lt.s32.totalorder %s7317_s11, %s7310_s15 }
  0x2c   : > { %p7313_p2 = pnand %p7311_p0, %p7848_p6 }
  0x2d   : > { %p7320_p1 = por %p7319_p8, %p7318_p7 }
  0x2e   : > { %p7314_p4 = pneg %p7313_p2 }
  0x2f   : > { %7001 = dma.hbm_to_vmem [thread:$0]  (!%p7840_p5), %s9374_s2, 16, %s405_s23, [#allocation6]  }
  0x30   : > { %p7321_p3 = pnand %p7320_p1, %p7314_p4 }
  0x32   : > { %7324 = shalt.err (!%p7321_p3)
}
  0x33   : > { %s9375_s4 = sld [smem:[#allocation34_spill]]  ;;  %s7336_s23 = scalar_lea.vmem %s7844_s29, 16 }
  0x34   : > { %p7337_p9 = scmp.ne.s32.totalorder %s7844_s29, %s7336_s23  ;;  %s7343_s11 = scalar_lea.vmem %s7844_s29, 32 }
  0x35   : > { %p7344_p1 = scmp.lt.s32.totalorder %s7844_s29, %s7844_s29  ;;  %p7345_p3 = scmp.lt.s32.totalorder %s7343_s11, %s7336_s23 }
  0x36   : > { %p7339_p10 = pnand %p7337_p9, %p7848_p6 }
  0x37   : > { %p7346_p12 = por %p7345_p3, %p7344_p1 }
  0x38   : > { %p7340_p11 = pneg %p7339_p10 }
  0x39   : > { %7007 = dma.hbm_to_vmem [thread:$0]  (!%p7840_p5), %s9375_s4, 16, %s429_s27, [#allocation9]  }
  0x3a   : > { %p7347_p13 = pnand %p7346_p12, %p7340_p11 }
  0x3c   : > { %7350 = shalt.err (!%p7347_p13)
}
  0x3d   : > { %s9376_s6 = sld [smem:[#allocation36_spill]]  ;;  %s7706_s27 = smov [#allocation14]  }
  0x3e   : > { %s473_s28 = sshll.u32 %s7706_s27, 4  ;;  %s7707_s17 = smov [#allocation17]   ;;  %s474_s28 = int_to_ptr.vmem [resolvable:$true] %s473_s28 }
  0x3f   : > { %s500_s22 = sshll.u32 %s7707_s17, 4  ;;  %s7362_s2 = scalar_lea.vmem %s474_s28, 512  ;;  %s501_s22 = int_to_ptr.vmem [resolvable:$true] %s500_s22 }
  0x40   : > { %p7363_p0 = scmp.ne.s32.totalorder %s474_s28, %s7362_s2  ;;  %p7370_p7 = scmp.lt.s32.totalorder %s474_s28, %s474_s28 }
  0x41   : > { %p7371_p8 = scmp.lt.s32.totalorder %s7362_s2, %s7362_s2 }
  0x42   : > { %p7365_p2 = pnand %p7363_p0, %p7848_p6 }
  0x43   : > { %7013 = dma.hbm_to_vmem [thread:$0]  (!%p7840_p5), %s9376_s6, 16, %s7844_s29, [#allocation12]  }
  0x44   : > { %p7366_p4 = pneg %p7365_p2  ;;  %p7372_p9 = por %p7371_p8, %p7370_p7 }
  0x46   : > { %p7373_p10 = pnand %p7372_p9, %p7366_p4 }
  0x48   : > { %7376 = shalt.err (!%p7373_p10)
}
  0x49   : > { %s9356_s23 = smov 64   ;;  %s9358_s11 = smov 4  }
  0x4a   : > { %s9377_s8 = sld [smem:[#allocation38_spill]]  ;;  %s7388_s26 = scalar_lea.vmem %s501_s22, 16 }
  0x4b   : > { %p7389_p11 = scmp.ne.s32.totalorder %s501_s22, %s7388_s26  ;;  %s7395_s2 = scalar_lea.vmem %s501_s22, 32 }
  0x4c   : > { %p7396_p12 = scmp.lt.s32.totalorder %s501_s22, %s501_s22  ;;  %p7397_p13 = scmp.lt.s32.totalorder %s7395_s2, %s7388_s26 }
  0x4d   : > { %p7391_p1 = pnand %p7389_p11, %p7848_p6 }
  0x4e   : > { %p7398_p0 = por %p7397_p13, %p7396_p12 }
  0x4f   : > { %p7392_p3 = pneg %p7391_p1 }
  0x50   : > { %7019 = dma.hbm_to_vmem [thread:$0]  (!%p7840_p5), %s9377_s8, 512, %s474_s28, [#allocation15], %s9356_s23, %s9356_s23, %s9358_s11  }
  0x51   : > { %p7399_p2 = pnand %p7398_p0, %p7392_p3 }
  0x53   : > { %7402 = shalt.err (!%p7399_p2)
}
  0x54   : > { %7025 = dma.hbm_to_vmem [thread:$0]  (!%p7840_p5), %s9346_s10, 16, %s501_s22, [#allocation18]  }
  0x55   : > { %s7710_s28 = smov [#allocation20]   ;;  %s7711_s15 = smov [#allocation7]  }
  0x56   : > { %s524_s29 = sshll.u32 %s7710_s28, 4  ;;  %s414_s23 = sshll.u32 %s7711_s15, 4  ;;  %s525_s29 = int_to_ptr.vmem [resolvable:$true] %s524_s29  ;;  %s415_s23 = int_to_ptr.vmem [resolvable:$true] %s414_s23 }
  0x57   : > { %s7414_s11 = scalar_lea.vmem %s525_s29, 512  ;;  %p7422_p9 = scmp.lt.s32.totalorder %s525_s29, %s525_s29 }
  0x58   : > { %p7415_p4 = scmp.ne.s32.totalorder %s525_s29, %s7414_s11  ;;  %p7423_p10 = scmp.lt.s32.totalorder %s7414_s11, %s7414_s11 }
  0x5a   : > { %p7417_p7 = pnand %p7415_p4, %p7848_p6  ;;  %p7424_p11 = por %p7423_p10, %p7422_p9 }
  0x5c   : > { %p7418_p8 = pneg %p7417_p7 }
  0x5e   : > { %p7425_p1 = pnand %p7424_p11, %p7418_p8 }
  0x60   : > { %7428 = shalt.err (!%p7425_p1)
}
  0x61   : > { %s9378_s26 = smov 4   ;;  %s9379_s2 = smov 64  }
  0x62   : > { %7031 = dma.hbm_to_vmem [thread:$0]  (!%p7840_p5), %s9349_s13, 512, %s525_s29, [#allocation21], %s9379_s2, %s9379_s2, %s9378_s26  }
  0x63   : > { %s7440_s17 = scalar_lea.vmem %s415_s23, 512  ;;  %p7448_p0 = scmp.lt.s32.totalorder %s415_s23, %s415_s23 }
  0x64   : > { %p7441_p3 = scmp.ne.s32.totalorder %s415_s23, %s7440_s17  ;;  %p7449_p2 = scmp.lt.s32.totalorder %s7440_s17, %s7440_s17 }
  0x66   : > { %p7443_p12 = pnand %p7441_p3, %p7848_p6  ;;  %p7450_p4 = por %p7449_p2, %p7448_p0 }
  0x68   : > { %p7444_p13 = pneg %p7443_p12 }
  0x6a   : > { %p7451_p7 = pnand %p7450_p4, %p7444_p13 }
  0x6c   : > { %7454 = shalt.err (!%p7451_p7)
}
  0x6d   : > { %s9380_s3 = sld [smem:[#allocation33_spill]]  ;;  %s7712_s29 = smov [#allocation10]  }
  0x6e   : > { %s438_s15 = sshll.u32 %s7712_s29, 4  ;;  %s7713_s22 = smov [#allocation13]   ;;  %s439_s15 = int_to_ptr.vmem [resolvable:$true] %s438_s15 }
  0x6f   : > { %s463_s27 = sshll.u32 %s7713_s22, 4  ;;  %s7466_s4 = scalar_lea.vmem %s439_s15, 512  ;;  %s464_s27 = int_to_ptr.vmem [resolvable:$true] %s463_s27 }
  0x70   : > { %p7467_p8 = scmp.ne.s32.totalorder %s439_s15, %s7466_s4  ;;  %p7474_p11 = scmp.lt.s32.totalorder %s439_s15, %s439_s15 }
  0x71   : > { %p7475_p1 = scmp.lt.s32.totalorder %s7466_s4, %s7466_s4 }
  0x72   : > { %p7469_p9 = pnand %p7467_p8, %p7848_p6 }
  0x73   : > { %7004 = dma.hbm_to_vmem [thread:$0]  (!%p7840_p5), %s9380_s3, 512, %s415_s23, [#allocation6], %s9379_s2, %s9379_s2, %s9378_s26  }
  0x74   : > { %p7470_p10 = pneg %p7469_p9  ;;  %p7476_p3 = por %p7475_p1, %p7474_p11 }
  0x76   : > { %p7477_p12 = pnand %p7476_p3, %p7470_p10 }
  0x78   : > { %7480 = shalt.err (!%p7477_p12)
}
  0x79   : > { %s9381_s5 = sld [smem:[#allocation35_spill]]  ;;  %s7492_s11 = scalar_lea.vmem %s464_s27, 64 }
  0x7a   : > { %p7493_p13 = scmp.ne.s32.totalorder %s464_s27, %s7492_s11  ;;  %p7500_p4 = scmp.lt.s32.totalorder %s464_s27, %s464_s27 }
  0x7b   : > { %p7501_p7 = scmp.lt.s32.totalorder %s7492_s11, %s7492_s11 }
  0x7c   : > { %p7495_p0 = pnand %p7493_p13, %p7848_p6 }
  0x7d   : > { %p7502_p8 = por %p7501_p7, %p7500_p4 }
  0x7e   : > { %p7496_p2 = pneg %p7495_p0 }
  0x7f   : > { %7010 = dma.hbm_to_vmem [thread:$0]  (!%p7840_p5), %s9381_s5, 512, %s439_s15, [#allocation9], %s9379_s2, %s9379_s2, %s9378_s26  }
  0x80   : > { %p7503_p9 = pnand %p7502_p8, %p7496_p2 }
  0x82   : > { %7506 = shalt.err (!%p7503_p9)
}
  0x83   : > { %s9382_s7 = sld [smem:[#allocation37_spill]]  ;;  %s7714_s29 = smov [#allocation16]  }
  0x84   : > { %s486_s15 = sshll.u32 %s7714_s29, 4  ;;  %s7715_s22 = smov [#allocation19]   ;;  %s487_s15 = int_to_ptr.vmem [resolvable:$true] %s486_s15 }
  0x85   : > { %s514_s23 = sshll.u32 %s7715_s22, 4  ;;  %s7518_s17 = scalar_lea.vmem %s487_s15, 512  ;;  %s515_s23 = int_to_ptr.vmem [resolvable:$true] %s514_s23 }
  0x86   : > { %p7519_p10 = scmp.ne.s32.totalorder %s487_s15, %s7518_s17  ;;  %p7526_p3 = scmp.lt.s32.totalorder %s487_s15, %s487_s15 }
  0x87   : > { %p7527_p12 = scmp.lt.s32.totalorder %s7518_s17, %s7518_s17 }
  0x88   : > { %p7521_p11 = pnand %p7519_p10, %p7848_p6 }
  0x89   : > { %7016 = dma.hbm_to_vmem [thread:$0]  (!%p7840_p5), %s9382_s7, 64, %s464_s27, [#allocation12]  }
  0x8a   : > { %p7522_p1 = pneg %p7521_p11  ;;  %p7528_p13 = por %p7527_p12, %p7526_p3 }
  0x8c   : > { %p7529_p0 = pnand %p7528_p13, %p7522_p1 }
  0x8e   : > { %7532 = shalt.err (!%p7529_p0)
}
  0x8f   : > { %7022 = dma.hbm_to_vmem [thread:$0]  (!%p7840_p5), %s9345_s9, 512, %s487_s15, [#allocation15], %s9379_s2, %s9379_s2, %s9378_s26  }
  0x90   : > { %s7544_s4 = scalar_lea.vmem %s515_s23, 16  ;;  %s7551_s28 = scalar_lea.vmem %s515_s23, 32 }
  0x91   : > { %p7545_p2 = scmp.ne.s32.totalorder %s515_s23, %s7544_s4  ;;  %p7552_p8 = scmp.lt.s32.totalorder %s515_s23, %s515_s23 }
  0x92   : > { %p7553_p9 = scmp.lt.s32.totalorder %s7551_s28, %s7544_s4 }
  0x93   : > { %p7547_p4 = pnand %p7545_p2, %p7848_p6 }
  0x94   : > { %p7554_p10 = por %p7553_p9, %p7552_p8 }
  0x95   : > { %p7548_p7 = pneg %p7547_p4 }
  0x97   : > { %p7555_p11 = pnand %p7554_p10, %p7548_p7 }
  0x99   : > { %7558 = shalt.err (!%p7555_p11)
}
  0x9a   : > { %7028 = dma.hbm_to_vmem [thread:$0]  (!%p7840_p5), %s9348_s12, 16, %s515_s23, [#allocation18]  }
  0x9b   : > { %s7716_s26 = smov [#allocation22]  }
  0x9c   : > { %s538_s2 = sshll.u32 %s7716_s26, 4  ;;  %s539_s2 = int_to_ptr.vmem [resolvable:$true] %s538_s2 }
  0x9d   : > { %s7570_s15 = scalar_lea.vmem %s539_s2, 16  ;;  %s7577_s17 = scalar_lea.vmem %s539_s2, 32 }
  0x9e   : > { %p7571_p1 = scmp.ne.s32.totalorder %s539_s2, %s7570_s15  ;;  %p7578_p13 = scmp.lt.s32.totalorder %s539_s2, %s539_s2 }
  0x9f   : > { %p7579_p0 = scmp.lt.s32.totalorder %s7577_s17, %s7570_s15 }
  0xa0   : > { %p7573_p3 = pnand %p7571_p1, %p7848_p6 }
  0xa1   : > { %p7580_p2 = por %p7579_p0, %p7578_p13 }
  0xa2   : > { %p7574_p12 = pneg %p7573_p3 }
  0xa4   : > { %p7581_p4 = pnand %p7580_p2, %p7574_p12 }
  0xa6   : > { %7584 = shalt.err (!%p7581_p4)
}
  0xa7   : > { %7034 = dma.hbm_to_vmem [thread:$0]  (!%p7840_p5), %s9350_s14, 16, %s539_s2, [#allocation21]  }
  0xa8   : > { %s5949_s16 = sadd.s32 4294967294, %s7701_s21   ;;  %s7959_s30 = sadd.s32 1, %s7701_s21  }
  0xa9   : > { %s41_s23 = ssub.s32 %s7701_s21, %s7959_s30  ;;  %s44_s4 = sadd.s32 1, %s7697_s20 }
  0xaa   : > { %p42_p6 = scmp.eq.s32.totalorder %s41_s23, 0  ;;  %p51_p7 = scmp.ne.s32.totalorder %s7697_s20, %s7693_s19 }
  0xab   : > { %p52_p8 = scmp.eq.s32.totalorder %s7701_s21, 0  ;;  %p57_p9 = scmp.ne.s32.totalorder %s7693_s19, %s7689_s18 }
  0xac   : > { %s7970_s28 = scalar_select %p42_p6, %s7697_s20, %s44_s4  }
  0xad   : > { %p53_p10 = por %p52_p8, %p51_p7  ;;  %p9383_p11 = scmp.eq.s32.totalorder %s7827_s24, 0 }
  0xae   : > { %p375_p5 = scmp.eq.s32.totalorder %s7827_s24, 2  ;;  %p381_p3 = scmp.eq.s32.totalorder %s5949_s16, 2 }
  0xaf   : > { %p7974_p1 = por %p9383_p11, %p57_p9  ;;  %p7055_p12 = scmp.lt.s32.totalorder %s7701_s21, 3 }
  0xb0   : > { %s549_s22 = sand.u32 1, %s7697_s20   ;;  %p7981_p13 = por %p375_p5, %p51_p7 }
  0xb1   : > { %s9384_s29 = scalar_select %p7974_p1, 1, 0 }
  0xb2   : > { %s9385_s26 = scalar_select %p7981_p13, 1, 0 }
  0xb3   : > { %p7985_p0 = por %p381_p3, %p57_p9  ;;  %s6943_s15 = smul.u32 384, %s549_s22 }
  0xb4   : > { %s6944_s17 = smul.u32 6144, %s7701_s21  ;;  %p7990_p2 = pnand %p7055_p12, %p53_p10 }
  0xb5   : > { %s9386_s2 = scalar_select %p7985_p0, 1, 0 }
  0xb6   : > { %s7997_s16 = scalar_lea.hbm %s9336_s0, %s6944_s17  ;;  %s553_s4 = scalar_lea.vmem [#allocation2], %s6943_s15 }
  0xb7   : > { %s561_s3 = sshll.u32 %s553_s4, 4  ;;  %s8001_s5 = scalar_lea.sflag [#allocation3], %s549_s22  ;;  %s7999_s3 = int_to_ptr.vmem [resolvable:$true] %s561_s3 }
  0xb8   : > { %s7585_s6 = scalar_lea.hbm %s7997_s16, 6144  ;;  %p7587_p6 = pneg %p7990_p2 }
  0xb9   : > { %p7586_p4 = scmp.ne.s32.totalorder %s7997_s16, %s7585_s6  ;;  %s7590_s17 = scalar_lea.hbm %s9336_s0, 18432 }
  0xba   : > { %p7591_p9 = scmp.lt.s32.totalorder %s7997_s16, %s9336_s0  ;;  %p7592_p10 = scmp.lt.s32.totalorder %s7590_s17, %s7585_s6 }
  0xbb   : > { %p7588_p7 = pnand %p7587_p6, %p7586_p4 }
  0xbc   : > { %p7593_p11 = por %p7592_p10, %p7591_p9 }
  0xbd   : > { %p7589_p8 = pneg %p7588_p7 }
  0xbf   : > { %p7594_p5 = pnand %p7593_p11, %p7589_p8 }
  0xc1   : > { %7597 = shalt.err (!%p7594_p5)
}
  0xc2   : > { %s7598_s22 = scalar_lea.vmem %s7999_s3, 6144  ;;  %s7717_s15 = smov [#allocation2]  }
  0xc3   : > { %p7599_p3 = scmp.ne.s32.totalorder %s7999_s3, %s7598_s22  ;;  %s7603_s4 = sshll.u32 %s7717_s15, 4  ;;  %s7604_s4 = int_to_ptr.vmem [resolvable:$false] %s7603_s4 }
  0xc4   : > { %s7605_s7 = scalar_lea.vmem %s7604_s4, 12288  ;;  %p7606_p7 = scmp.lt.s32.totalorder %s7999_s3, %s7604_s4 }
  0xc5   : > { %p7601_p12 = pnand %p7599_p3, %p7587_p6  ;;  %p7607_p0 = scmp.lt.s32.totalorder %s7605_s7, %s7598_s22 }
  0xc7   : > { %p7602_p4 = pneg %p7601_p12  ;;  %p7608_p13 = por %p7607_p0, %p7606_p7 }
  0xc9   : > { %p7609_p1 = pnand %p7608_p13, %p7602_p4 }
  0xcb   : > { %7612 = shalt.err (!%p7609_p1)
}
  0xcc   : > { %s7718_s6 = smov 384   ;;  %s7719_s8 = smov 24  }
  0xcd   : > { %7038 = dma.hbm_to_vmem [thread:$0]  (!%p7990_p2), %s7997_s16, 6144, %s7999_s3, %s8001_s5, %s7718_s6, %s7718_s6, %s7719_s8  }
  0xce   : > { %p9388_p6 = scmp.ne.s32.totalorder %s9371_s25, 0 }
  0xcf   : > { %s8025_s11 = sand.u32 (!%p9388_p6), 1, %s7693_s19   ;;  %p9389_p1 = scmp.ne.s32.totalorder (!%p9388_p6), %s9384_s29, 0 }
  0xd0   : > { %573 = sbr.rel (%p9388_p6) target bundleno = 1847 (0x737), region = 80  ;;  %s576_s23 = scalar_lea.sflag (!%p9388_p6), [#allocation3], %s8025_s11 }
  0xd1   : > { %s6945_s17 = smul.u32 (!%p9388_p6), 384, %s8025_s11 }
  0xd3   : > { %s8029_s22 = scalar_lea.vmem (!%p9388_p6), [#allocation2], %s6945_s17 }
  0xd5   : > { %7656 = dma.done.wait (%p9389_p1), %s576_s23, 6144  }
  0xd6   : > { %7658 = vsyncadd (%p9389_p1), %s576_s23, 4294961152  ;;  %p9390_p13 = scmp.eq.s32.totalorder %s7827_s24, 0 }
  0xd8   : > { %7660 = dma.done.wait (%p9390_p13), [#allocation6], 528   ;;  %p9391_p0 = pmov %p9390_p13 }
  0xda   : > { %7662 = vsyncadd (%p9391_p0), [#allocation6], 4294966768  ;;  %p9392_p2 = pmov %p9391_p0 }
  0xdb   : > { %p9393_p8 = pmov %p9391_p0 }
  0xdc   : > { %7664 = dma.done.wait (%p9392_p2), [#allocation9], 528  }
  0xdd   : > { %7666 = vsyncadd (%p9393_p8), [#allocation9], 4294966768  ;;  %p9394_p9 = pmov %p9391_p0 }
  0xde   : > { %p9395_p10 = pmov %p9391_p0 }
  0xdf   : > { %7668 = dma.done.wait (%p9394_p9), [#allocation12], 80  }
  0xe0   : > { %7670 = vsyncadd (%p9395_p10), [#allocation12], 4294967216  ;;  %p9396_p11 = pmov %p9391_p0 }
  0xe1   : > { %p9397_p5 = pmov %p9391_p0 }
  0xe2   : > { %7672 = dma.done.wait (%p9396_p11), [#allocation15], 1024  }
  0xe3   : > { %7674 = vsyncadd (%p9397_p5), [#allocation15], 4294966272  ;;  %p9398_p3 = pmov %p9391_p0 }
  0xe4   : > { %p9399_p12 = pmov %p9391_p0 }
  0xe5   : > { %7676 = dma.done.wait (%p9398_p3), [#allocation18], 32  }
  0xe6   : > { %7678 = vsyncadd (%p9399_p12), [#allocation18], 4294967264  ;;  %p9400_p4 = pmov %p9391_p0 }
  0xe7   : > { %p9401_p7 = pmov %p9391_p0 }
  0xe8   : > { %7680 = dma.done.wait (%p9400_p4), [#allocation21], 528  }
  0xe9   : > { %7682 = vsyncadd (%p9401_p7), [#allocation21], 4294966768  ;;  %v7122_v0 = vld [vmem:[%s9337_s1 + $0x78] sm:$0xff]   ;;  %v7126_v4 = vld [vmem:[%s9337_s1 + $0x70] sm:$0xff]   ;;  %vm1710_vm0 = vcmask 523264   ;;  %vm7721_vm1 = vmmov 0  }
  0xea   : > { %v7123_v1 = vld [vmem:[%s9337_s1 + $0x38] sm:$0xff]   ;;  %6206 = vmatprep.subr.bf16.mxu0 %v7122_v0  ;;  %v7127_v5 = vld [vmem:[%s9337_s1 + $0x30] sm:$0xff]   ;;  %v7130_v8 = vld [vmem:[%s9337_s1 + $0x68] sm:$0xff]   ;;  %s9402_s15 = sld [smem:[#allocation39_spill]]  ;;  %s5980_s7 = sshll.u32 %s8025_s11, 10 }
  0xeb   : > { %v7124_v2 = vld [vmem:[%s9337_s1 + $0xf8] sm:$0xff]   ;;  %6207 = vmatpush3.bf16.msra.mxu0 %v7123_v1  ;;  %v7128_v6 = vld [vmem:[%s9337_s1 + $0xf0] sm:$0xff]   ;;  %v7131_v9 = vld [vmem:[%s9337_s1 + $0x28] sm:$0xff]   ;;  %s8984_s6 = scalar_lea.vmem [#allocation23], %s5980_s7  ;;  %s6205_s8 = sshll.u32 %s7827_s24, 14 }
  0xec   : > { %v7125_v3 = vld [vmem:[%s9337_s1 + $0xb8] sm:$0xff]   ;;  %6270 = vmatprep.subr.bf16.mxu1 %v7124_v2  ;;  %6208 = vmatprep.subr.bf16.mxu0 %v7126_v4  ;;  %v7129_v7 = vld [vmem:[%s9337_s1 + $0xb0] sm:$0xff]   ;;  %v7132_v10 = vld [vmem:[%s9337_s1 + $0xe8] sm:$0xff]   ;;  %s5762_s17 = sshll.u32 %s8984_s6, 4  ;;  %s9403_s5 = sld [smem:[#allocation40_spill]]  ;;  %s9292_s17 = int_to_ptr.vmem [resolvable:$true] %s5762_s17 }
  0xed   : > { %6271 = vmatpush3.bf16.msra.mxu1 %v7125_v3  ;;  %v7133_v11 = vld [vmem:[%s9337_s1 + $0xa8] sm:$0xff]   ;;  %v7134_v12 = vld [vmem:[%s9337_s1 + $0x60] sm:$0xff]   ;;  %v7138_v16 = vld [vmem:[%s9337_s1 + $0x58] sm:$0xff]   ;;  %s5749_s29 = scalar_lea.sflag [#allocation4], %s8025_s11  ;;  %s7613_s24 = scalar_lea.vmem %s9292_s17, 16384 }
  0xee   : > { %6272 = vmatprep.subr.bf16.mxu1 %v7128_v6  ;;  %v7135_v13 = vld [vmem:[%s9337_s1 + $0x20] sm:$0xff]   ;;  %v7139_v17 = vld [vmem:[%s9337_s1 + $0x18] sm:$0xff]   ;;  %v7142_v20 = vld [vmem:[%s9337_s1 + $0x50] sm:$0xff]   ;;  %p7614_p6 = scmp.ne.s32.totalorder %s9292_s17, %s7613_s24  ;;  %p9404_p1 = scmp.ne.s32.totalorder %s9385_s26, 0 }
  0xef   : > { %6209 = vmatpush3.bf16.msra.mxu0 %v7127_v5  ;;  %v7136_v14 = vld [vmem:[%s9337_s1 + $0xe0] sm:$0xff]   ;;  %v7140_v18 = vld [vmem:[%s9337_s1 + $0xd8] sm:$0xff]   ;;  %v7143_v21 = vld [vmem:[%s9337_s1 + $0x10] sm:$0xff]   ;;  %s7723_s27 = smov [#allocation23]  }
  0xf0   : > { %6210 = vmatprep.subr.bf16.mxu0 %v7130_v8  ;;  %v7137_v15 = vld [vmem:[%s9337_s1 + $0xa0] sm:$0xff]   ;;  %v7141_v19 = vld [vmem:[%s9337_s1 + $0x98] sm:$0xff]   ;;  %v7144_v22 = vld [vmem:[%s9337_s1 + $0xd0] sm:$0xff]   ;;  %p7615_p13 = pnand %p7614_p6, %p9404_p1 }
  0xf1   : > { %6273 = vmatpush3.bf16.msra.mxu1 %v7129_v7  ;;  %v7145_v23 = vld [vmem:[%s9337_s1 + $0x90] sm:$0xff]   ;;  %v7146_v24 = vld [vmem:[%s9337_s1 + $0x48] sm:$0xff]   ;;  %v7150_v28 = vld [vmem:[%s9337_s1 + $0x40] sm:$0xff]  }
  0xf2   : > { %6274 = vmatprep.subr.bf16.mxu1 %v7132_v10  ;;  %v7147_v25 = vld [vmem:[%s9337_s1 + $0x8] sm:$0xff]   ;;  %v7151_v29 = vld [vmem:[%s9337_s1] sm:$0xff]   ;;  %v7157_v34 = vld [vmem:[%s9337_s1 + $0x178] sm:$0xff]   ;;  %s9290_s25 = scalar_lea.hbm %s9403_s5, %s6205_s8  ;;  %p7616_p0 = pneg %p7615_p13 }
  0xf3   : > { %6211 = vmatpush3.bf16.msra.mxu0 %v7131_v9  ;;  %v7148_v26 = vld [vmem:[%s9337_s1 + $0xc8] sm:$0xff]   ;;  %v7152_v30 = vld [vmem:[%s9337_s1 + $0xc0] sm:$0xff]   ;;  %v7161_v37 = vld [vmem:[%s9337_s1 + $0x138] sm:$0xff]  }
  0xf4   : > { %6212 = vmatprep.subr.bf16.mxu0 %v7134_v12  ;;  %v7149_v27 = vld [vmem:[%s9337_s1 + $0x88] sm:$0xff]   ;;  %v7153_v31 = vld [vmem:[%s8029_s22] ss:$24 sps:$4 sm:$0xff]   ;;  %v7155_v32 = vld [vmem:[%s8029_s22 + $0x4] ss:$24 sps:$4 sm:$0xff]  }
  0xf5   : > { %6275 = vmatpush3.bf16.msra.mxu1 %v7133_v11  ;;  %v7156_v33 = vld [vmem:[%s9337_s1 + $0x80] sm:$0xff]   ;;  %1388 = vmatprep.mubr.bf16.mxu0 %v7155_v32  ;;  %v7162_v38 = vld [vmem:[%s8029_s22 + $0x34] ss:$24 sps:$4 sm:$0xff]   ;;  %v7164_v39 = vld [vmem:[%s8029_s22 + $0x30] ss:$24 sps:$4 sm:$0xff]  }
  0xf6   : > { %6276 = vmatprep.subr.bf16.mxu1 %v7136_v14  ;;  %v7158_v35 = vld [vmem:[%s8029_s22 + $0x8] ss:$24 sps:$4 sm:$0xff]   ;;  %v7160_v36 = vld [vmem:[%s8029_s22 + $0xc] ss:$24 sps:$4 sm:$0xff]   ;;  %v7165_v40 = vld [vmem:[%s9337_s1 + $0x170] sm:$0xff]  }
  0xf7   : > { %6213 = vmatpush3.bf16.msra.mxu0 %v7135_v13  ;;  %1485 = vmatprep.mubr.bf16.mxu1 %v7160_v36  ;;  %v7166_v41 = vld [vmem:[%s8029_s22 + $0x3c] ss:$24 sps:$4 sm:$0xff]   ;;  %v7169_v43 = vld [vmem:[%s8029_s22 + $0x38] ss:$24 sps:$4 sm:$0xff]   ;;  %v7173_v45 = vld [vmem:[%s9337_s1 + $0x168] sm:$0xff]  }
  0xf8   : > { %6214 = vmatprep.subr.bf16.mxu0 %v7138_v16  ;;  %v7168_v42 = vld [vmem:[%s9337_s1 + $0x130] sm:$0xff]   ;;  %v7170_v44 = vld [vmem:[%s8029_s22 + $0x64] ss:$24 sps:$4 sm:$0xff]   ;;  %v7176_v47 = vld [vmem:[%s9337_s1 + $0x128] sm:$0xff]  }
  0xf9   : > { %6277 = vmatpush3.bf16.msra.mxu1 %v7137_v15  ;;  %v7174_v46 = vld [vmem:[%s8029_s22 + $0x6c] ss:$24 sps:$4 sm:$0xff]   ;;  %v7172_v48 = vld [vmem:[%s8029_s22 + $0x60] ss:$24 sps:$4 sm:$0xff]   ;;  %v7182_v53 = vld [vmem:[%s8029_s22 + $0x9c] ss:$24 sps:$4 sm:$0xff]  }
  0xfa   : > { %6278 = vmatprep.subr.bf16.mxu1 %v7140_v18  ;;  %v7178_v49 = vld [vmem:[%s8029_s22 + $0x94] ss:$24 sps:$4 sm:$0xff]   ;;  %v7181_v50 = vld [vmem:[%s9337_s1 + $0x160] sm:$0xff]   ;;  %v7189_v54 = vld [vmem:[%s9337_s1 + $0x158] sm:$0xff]  }
  0xfb   : > { %6215 = vmatpush3.bf16.msra.mxu0 %v7139_v17  ;;  %v7177_v51 = vld [vmem:[%s8029_s22 + $0x68] ss:$24 sps:$4 sm:$0xff]   ;;  %v7192_v55 = vld [vmem:[%s9337_s1 + $0x118] sm:$0xff]   ;;  %v7197_v58 = vld [vmem:[%s9337_s1 + $0x150] sm:$0xff]  }
  0xfc   : > { %6216 = vmatprep.subr.bf16.mxu0 %v7142_v20  ;;  %v7184_v52 = vld [vmem:[%s9337_s1 + $0x120] sm:$0xff]   ;;  %v7180_v56 = vld [vmem:[%s8029_s22 + $0x90] ss:$24 sps:$4 sm:$0xff]   ;;  %v7194_v0 = vld [vmem:[%s8029_s22 + $0xf4] ss:$24 sps:$4 sm:$0xff]  }
  0xfd   : > { %6279 = vmatpush3.bf16.msra.mxu1 %v7141_v19  ;;  %v7186_v57 = vld [vmem:[%s8029_s22 + $0xc4] ss:$24 sps:$4 sm:$0xff]   ;;  %v7185_v59 = vld [vmem:[%s8029_s22 + $0x98] ss:$24 sps:$4 sm:$0xff]   ;;  %v7205_v62 = vld [vmem:[%s9337_s1 + $0x148] sm:$0xff]  }
  0xfe   : > { %6280 = vmatprep.subr.bf16.mxu1 %v7144_v22  ;;  %v7190_v60 = vld [vmem:[%s8029_s22 + $0xcc] ss:$24 sps:$4 sm:$0xff]   ;;  %v7200_v61 = vld [vmem:[%s9337_s1 + $0x110] sm:$0xff]   ;;  %v7188_v63 = vld [vmem:[%s8029_s22 + $0xc0] ss:$24 sps:$4 sm:$0xff]  }
  0xff   : > { %6217 = vmatpush3.bf16.msra.mxu0 %v7143_v21  ;;  %v7208_v1 = vld [vmem:[%s9337_s1 + $0x108] sm:$0xff]   ;;  %v7213_v3 = vld [vmem:[%s9337_s1 + $0x140] sm:$0xff]   ;;  %v7198_v4 = vld [vmem:[%s8029_s22 + $0xfc] ss:$24 sps:$4 sm:$0xff]  }
 0x100   : > { %6218 = vmatprep.subr.bf16.mxu0 %v7146_v24  ;;  %v7193_v2 = vld [vmem:[%s8029_s22 + $0xc8] ss:$24 sps:$4 sm:$0xff]   ;;  %v7202_v7 = vld [vmem:[%s8029_s22 + $0x124] ss:$24 sps:$4 sm:$0xff]   ;;  %v7201_v8 = vld [vmem:[%s8029_s22 + $0xf8] ss:$24 sps:$4 sm:$0xff]  }
 0x101   : > { %6281 = vmatpush3.bf16.msra.mxu1 %v7145_v23  ;;  %v7216_v5 = vld [vmem:[%s9337_s1 + $0x100] sm:$0xff]   ;;  %v7196_v6 = vld [vmem:[%s8029_s22 + $0xf0] ss:$24 sps:$4 sm:$0xff]   ;;  %v7210_v11 = vld [vmem:[%s8029_s22 + $0x154] ss:$24 sps:$4 sm:$0xff]  }
 0x102   : > { %6282 = vmatprep.subr.bf16.mxu1 %v7148_v26  ;;  %v7206_v9 = vld [vmem:[%s8029_s22 + $0x12c] ss:$24 sps:$4 sm:$0xff]   ;;  %v7204_v10 = vld [vmem:[%s8029_s22 + $0x120] ss:$24 sps:$4 sm:$0xff]   ;;  %v7214_v13 = vld [vmem:[%s8029_s22 + $0x15c] ss:$24 sps:$4 sm:$0xff]  }
 0x103   : > { %6219 = vmatpush3.bf16.msra.mxu0 %v7147_v25  ;;  %v7209_v12 = vld [vmem:[%s8029_s22 + $0x128] ss:$24 sps:$4 sm:$0xff]   ;;  %v7220_v15 = vld [vmem:[%s8029_s22 + $0x14] ss:$24 sps:$4 sm:$0xff]   ;;  %v7217_v16 = vld [vmem:[%s8029_s22 + $0x158] ss:$24 sps:$4 sm:$0xff]  }
 0x104   : > { %6220 = vmatprep.subr.bf16.mxu0 %v7150_v28  ;;  %v7212_v14 = vld [vmem:[%s8029_s22 + $0x150] ss:$24 sps:$4 sm:$0xff]   ;;  %v7221_v18 = vld [vmem:[%s8029_s22 + $0x44] ss:$24 sps:$4 sm:$0xff]   ;;  %v7223_v19 = vld [vmem:[%s8029_s22 + $0x40] ss:$24 sps:$4 sm:$0xff]  }
 0x105   : > { %6283 = vmatpush3.bf16.msra.mxu1 %v7149_v27  ;;  %v7218_v17 = vld [vmem:[%s8029_s22 + $0x10] ss:$24 sps:$4 sm:$0xff]   ;;  %v7224_v20 = vld [vmem:[%s8029_s22 + $0x74] ss:$24 sps:$4 sm:$0xff]   ;;  %v7227_v22 = vld [vmem:[%s8029_s22 + $0xa4] ss:$24 sps:$4 sm:$0xff]  }
 0x106   : > { %6284 = vmatprep.subr.bf16.mxu1 %v7152_v30  ;;  %v7226_v21 = vld [vmem:[%s8029_s22 + $0x70] ss:$24 sps:$4 sm:$0xff]   ;;  %v7229_v23 = vld [vmem:[%s8029_s22 + $0xa0] ss:$24 sps:$4 sm:$0xff]   ;;  %v7230_v24 = vld [vmem:[%s8029_s22 + $0xd4] ss:$24 sps:$4 sm:$0xff]  }
 0x107   : > { %6221 = vmatpush3.bf16.msra.mxu0 %v7151_v29  ;;  %v7242_v25 = vld [vmem:[#allocation7 + $0x18] sm:$0xff]   ;;  %v7232_v26 = vld [vmem:[%s8029_s22 + $0xd0] ss:$24 sps:$4 sm:$0xff]   ;;  %v7236_v29 = vld [vmem:[%s8029_s22 + $0x134] ss:$24 sps:$4 sm:$0xff]  }
 0x108   : > { %6334 = vmatprep.subr.bf16.mxu0 %v7157_v34  ;;  %v7233_v27 = vld [vmem:[%s8029_s22 + $0x104] ss:$24 sps:$4 sm:$0xff]   ;;  %v7235_v28 = vld [vmem:[%s8029_s22 + $0x100] ss:$24 sps:$4 sm:$0xff]   ;;  %v7244_v34 = vld [vmem:[#allocation7 + $0x8] sm:$0xff]  }
 0x109   : > { %6285 = vmatpush3.bf16.msra.mxu1 %v7156_v33  ;;  %v7243_v30 = vld [vmem:[#allocation7 + $0x10] sm:$0xff]   ;;  %v7239_v32 = vld [vmem:[%s8029_s22 + $0x164] ss:$24 sps:$4 sm:$0xff]  }
 0x10a   : > { %1389 = vmatmul.mubr.bf16.vlgmr.msra.gmra.mxu0 %v7153_v31  ;;  %6579 = vmatprep.subr.bf16.mxu1 %v7242_v25  ;;  %v7238_v31 = vld [vmem:[%s8029_s22 + $0x130] ss:$24 sps:$4 sm:$0xff]   ;;  %v7241_v33 = vld [vmem:[%s8029_s22 + $0x160] ss:$24 sps:$4 sm:$0xff]   ;;  %s7617_s22 = sshll.u32 %s7723_s27, 4  ;;  %s7618_s22 = int_to_ptr.vmem [resolvable:$false] %s7617_s22 }
 0x10b   : > { %6335 = vmatpush3.bf16.msra.mxu0 %v7161_v37  ;;  %1396 = vmatprep.mubr.bf16.mxu0 %v7162_v38  ;;  %s7619_s16 = scalar_lea.vmem %s7618_s22, 32768  ;;  %p7620_p2 = scmp.lt.s32.totalorder %s9292_s17, %s7618_s22 }
 0x10c   : > { %1486 = vmatmul.mubr.bf16.vlgmr.msra.gmra.mxu1 %v7158_v35  ;;  %6336 = vmatprep.subr.bf16.mxu0 %v7165_v40  ;;  %v7245_v35 = vld [vmem:[#allocation7] sm:$0xff]   ;;  %p7621_p8 = scmp.lt.s32.totalorder %s7619_s16, %s7613_s24 }
 0x10d   : > { %1493 = vmatprep.mubr.bf16.mxu1 %v7166_v41  ;;  %6580 = vmatpush3.bf16.msra.mxu1 %v7242_v25 }
 0x10e   : > { %6581 = vmatprep.subr.bf16.mxu1 %v7243_v30  ;;  %p7622_p9 = por %p7621_p8, %p7620_p2 }
 0x10f   : > { %6337 = vmatpush3.bf16.msra.mxu0 %v7168_v42 }
 0x110   : > { %6338 = vmatprep.subr.bf16.mxu0 %v7173_v45  ;;  %p7623_p10 = pnand %p7622_p9, %p7616_p0 }
 0x111   : > { %6582 = vmatpush3.bf16.msra.mxu1 %v7243_v30 }
 0x112   : > { %1397 = vmatmul.mubr.bf16.gmra.mxu0 %v7164_v39  ;;  %6583 = vmatprep.subr.bf16.mxu1 %v7244_v34 }
 0x113   : > { %1404 = vmatprep.mubr.bf16.mxu0 %v7170_v44  ;;  %6339 = vmatpush3.bf16.msra.mxu0 %v7176_v47  ;;  %v8251_v44 = vld [vmem:[#allocation10 + $0x18] sm:$0xff]  }
 0x114   : > { %1494 = vmatmul.mubr.bf16.gmra.mxu1 %v7169_v43  ;;  %6340 = vmatprep.subr.bf16.mxu0 %v7181_v50 }
 0x115   : > { %1501 = vmatprep.mubr.bf16.mxu1 %v7174_v46  ;;  %6584 = vmatpush3.bf16.msra.mxu1 %v7244_v34 }
 0x116   : > { %6585 = vmatprep.subr.bf16.mxu1 %v7245_v35 }
 0x117   : > { %6341 = vmatpush3.bf16.msra.mxu0 %v7184_v52 }
 0x118   : > { %6342 = vmatprep.subr.bf16.mxu0 %v7189_v54 }
 0x119   : > { %6586 = vmatpush3.bf16.msra.mxu1 %v7245_v35 }
 0x11a   : > { %1405 = vmatmul.mubr.bf16.gmra.mxu0 %v7172_v48  ;;  %6603 = vmatprep.subr.bf16.mxu1 %v8251_v44 }
 0x11b   : > { %1412 = vmatprep.mubr.bf16.mxu0 %v7178_v49  ;;  %6343 = vmatpush3.bf16.msra.mxu0 %v7192_v55 }
 0x11c   : > { %1502 = vmatmul.mubr.bf16.gmra.mxu1 %v7177_v51  ;;  %6344 = vmatprep.subr.bf16.mxu0 %v7197_v58 }
 0x11d   : > { %1509 = vmatprep.mubr.bf16.mxu1 %v7182_v53 }
 0x11f   : > { %6345 = vmatpush3.bf16.msra.mxu0 %v7200_v61 }
 0x120   : > { %6346 = vmatprep.subr.bf16.mxu0 %v7205_v62 }
 0x122   : > { %1413 = vmatmul.mubr.bf16.gmra.mxu0 %v7180_v56 }
 0x123   : > { %1420 = vmatprep.mubr.bf16.mxu0 %v7186_v57  ;;  %6347 = vmatpush3.bf16.msra.mxu0 %v7208_v1 }
 0x124   : > { %1510 = vmatmul.mubr.bf16.gmra.mxu1 %v7185_v59  ;;  %6348 = vmatprep.subr.bf16.mxu0 %v7213_v3 }
 0x125   : > { %1517 = vmatprep.mubr.bf16.mxu1 %v7190_v60 }
 0x127   : > { %6349 = vmatpush3.bf16.msra.mxu0 %v7216_v5 }
 0x12a   : > { %1421 = vmatmul.mubr.bf16.gmra.mxu0 %v7188_v63 }
 0x12b   : > { %1428 = vmatprep.mubr.bf16.mxu0 %v7194_v0 }
 0x12c   : > { %1518 = vmatmul.mubr.bf16.gmra.mxu1 %v7193_v2 }
 0x12d   : > { %1525 = vmatprep.mubr.bf16.mxu1 %v7198_v4 }
 0x132   : > { %1429 = vmatmul.mubr.bf16.gmra.mxu0 %v7196_v6 }
 0x133   : > { %1436 = vmatprep.mubr.bf16.mxu0 %v7202_v7 }
 0x134   : > { %1526 = vmatmul.mubr.bf16.gmra.mxu1 %v7201_v8 }
 0x135   : > { %1533 = vmatprep.mubr.bf16.mxu1 %v7206_v9 }
 0x13a   : > { %1437 = vmatmul.mubr.bf16.gmra.mxu0 %v7204_v10 }
 0x13b   : > { %1444 = vmatprep.mubr.bf16.mxu0 %v7210_v11 }
 0x13c   : > { %1534 = vmatmul.mubr.bf16.gmra.mxu1 %v7209_v12 }
 0x13d   : > { %1541 = vmatprep.mubr.bf16.mxu1 %v7214_v13 }
 0x142   : > { %1445 = vmatmul.mubr.bf16.gmra.mxu0 %v7212_v14 }
 0x143   : > { %1582 = vmatprep.mubr.bf16.mxu0 %v7220_v15 }
 0x144   : > { %1542 = vmatmul.mubr.bf16.gmra.mxu1 %v7217_v16 }
 0x14a   : > { %1583 = vmatmul.mubr.bf16.vlgmr.msra.gmra.mxu0 %v7218_v17 }
 0x14b   : > { %1590 = vmatprep.mubr.bf16.mxu0 %v7221_v18 }
 0x152   : > { %1591 = vmatmul.mubr.bf16.gmra.mxu0 %v7223_v19 }
 0x153   : > { %1598 = vmatprep.mubr.bf16.mxu0 %v7224_v20 }
 0x15a   : > { %1599 = vmatmul.mubr.bf16.gmra.mxu0 %v7226_v21 }
 0x15b   : > { %1606 = vmatprep.mubr.bf16.mxu0 %v7227_v22 }
 0x162   : > { %1607 = vmatmul.mubr.bf16.gmra.mxu0 %v7229_v23 }
 0x163   : > { %1614 = vmatprep.mubr.bf16.mxu0 %v7230_v24 }
 0x16a   : > { %1615 = vmatmul.mubr.bf16.gmra.mxu0 %v7232_v26 }
 0x16b   : > { %1622 = vmatprep.mubr.bf16.mxu0 %v7233_v27 }
 0x172   : > { %1623 = vmatmul.mubr.bf16.gmra.mxu0 %v7235_v28 }
 0x173   : > { %1630 = vmatprep.mubr.bf16.mxu0 %v7236_v29  ;;  %v8314_v29 = vld [vmem:[#allocation5] ss:$0 sm:$0xff] }
 0x17a   : > { %1631 = vmatmul.mubr.bf16.gmra.mxu0 %v7238_v31 }
 0x17b   : > { %1638 = vmatprep.mubr.bf16.mxu0 %v7239_v32 }
 0x182   : > { %1639 = vmatmul.mubr.bf16.gmra.mxu0 %v7241_v33 }
 0x1ca   : > { %v6222_v36 = vpop.f32.mrf.mxu0 }
 0x1cc   : > { %v6223_v37 = vpop.f32.mrf.mxu0  ;;  %v6286_v39 = vpop.f32.mrf.mxu1 }
 0x1cd   : > { %v6224_v38 = vadd.f32 %v6223_v37, %v6222_v36 }
 0x1ce   : > { %v6225_v40 = vpop.f32.mrf.mxu0  ;;  %v6287_v41 = vpop.f32.mrf.mxu1 }
 0x1cf   : > { %v1391_v34 = vadd.f32 %v6224_v38, %v8314_v29  ;;  %v6288_v35 = vadd.f32 %v6287_v41, %v6286_v39 }
 0x1d0   : > { %v6226_v42 = vpop.f32.mrf.mxu0  ;;  %v6289_v43 = vpop.f32.mrf.mxu1 }
 0x1d1   : > { %v6227_v31 = vadd.f32 %v6226_v42, %v6225_v40 }
 0x1d2   : > { %v6228_v45 = vpop.f32.mrf.mxu0  ;;  %v6290_v46 = vpop.f32.mrf.mxu1 }
 0x1d3   : > { %v1394_v37 = vadd.f32 %v6227_v31, %v8314_v29 }
 0x1d4   : > { %v6229_v47 = vpop.f32.mrf.mxu0  ;;  %v8256_v49 = vpop.f32.mrf.mxu1 }
 0x1d5   : > { %v8254_v48 = vadd.f32 %v6229_v47, %v6228_v45  ;;  %v6291_v45 = vadd.f32 %v6290_v46, %v6289_v43 }
 0x1d6   : > { %v6231_v50 = vpop.f32.mrf.mxu0  ;;  %v8258_v52 = vpop.f32.mrf.mxu1 }
 0x1d7   : > { %v1399_v38 = vadd.f32 %v8254_v48, %v8314_v29  ;;  %v6294_v39 = vadd.f32 %v8258_v52, %v8256_v49 }
 0x1d8   : > { %v6232_v51 = vpop.f32.mrf.mxu0  ;;  %v8262_v56 = vpop.f32.mrf.mxu1 }
 0x1d9   : > { %v1496_v31 = vadd.f32 %v6294_v39, %v1399_v38 }
 0x1da   : > { %v6234_v53 = vpop.f32.mrf.mxu0  ;;  %v6296_v59 = vpop.f32.mrf.mxu1 }
 0x1dc   : > { %v6235_v54 = vpop.f32.mrf.mxu0  ;;  %v8270_v63 = vpop.f32.mrf.mxu1 }
 0x1dd   : > { %v8260_v55 = vadd.f32 %v6235_v54, %v6234_v53 }
 0x1de   : > { %v8264_v57 = vpop.f32.mrf.mxu0  ;;  %v8276_v2 = vpop.f32.mrf.mxu1 }
 0x1e0   : > { %v8266_v58 = vpop.f32.mrf.mxu0  ;;  %v8280_v6 = vpop.f32.mrf.mxu1 }
 0x1e1   : > { %v6239_v48 = vadd.f32 %v8266_v58, %v8264_v57 }
 0x1e2   : > { %v6240_v60 = vpop.f32.mrf.mxu0  ;;  %v8286_v9 = vpop.f32.mrf.mxu1 }
 0x1e3   : > { %v6303_v57 = vadd.f32 %v8286_v9, %v8280_v6 }
 0x1e4   : > { %v6241_v61 = vpop.f32.mrf.mxu0  ;;  %v8290_v13 = vpop.f32.mrf.mxu1 }
 0x1e5   : > { %v8268_v62 = vadd.f32 %v6241_v61, %v6240_v60  ;;  %v1488_v60 = vadd.f32 %v6288_v35, %v1391_v34  ;;  %v6233_v61 = vadd.f32 %v6232_v51, %v6231_v50 }
 0x1e6   : > { %v8272_v0 = vpop.f32.mrf.mxu0  ;;  %v8296_v16 = vpop.f32.mrf.mxu1 }
 0x1e7   : > { %v1402_v43 = vadd.f32 %v6233_v61, %v8314_v29  ;;  %v1415_v9 = vadd.f32 %v8268_v62, %v8314_v29 }
 0x1e8   : > { %v8274_v1 = vpop.f32.mrf.mxu0  ;;  %v8300_v20 = vpop.f32.mrf.mxu1 }
 0x1ea   : > { %v6246_v3 = vpop.f32.mrf.mxu0  ;;  %v8306_v23 = vpop.f32.mrf.mxu1 }
 0x1ec   : > { %v6247_v4 = vpop.f32.mrf.mxu0  ;;  %v8310_v27 = vpop.f32.mrf.mxu1 }
 0x1ed   : > { %v8278_v5 = vadd.f32 %v6247_v4, %v6246_v3  ;;  %v1491_v4 = vadd.f32 %v6291_v45, %v1394_v37  ;;  %v6300_v37 = vadd.f32 %v8276_v2, %v8270_v63 }
 0x1ee   : > { %v8282_v7 = vpop.f32.mrf.mxu0  ;;  %v8318_v32 = vpop.f32.mrf.mxu1 }
 0x1f0   : > { %v8284_v8 = vpop.f32.mrf.mxu0  ;;  %v8322_v53 = vpop.f32.mrf.mxu1 }
 0x1f2   : > { %v6252_v10 = vpop.f32.mrf.mxu0  ;;  %v8324_v42 = vpop.f32.mrf.mxu1 }
 0x1f4   : > { %v6253_v11 = vpop.f32.mrf.mxu0 }
 0x1f5   : > { %v8288_v12 = vadd.f32 %v6253_v11, %v6252_v10 }
 0x1f6   : > { %v8292_v14 = vpop.f32.mrf.mxu0 }
 0x1f8   : > { %v8294_v15 = vpop.f32.mrf.mxu0 }
 0x1fa   : > { %v6258_v17 = vpop.f32.mrf.mxu0 }
 0x1fc   : > { %v6259_v18 = vpop.f32.mrf.mxu0 }
 0x1fd   : > { %v8298_v19 = vadd.f32 %v6259_v18, %v6258_v17  ;;  %v6297_v17 = vadd.f32 %v6296_v59, %v8262_v56  ;;  %v1407_v59 = vadd.f32 %v8260_v55, %v8314_v29  ;;  %v6245_v55 = vadd.f32 %v8274_v1, %v8272_v0 }
 0x1fe   : > { %v8302_v21 = vpop.f32.mrf.mxu0 }
 0x1ff   : > { %v1499_v49 = vadd.f32 %v6297_v17, %v1402_v43  ;;  %v6306_v43 = vadd.f32 %v8296_v16, %v8290_v13  ;;  %v7248_v17 = vld [vmem:[#allocation10 + $0x8] sm:$0xff]   ;;  %v1418_v0 = vadd.f32 %v6245_v55, %v8314_v29  ;;  %v6251_v13 = vadd.f32 %v8284_v8, %v8282_v7 }
 0x200   : > { %v8304_v22 = vpop.f32.mrf.mxu0  ;;  %v6315_v7 = vadd.f32 %v8324_v42, %v8322_v53  ;;  %v1431_v53 = vadd.f32 %v8288_v12, %v8314_v29 }
 0x202   : > { %v6264_v24 = vpop.f32.mrf.mxu0 }
 0x204   : > { %v6265_v25 = vpop.f32.mrf.mxu0 }
 0x205   : > { %v8308_v26 = vadd.f32 %v6265_v25, %v6264_v24  ;;  %v8332_v24 = vpop.f32.mrf.mxu1 }
 0x206   : > { %v8312_v28 = vpop.f32.mrf.mxu0 }
 0x208   : > { %v8316_v30 = vpop.f32.mrf.mxu0 }
 0x20a   : > { %v6350_v33 = vpop.f32.mrf.mxu0 }
 0x20c   : > { %v6351_v36 = vpop.f32.mrf.mxu0 }
 0x20d   : > { %v6352_v47 = vadd.f32 %v6351_v36, %v6350_v33  ;;  %v8337_v36 = vpop.f32.mrf.mxu1 }
 0x20e   : > { %v6353_v54 = vpop.f32.mrf.mxu0  ;;  %v6318_v42 = vadd.f32 %v8337_v36, %v8332_v24 }
 0x20f   : > { %v1585_v10 = vadd.f32 %v6352_v47, %v1488_v60  ;;  %v1410_v47 = vadd.f32 %v6239_v48, %v8314_v29 }
 0x210   : > { %v6354_v3 = vpop.f32.mrf.mxu0 }
 0x211   : > { %v6355_v40 = vadd.f32 %v6354_v3, %v6353_v54  ;;  %v1647_v50 = vmax.f32 %v1585_v10, 0.0  ;;  %v8346_v3 = vpop.f32.mrf.mxu1  ;;  %v1504_v10 = vadd.f32 %v6300_v37, %v1407_v59  ;;  %v1507_v2 = vadd.f32 %v6303_v57, %v1410_v47 }
 0x212   : > { %v6356_v11 = vpop.f32.mrf.mxu0  ;;  %v1426_v59 = vadd.f32 %v6251_v13, %v8314_v29 }
 0x213   : > { %v1588_v41 = vadd.f32 %v6355_v40, %v1491_v4 }
 0x214   : > { %v6357_v46 = vpop.f32.mrf.mxu0 }
 0x215   : > { %v1648_v51 = vmax.f32 %v1588_v41, 0.0  ;;  %v6358_v18 = vadd.f32 %v6357_v46, %v6356_v11  ;;  %v7247_v11 = vld [vmem:[#allocation10 + $0x10] sm:$0xff]   ;;  %v6320_v41 = vpop.f32.mrf.mxu1 }
 0x216   : > { %v6359_v25 = vpop.f32.mrf.mxu0 }
 0x217   : > { %v1663_v33 = vpack.c.bf16 %v1648_v51, %v1647_v50  ;;  %v1593_v52 = vadd.f32 %v6358_v18, %v1496_v31  ;;  %v6309_v50 = vadd.f32 %v8306_v23, %v8300_v20  ;;  %v6322_v31 = vpop.f32.mrf.mxu1  ;;  %v1423_v23 = vadd.f32 %v8278_v5, %v8314_v29 }
 0x218   : > { %v6360_v34 = vpop.f32.mrf.mxu0  ;;  %v6257_v5 = vadd.f32 %v8294_v15, %v8292_v14  ;;  %v6321_v14 = vadd.f32 %v6320_v41, %v8346_v3  ;;  %v1439_v3 = vadd.f32 %v8298_v19, %v8314_v29 }
 0x219   : > { %v6361_v35 = vadd.f32 %v6360_v34, %v6359_v25  ;;  %6587 = vmatprep.mubr.msk.bf16.mxu1 %vm1710_vm0, %v1663_v33  ;;  %v1649_v58 = vmax.f32 %v1593_v52, 0.0  ;;  %v1512_v33 = vadd.f32 %v6306_v43, %v1415_v9  ;;  %v1515_v48 = vadd.f32 %v6309_v50, %v1418_v0  ;;  %v6323_v52 = vpop.f32.mrf.mxu1 }
 0x21a   : > { %v6362_v56 = vpop.f32.mrf.mxu0  ;;  %v1434_v55 = vadd.f32 %v6257_v5, %v8314_v29  ;;  %v1528_v9 = vadd.f32 %v6318_v42, %v1431_v53  ;;  %v6324_v41 = vadd.f32 %v6323_v52, %v6322_v31  ;;  %v7252_v53 = vld [vmem:[#allocation14 + $0x8] sm:$0xff]   ;;  %v7254_v42 = vld [vmem:[#allocation14] sm:$0xff]  }
 0x21b   : > { %v1596_v45 = vadd.f32 %v6361_v35, %v1499_v49  ;;  %v6312_v35 = vadd.f32 %v8318_v32, %v8310_v27 }
 0x21c   : > { %v6363_v54 = vpop.f32.mrf.mxu0  ;;  %v1536_v13 = vadd.f32 %v6324_v41, %v1439_v3 }
 0x21d   : > { %v1650_v60 = vmax.f32 %v1596_v45, 0.0  ;;  %v6364_v61 = vadd.f32 %v6363_v54, %v6362_v56  ;;  %v6325_v54 = vpop.f32.mrf.mxu1 }
 0x21e   : > { %v6365_v4 = vpop.f32.mrf.mxu0 }
 0x21f   : > { %v1664_v40 = vpack.c.bf16 %v1650_v60, %v1649_v58  ;;  %v1601_v38 = vadd.f32 %v6364_v61, %v1504_v10  ;;  %v1520_v58 = vadd.f32 %v6312_v35, %v1423_v23  ;;  %v6326_v10 = vpop.f32.mrf.mxu1  ;;  %v1447_v23 = vadd.f32 %v8308_v26, %v8314_v29 }
 0x220   : > { %v6366_v63 = vpop.f32.mrf.mxu0 }
 0x221   : > { %v6367_v39 = vadd.f32 %v6366_v63, %v6365_v4  ;;  %6588 = vmatmul.mubr.msk.bf16.vlgmr.msra.gmra.mxu1 %vm1710_vm0, %v1664_v40  ;;  %v1651_v51 = vmax.f32 %v1601_v38, 0.0  ;;  %v1523_v4 = vadd.f32 %v6315_v7, %v1426_v59 }
 0x222   : > { %v6368_v6 = vpop.f32.mrf.mxu0  ;;  %6604 = vmatpush3.bf16.msra.mxu1 %v8251_v44 }
 0x223   : > { %v1604_v46 = vadd.f32 %v6367_v39, %v1507_v2  ;;  %6605 = vmatprep.subr.bf16.mxu1 %v7247_v11  ;;  %v6328_v39 = vpop.f32.mrf.mxu1 }
 0x224   : > { %v6369_v1 = vpop.f32.mrf.mxu0 }
 0x225   : > { %v1652_v18 = vmax.f32 %v1604_v46, 0.0  ;;  %v6370_v25 = vadd.f32 %v6369_v1, %v6368_v6  ;;  %v6263_v46 = vadd.f32 %v8304_v22, %v8302_v21  ;;  %v6329_v36 = vpop.f32.mrf.mxu1 }
 0x226   : > { %v6371_v44 = vpop.f32.mrf.mxu0  ;;  %6606 = vmatpush3.bf16.msra.mxu1 %v7247_v11  ;;  %v6330_v35 = vadd.f32 %v6329_v36, %v6328_v39 }
 0x227   : > { %v1665_v62 = vpack.c.bf16 %v1652_v18, %v1651_v51  ;;  %6607 = vmatprep.subr.bf16.mxu1 %v7248_v17  ;;  %v1609_v34 = vadd.f32 %v6370_v25, %v1512_v33  ;;  %v1442_v51 = vadd.f32 %v6263_v46, %v8314_v29  ;;  %v6327_v25 = vadd.f32 %v6326_v10, %v6325_v54  ;;  %v6331_v22 = vpop.f32.mrf.mxu1  ;;  %v7251_v10 = vld [vmem:[#allocation14 + $0x10] sm:$0xff]  }
 0x228   : > { %v6372_v16 = vpop.f32.mrf.mxu0 }
 0x229   : > { %v6373_v49 = vadd.f32 %v6372_v16, %v6371_v44  ;;  %6591 = vmatprep.mubr.msk.bf16.mxu1 %vm1710_vm0, %v1665_v62  ;;  %v1653_v8 = vmax.f32 %v1609_v34, 0.0  ;;  %v6332_v31 = vpop.f32.mrf.mxu1 }
 0x22a   : > { %v6374_v20 = vpop.f32.mrf.mxu0  ;;  %6608 = vmatpush3.bf16.msra.mxu1 %v7248_v17  ;;  %v1531_v17 = vadd.f32 %v6321_v14, %v1434_v55  ;;  %v6333_v7 = vadd.f32 %v6332_v31, %v6331_v22 }
 0x22b   : > { %v1612_v56 = vadd.f32 %v6373_v49, %v1515_v48  ;;  %v6269_v48 = vadd.f32 %v8316_v30, %v8312_v28  ;;  %v1539_v49 = vadd.f32 %v6327_v25, %v1442_v51 }
 0x22c   : > { %v6375_v37 = vpop.f32.mrf.mxu0 }
 0x22d   : > { %v1654_v45 = vmax.f32 %v1612_v56, 0.0  ;;  %v6376_v47 = vadd.f32 %v6375_v37, %v6374_v20  ;;  %v1450_v59 = vadd.f32 %v6269_v48, %v8314_v29  ;;  %v7249_v29 = vld [vmem:[#allocation10] sm:$0xff]  }
 0x22e   : > { %v6377_v57 = vpop.f32.mrf.mxu0  ;;  %6609 = vmatprep.subr.bf16.mxu1 %v7249_v29 }
 0x22f   : > { %v1666_v60 = vpack.c.bf16 %v1654_v45, %v1653_v8  ;;  %v1617_v27 = vadd.f32 %v6376_v47, %v1520_v58  ;;  %v1544_v47 = vadd.f32 %v6330_v35, %v1447_v23  ;;  %v1547_v58 = vadd.f32 %v6333_v7, %v1450_v59  ;;  %6610 = vmatpush3.bf16.msra.mxu1 %v7249_v29  ;;  %v7255_v29 = vld [vmem:[#allocation16 + $0x10] sm:$0xff]  }
 0x230   : > { %v6378_v61 = vpop.f32.mrf.mxu0 }
 0x231   : > { %v6379_v32 = vadd.f32 %v6378_v61, %v6377_v57  ;;  %6592 = vmatmul.mubr.msk.bf16.gmra.mxu1 %vm1710_vm0, %v1666_v60  ;;  %v1655_v15 = vmax.f32 %v1617_v27, 0.0 }
 0x232   : > { %v6380_v40 = vpop.f32.mrf.mxu0 }
 0x233   : > { %v1620_v11 = vadd.f32 %v6379_v32, %v1523_v4  ;;  %v7250_v32 = vld [vmem:[#allocation14 + $0x18] sm:$0xff]  }
 0x234   : > { %v6381_v63 = vpop.f32.mrf.mxu0  ;;  %6627 = vmatprep.subr.bf16.mxu0 %v7250_v32 }
 0x235   : > { %v1656_v2 = vmax.f32 %v1620_v11, 0.0  ;;  %v6382_v38 = vadd.f32 %v6381_v63, %v6380_v40  ;;  %v7720_v40 = vmov 0.0   ;;  %6628 = vmatpush3.bf16.msra.mxu0 %v7250_v32  ;;  %v6078_v63 = vld [vmem:[#allocation8] ss:$0 sm:$0xff]  ;;  %v7256_v32 = vld [vmem:[#allocation16 + $0x8] sm:$0xff]  }
 0x236   : > { %v6383_v6 = vpop.f32.mrf.mxu0  ;;  %6651 = vmatprep.subr.bf16.mxu1 %v7720_v40  ;;  %6629 = vmatprep.subr.bf16.mxu0 %v7251_v10 }
 0x237   : > { %v1667_v43 = vpack.c.bf16 %v1656_v2, %v1655_v15  ;;  %v1625_v0 = vadd.f32 %v6382_v38, %v1528_v9 }
 0x238   : > { %v6384_v12 = vpop.f32.mrf.mxu0 }
 0x239   : > { %v6385_v24 = vadd.f32 %v6384_v12, %v6383_v6  ;;  %6595 = vmatprep.mubr.msk.bf16.mxu1 %vm1710_vm0, %v1667_v43  ;;  %v1657_v44 = vmax.f32 %v1625_v0, 0.0  ;;  %6630 = vmatpush3.bf16.msra.mxu0 %v7251_v10  ;;  %v7253_v0 = vld [vmem:[#allocation16 + $0x18] sm:$0xff]   ;;  %v7257_v10 = vld [vmem:[#allocation16] sm:$0xff]  }
 0x23a   : > { %v6386_v1 = vpop.f32.mrf.mxu0  ;;  %6631 = vmatprep.subr.bf16.mxu0 %v7252_v53 }
 0x23b   : > { %v1628_v50 = vadd.f32 %v6385_v24, %v1531_v17 }
 0x23c   : > { %v6387_v18 = vpop.f32.mrf.mxu0 }
 0x23d   : > { %v1658_v33 = vmax.f32 %v1628_v50, 0.0  ;;  %v6388_v21 = vadd.f32 %v6387_v18, %v6386_v1  ;;  %6632 = vmatpush3.bf16.msra.mxu0 %v7252_v53  ;;  %v2200_v53 = vld [vmem:[#allocation13] sm:$0xf] }
 0x23e   : > { %v6389_v62 = vpop.f32.mrf.mxu0  ;;  %6633 = vmatprep.subr.bf16.mxu0 %v7254_v42 }
 0x23f   : > { %v1668_v16 = vpack.c.bf16 %v1658_v33, %v1657_v44  ;;  %v1633_v20 = vadd.f32 %v6388_v21, %v1536_v13 }
 0x240   : > { %v6390_v34 = vpop.f32.mrf.mxu0 }
 0x241   : > { %v6391_v19 = vadd.f32 %v6390_v34, %v6389_v62  ;;  %6596 = vmatmul.mubr.msk.bf16.gmra.mxu1 %vm1710_vm0, %v1668_v16  ;;  %v1659_v8 = vmax.f32 %v1633_v20, 0.0  ;;  %6634 = vmatpush3.bf16.msra.mxu0 %v7254_v42  ;;  %v7258_v42 = vld [vmem:[%s9402_s15 + $0x38] sm:$0xff]  }
 0x242   : > { %v6392_v52 = vpop.f32.mrf.mxu0  ;;  %6663 = vmatprep.subr.bf16.mxu0 %v7258_v42 }
 0x243   : > { %v1636_v56 = vadd.f32 %v6391_v19, %v1539_v49 }
 0x244   : > { %v6393_v37 = vpop.f32.mrf.mxu0 }
 0x245   : > { %v1660_v45 = vmax.f32 %v1636_v56, 0.0  ;;  %v6394_v28 = vadd.f32 %v6393_v37, %v6392_v52 }
 0x246   : > { %v6395_v30 = vpop.f32.mrf.mxu0 }
 0x247   : > { %v1669_v54 = vpack.c.bf16 %v1660_v45, %v1659_v8  ;;  %v1641_v60 = vadd.f32 %v6394_v28, %v1544_v47 }
 0x248   : > { %v6396_v57 = vpop.f32.mrf.mxu0 }
 0x249   : > { %v6397_v5 = vadd.f32 %v6396_v57, %v6395_v30  ;;  %6599 = vmatprep.mubr.msk.bf16.mxu1 %vm1710_vm0, %v1669_v54  ;;  %v1661_v26 = vmax.f32 %v1641_v60, 0.0 }
 0x24b   : > { %v1644_v61 = vadd.f32 %v6397_v5, %v1547_v58 }
 0x24d   : > { %v1662_v4 = vmax.f32 %v1644_v61, 0.0 }
 0x24f   : > { %v1670_v27 = vpack.c.bf16 %v1662_v4, %v1661_v26 }
 0x251   : > { %6600 = vmatmul.mubr.msk.bf16.gmra.mxu1 %vm1710_vm0, %v1670_v27 }
 0x2e1   : > { %v6589_v11 = vpop.f32.mrf.mxu1 }
 0x2e2   : > { %v1778_v38 = vadd.f32 %v6589_v11, %v6078_v63 }
 0x2e3   : > { %v1769_v55 = vpop.f32.mrf.mxu1 }
 0x2e4   : > { %v1770_v15 = vadd.f32 %v6078_v63, %v1769_v55  ;;  %v1834_v12 = vmax.f32 %v1778_v38, 0.0 }
 0x2e5   : > { %v6590_v14 = vpop.f32.mrf.mxu1 }
 0x2e6   : > { %v1781_v2 = vadd.f32 %v6590_v14, %v6078_v63  ;;  %v1832_v43 = vmax.f32 %v1770_v15, 0.0 }
 0x2e7   : > { %v1772_v39 = vpop.f32.mrf.mxu1 }
 0x2e8   : > { %v1773_v6 = vadd.f32 %v6078_v63, %v1772_v39  ;;  %v1835_v9 = vmax.f32 %v1781_v2, 0.0 }
 0x2ea   : > { %v1833_v46 = vmax.f32 %v1773_v6, 0.0  ;;  %v1849_v24 = vpack.c.bf16 %v1835_v9, %v1834_v12 }
 0x2ec   : > { %v1848_v17 = vpack.c.bf16 %v1833_v46, %v1832_v43 }
 0x2ee   : > { %6611 = vmatprep.mubr.msk.bf16.mxu1 %vm1710_vm0, %v1848_v17 }
 0x2ef   : > { %6612 = vmatmul.mubr.msk.bf16.vlgmr.msra.gmra.mxu1 %vm1710_vm0, %v1849_v24 }
 0x2f0   : > { %6652 = vmatpush3.bf16.msra.mxu1 %v7253_v0  ;;  %v7259_v0 = vld [vmem:[%s9402_s15 + $0x30] sm:$0xff]  }
 0x2f1   : > { %v6593_v36 = vpop.f32.mrf.mxu1  ;;  %6653 = vmatprep.subr.bf16.mxu1 %v7720_v40 }
 0x2f2   : > { %v1794_v51 = vadd.f32 %v6593_v36, %v6078_v63  ;;  %v7260_v36 = vld [vmem:[%s9402_s15 + $0x28] sm:$0xff]  }
 0x2f3   : > { %v1785_v1 = vpop.f32.mrf.mxu1 }
 0x2f4   : > { %v1786_v41 = vadd.f32 %v6078_v63, %v1785_v1  ;;  %v1838_v22 = vmax.f32 %v1794_v51, 0.0  ;;  %6654 = vmatpush3.bf16.msra.mxu1 %v7255_v29  ;;  %v7261_v29 = vld [vmem:[%s9402_s15 + $0x20] sm:$0xff]  }
 0x2f5   : > { %v6594_v3 = vpop.f32.mrf.mxu1  ;;  %6655 = vmatprep.subr.bf16.mxu1 %v7720_v40 }
 0x2f6   : > { %v1797_v50 = vadd.f32 %v6594_v3, %v6078_v63  ;;  %v1836_v33 = vmax.f32 %v1786_v41, 0.0 }
 0x2f7   : > { %v1788_v18 = vpop.f32.mrf.mxu1 }
 0x2f8   : > { %v1789_v25 = vadd.f32 %v6078_v63, %v1788_v18  ;;  %v1839_v44 = vmax.f32 %v1797_v50, 0.0  ;;  %6656 = vmatpush3.bf16.msra.mxu1 %v7256_v32  ;;  %v7262_v32 = vld [vmem:[%s9402_s15 + $0x18] sm:$0xff]  }
 0x2f9   : > { %6657 = vmatprep.subr.bf16.mxu1 %v7720_v40 }
 0x2fa   : > { %v1837_v21 = vmax.f32 %v1789_v25, 0.0  ;;  %v1851_v13 = vpack.c.bf16 %v1839_v44, %v1838_v22 }
 0x2fc   : > { %v1850_v62 = vpack.c.bf16 %v1837_v21, %v1836_v33  ;;  %6658 = vmatpush3.bf16.msra.mxu1 %v7257_v10 }
 0x2fe   : > { %6615 = vmatprep.mubr.msk.bf16.mxu1 %vm1710_vm0, %v1850_v62 }
 0x2ff   : > { %6616 = vmatmul.mubr.msk.bf16.gmra.mxu1 %vm1710_vm0, %v1851_v13 }
 0x301   : > { %v6597_v16 = vpop.f32.mrf.mxu1 }
 0x302   : > { %v1810_v19 = vadd.f32 %v6597_v16, %v6078_v63 }
 0x303   : > { %v1801_v48 = vpop.f32.mrf.mxu1 }
 0x304   : > { %v1802_v49 = vadd.f32 %v6078_v63, %v1801_v48  ;;  %v1842_v59 = vmax.f32 %v1810_v19, 0.0 }
 0x305   : > { %v6598_v34 = vpop.f32.mrf.mxu1 }
 0x306   : > { %v1813_v20 = vadd.f32 %v6598_v34, %v6078_v63  ;;  %v1840_v35 = vmax.f32 %v1802_v49, 0.0 }
 0x307   : > { %v1804_v31 = vpop.f32.mrf.mxu1 }
 0x308   : > { %v1805_v52 = vadd.f32 %v6078_v63, %v1804_v31  ;;  %v1843_v23 = vmax.f32 %v1813_v20, 0.0 }
 0x30a   : > { %v1841_v56 = vmax.f32 %v1805_v52, 0.0  ;;  %v1853_v7 = vpack.c.bf16 %v1843_v23, %v1842_v59 }
 0x30c   : > { %v1852_v37 = vpack.c.bf16 %v1841_v56, %v1840_v35 }
 0x30e   : > { %6619 = vmatprep.mubr.msk.bf16.mxu1 %vm1710_vm0, %v1852_v37 }
 0x30f   : > { %6620 = vmatmul.mubr.msk.bf16.gmra.mxu1 %vm1710_vm0, %v1853_v7 }
 0x311   : > { %v6601_v8 = vpop.f32.mrf.mxu1 }
 0x312   : > { %v1826_v54 = vadd.f32 %v6601_v8, %v6078_v63 }
 0x313   : > { %v1817_v45 = vpop.f32.mrf.mxu1 }
 0x314   : > { %v1818_v30 = vadd.f32 %v6078_v63, %v1817_v45  ;;  %v1846_v26 = vmax.f32 %v1826_v54, 0.0 }
 0x315   : > { %v6602_v28 = vpop.f32.mrf.mxu1 }
 0x316   : > { %v1829_v47 = vadd.f32 %v6602_v28, %v6078_v63  ;;  %v1844_v5 = vmax.f32 %v1818_v30, 0.0 }
 0x317   : > { %v1820_v57 = vpop.f32.mrf.mxu1 }
 0x318   : > { %v1821_v58 = vadd.f32 %v6078_v63, %v1820_v57  ;;  %v1847_v60 = vmax.f32 %v1829_v47, 0.0  ;;  %v6091_v63 = vld [vmem:[#allocation11] ss:$0 sm:$0xff] }
 0x31a   : > { %v1845_v61 = vmax.f32 %v1821_v58, 0.0  ;;  %v1855_v27 = vpack.c.bf16 %v1847_v60, %v1846_v26 }
 0x31c   : > { %v1854_v4 = vpack.c.bf16 %v1845_v61, %v1844_v5 }
 0x31e   : > { %6623 = vmatprep.mubr.msk.bf16.mxu1 %vm1710_vm0, %v1854_v4 }
 0x31f   : > { %6624 = vmatmul.mubr.msk.bf16.gmra.mxu1 %vm1710_vm0, %v1855_v27 }
 0x320   : > { %6659 = vmatprep.mubr.msk.bf16.mxu1 %vm7721_vm1, %v7720_v40 }
 0x327   : > { %6660 = vmatmul.mubr.msk.bf16.vlgmr.msra.gmra.mxu1 %vm1710_vm0, %v2200_v53  ;;  %v7263_v53 = vld [vmem:[%s9402_s15 + $0x10] sm:$0xff]  }
 0x3af   : > { %v6613_v11 = vpop.f32.mrf.mxu1 }
 0x3b0   : > { %v1962_v38 = vadd.f32 %v6613_v11, %v6091_v63 }
 0x3b1   : > { %v1953_v55 = vpop.f32.mrf.mxu1 }
 0x3b2   : > { %v1954_v15 = vadd.f32 %v6091_v63, %v1953_v55  ;;  %v2018_v46 = vmax.f32 %v1962_v38, 0.0  ;;  %v7264_v55 = vld [vmem:[%s9402_s15 + $0x8] sm:$0xff]   ;;  %v2296_v38 = vlaneseq }
 0x3b3   : > { %v6614_v14 = vpop.f32.mrf.mxu1 }
 0x3b4   : > { %v1965_v2 = vadd.f32 %v6614_v14, %v6091_v63  ;;  %v2016_v43 = vmax.f32 %v1954_v15, 0.0  ;;  %v7265_v14 = vld [vmem:[%s9402_s15] sm:$0xff]   ;;  %v7722_v15 = vmov 1966171168  }
 0x3b5   : > { %v1956_v39 = vpop.f32.mrf.mxu1 }
 0x3b6   : > { %v1957_v6 = vadd.f32 %v6091_v63, %v1956_v39  ;;  %v2019_v9 = vmax.f32 %v1965_v2, 0.0  ;;  %v2294_v2 = vunpack.c.l.s4 %v7722_v15 }
 0x3b8   : > { %v2017_v40 = vmax.f32 %v1957_v6, 0.0  ;;  %v2033_v17 = vpack.c.bf16 %v2019_v9, %v2018_v46  ;;  %v2295_v6 = vunpack.c.0.s8 %v2294_v2  ;;  %v2297_v9 = vshrl.u32 %v2296_v38, 7 }
 0x3ba   : > { %v2032_v12 = vpack.c.bf16 %v2017_v40, %v2016_v43  ;;  %v8442_v43 = vld [vmem:[#allocation17] ss:$0 sm:$0xff] }
 0x3bc   : > { %6635 = vmatprep.mubr.msk.bf16.mxu0 %vm1710_vm0, %v2032_v12  ;;  %v8445_v12 = vsub.s32 %v2295_v6, %v2297_v9 }
 0x3bd   : > { %6636 = vmatmul.mubr.msk.bf16.vlgmr.msra.gmra.mxu0 %vm1710_vm0, %v2033_v17 }
 0x3be   : > { %6664 = vmatpush3.bf16.msra.mxu0 %v7258_v42 }
 0x3bf   : > { %v6617_v24 = vpop.f32.mrf.mxu1  ;;  %6665 = vmatprep.subr.bf16.mxu0 %v7259_v0 }
 0x3c0   : > { %v1978_v51 = vadd.f32 %v6617_v24, %v6091_v63 }
 0x3c1   : > { %v1969_v1 = vpop.f32.mrf.mxu1 }
 0x3c2   : > { %6666 = vmatpush3.bf16.msra.mxu0 %v7259_v0  ;;  %v1970_v41 = vadd.f32 %v6091_v63, %v1969_v1  ;;  %v2022_v22 = vmax.f32 %v1978_v51, 0.0 }
 0x3c3   : > { %v6618_v3 = vpop.f32.mrf.mxu1  ;;  %6667 = vmatprep.subr.bf16.mxu0 %v7260_v36 }
 0x3c4   : > { %v1981_v50 = vadd.f32 %v6618_v3, %v6091_v63  ;;  %v2020_v33 = vmax.f32 %v1970_v41, 0.0 }
 0x3c5   : > { %v1972_v18 = vpop.f32.mrf.mxu1 }
 0x3c6   : > { %v1973_v25 = vadd.f32 %v6091_v63, %v1972_v18  ;;  %6668 = vmatpush3.bf16.msra.mxu0 %v7260_v36  ;;  %v2023_v44 = vmax.f32 %v1981_v50, 0.0  ;;  %v8449_v36 = vsub.s32 0, %v2297_v9 }
 0x3c7   : > { %6669 = vmatprep.subr.bf16.mxu0 %v7261_v29 }
 0x3c8   : > { %v2021_v21 = vmax.f32 %v1973_v25, 0.0  ;;  %v2035_v13 = vpack.c.bf16 %v2023_v44, %v2022_v22 }
 0x3ca   : > { %v2034_v62 = vpack.c.bf16 %v2021_v21, %v2020_v33  ;;  %6670 = vmatpush3.bf16.msra.mxu0 %v7261_v29 }
 0x3cb   : > { %6671 = vmatprep.subr.bf16.mxu0 %v7262_v32 }
 0x3cc   : > { %6639 = vmatprep.mubr.msk.bf16.mxu0 %vm1710_vm0, %v2034_v62 }
 0x3cd   : > { %6640 = vmatmul.mubr.msk.bf16.gmra.mxu0 %vm1710_vm0, %v2035_v13 }
 0x3ce   : > { %6672 = vmatpush3.bf16.msra.mxu0 %v7262_v32 }
 0x3cf   : > { %v6621_v16 = vpop.f32.mrf.mxu1  ;;  %6673 = vmatprep.subr.bf16.mxu0 %v7263_v53 }
 0x3d0   : > { %v1994_v19 = vadd.f32 %v6621_v16, %v6091_v63 }
 0x3d1   : > { %v1985_v48 = vpop.f32.mrf.mxu1 }
 0x3d2   : > { %v1986_v49 = vadd.f32 %v6091_v63, %v1985_v48  ;;  %v2026_v59 = vmax.f32 %v1994_v19, 0.0  ;;  %6674 = vmatpush3.bf16.msra.mxu0 %v7263_v53 }
 0x3d3   : > { %v6622_v34 = vpop.f32.mrf.mxu1  ;;  %6675 = vmatprep.subr.bf16.mxu0 %v7264_v55 }
 0x3d4   : > { %v1997_v20 = vadd.f32 %v6622_v34, %v6091_v63  ;;  %v2024_v35 = vmax.f32 %v1986_v49, 0.0 }
 0x3d5   : > { %v1988_v31 = vpop.f32.mrf.mxu1 }
 0x3d6   : > { %v1989_v52 = vadd.f32 %v6091_v63, %v1988_v31  ;;  %v2027_v23 = vmax.f32 %v1997_v20, 0.0  ;;  %6676 = vmatpush3.bf16.msra.mxu0 %v7264_v55 }
 0x3d7   : > { %6677 = vmatprep.subr.bf16.mxu0 %v7265_v14 }
 0x3d8   : > { %v2025_v56 = vmax.f32 %v1989_v52, 0.0  ;;  %v2037_v7 = vpack.c.bf16 %v2027_v23, %v2026_v59 }
 0x3da   : > { %v2036_v37 = vpack.c.bf16 %v2025_v56, %v2024_v35  ;;  %6678 = vmatpush3.bf16.msra.mxu0 %v7265_v14 }
 0x3dc   : > { %6643 = vmatprep.mubr.msk.bf16.mxu0 %vm1710_vm0, %v2036_v37 }
 0x3dd   : > { %6644 = vmatmul.mubr.msk.bf16.gmra.mxu0 %vm1710_vm0, %v2037_v7 }
 0x3df   : > { %v6625_v8 = vpop.f32.mrf.mxu1 }
 0x3e0   : > { %v2010_v54 = vadd.f32 %v6625_v8, %v6091_v63 }
 0x3e1   : > { %v2001_v45 = vpop.f32.mrf.mxu1 }
 0x3e2   : > { %v2002_v30 = vadd.f32 %v6091_v63, %v2001_v45  ;;  %v2030_v26 = vmax.f32 %v2010_v54, 0.0 }
 0x3e3   : > { %v6626_v28 = vpop.f32.mrf.mxu1 }
 0x3e4   : > { %v2013_v47 = vadd.f32 %v6626_v28, %v6091_v63  ;;  %v2028_v5 = vmax.f32 %v2002_v30, 0.0 }
 0x3e5   : > { %v2004_v57 = vpop.f32.mrf.mxu1 }
 0x3e6   : > { %v2005_v58 = vadd.f32 %v6091_v63, %v2004_v57  ;;  %v2031_v60 = vmax.f32 %v2013_v47, 0.0 }
 0x3e7   : > { %v8429_v10 = vpop.f32.mrf.mxu1 }
 0x3e8   : > { %v2029_v61 = vmax.f32 %v2005_v58, 0.0  ;;  %v2039_v27 = vpack.c.bf16 %v2031_v60, %v2030_v26 }
 0x3e9   : > { %v6661_v42 = vpop.f32.mrf.mxu1 }
 0x3ea   : > { %v2038_v4 = vpack.c.bf16 %v2029_v61, %v2028_v5 }
 0x3eb   : > { %v2273_v11 = vpop.f32.mrf.mxu1 }
 0x3ec   : > { %6647 = vmatprep.mubr.msk.bf16.mxu0 %vm1710_vm0, %v2038_v4 }
 0x3ed   : > { %6648 = vmatmul.mubr.msk.bf16.gmra.mxu0 %vm1710_vm0, %v2039_v27  ;;  %v6662_v63 = vpop.f32.mrf.mxu1 }
 0x47d   : > { %v8440_v39 = vpop.f32.mrf.mxu0 }
 0x47f   : > { %v2137_v40 = vpop.f32.mrf.mxu0 }
 0x480   : > { %v2138_v46 = vadd.f32 %v8442_v43, %v2137_v40 }
 0x481   : > { %v8453_v50 = vpop.f32.mrf.mxu0 }
 0x482   : > { %v2299_v17 = vrot.slane %v2138_v46, %v8445_v12  ;;  %v2292_v3 = vcombine.high %v2138_v46, %v2138_v46  ;;  %v2146_v46 = vadd.f32 %v8440_v39, %v8442_v43 }
 0x483   : > { %v2140_v21 = vpop.f32.mrf.mxu0 }
 0x484   : > { %v2307_v0 = vcombine.high %v2299_v17, %v2299_v17  ;;  %v2315_v1 = vrot.slane %v2299_v17, %v8445_v12  ;;  %v2306_v25 = vrot.slane %v2292_v3, %v8445_v12  ;;  %v2141_v48 = vadd.f32 %v8442_v43, %v2140_v21 }
 0x486   : > { %v2329_v24 = vrot.slane %v2307_v0, %v8445_v12  ;;  %v3079_v51 = vrot.slane %v2315_v1, %v8449_v36  ;;  %v2337_v18 = vcombine.high %v2315_v1, %v2315_v1  ;;  %v2308_v13 = vcombine.high %v2306_v25, %v2306_v25 }
 0x487   : > { %v2322_v20 = vrot.slane %v2306_v25, %v8445_v12  ;;  %v2348_v52 = vrot.slane %v2141_v48, %v8445_v12  ;;  %v2341_v55 = vcombine.high %v2141_v48, %v2141_v48  ;;  %v2397_v1 = vrot.slane %v2146_v46, %v8445_v12 }
 0x488   : > { %v3083_v41 = vrot.slane %v2329_v24, %v8449_v36  ;;  %v2339_v44 = vcombine.high %v2329_v24, %v2329_v24  ;;  %v3716_v22 = vadd.f32 %v3079_v51, %v8429_v10  ;;  %v3087_v62 = vrot.slane %v2337_v18, %v8449_v36 }
 0x489   : > { %v2336_v31 = vrot.slane %v2308_v13, %v8445_v12  ;;  %v3095_v37 = vrot.slane %v2322_v20, %v8449_v36  ;;  %v2356_v7 = vcombine.high %v2348_v52, %v2348_v52  ;;  %v2364_v45 = vrot.slane %v2348_v52, %v8445_v12 }
 0x48a   : > { %v3717_v33 = vadd.f32 %v3083_v41, %v8429_v10  ;;  %v3091_v16 = vrot.slane %v2339_v44, %v8449_v36  ;;  %v3844_v49 = vmax.f32 %v3716_v22, 0.0  ;;  %v3718_v19 = vadd.f32 %v3087_v62, %v8429_v10 }
 0x48b   : > { %v3099_v8 = vrot.slane %v2336_v31, %v8449_v36  ;;  %v2338_v30 = vcombine.high %v2322_v20, %v2322_v20  ;;  %v3720_v47 = vadd.f32 %v3095_v37, %v8429_v10  ;;  %v2378_v54 = vrot.slane %v2356_v7, %v8445_v12 }
 0x48c   : > { %v3845_v34 = vmax.f32 %v3717_v33, 0.0  ;;  %v3719_v35 = vadd.f32 %v3091_v16, %v8429_v10  ;;  %v3846_v59 = vmax.f32 %v3718_v19, 0.0  ;;  %v2340_v58 = vcombine.high %v2336_v31, %v2336_v31 }
 0x48d   : > { %v3721_v57 = vadd.f32 %v3099_v8, %v8429_v10  ;;  %v3111_v60 = vrot.slane %v2364_v45, %v8449_v36  ;;  %v3848_v5 = vmax.f32 %v3720_v47, 0.0  ;;  %v3103_v26 = vrot.slane %v2338_v30, %v8449_v36 }
 0x48e   : > { %v3972_v23 = vpack.c.bf16 %v3845_v34, %v3844_v49  ;;  %v3847_v56 = vmax.f32 %v3719_v35, 0.0  ;;  %v3107_v27 = vrot.slane %v2340_v58, %v8449_v36  ;;  %v3115_v32 = vrot.slane %v2378_v54, %v8449_v36 }
 0x48f   : > { %v3849_v61 = vmax.f32 %v3721_v57, 0.0  ;;  %v3722_v29 = vadd.f32 %v3103_v26, %v8429_v10  ;;  %v3724_v53 = vadd.f32 %v3111_v60, %v8429_v10  ;;  %v2386_v6 = vcombine.high %v2364_v45, %v2364_v45 }
 0x490   : > { %6679 = vmatprep.mubr.bf16.mxu0 %v3972_v23  ;;  %v3973_v28 = vpack.c.bf16 %v3847_v56, %v3846_v59  ;;  %v3723_v42 = vadd.f32 %v3107_v27, %v8429_v10  ;;  %v3725_v11 = vadd.f32 %v3115_v32, %v8429_v10  ;;  %v2355_v40 = vrot.slane %v2341_v55, %v8445_v12 }
 0x491   : > { %v3974_v4 = vpack.c.bf16 %v3849_v61, %v3848_v5  ;;  %v3850_v63 = vmax.f32 %v3722_v29, 0.0  ;;  %v3852_v2 = vmax.f32 %v3724_v53, 0.0  ;;  %v2388_v17 = vcombine.high %v2378_v54, %v2378_v54 }
 0x492   : > { %6680 = vmatmul.mubr.bf16.vlgmr.msra.gmra.mxu0 %v3973_v28  ;;  %v3851_v14 = vmax.f32 %v3723_v42, 0.0  ;;  %v3853_v15 = vmax.f32 %v3725_v11, 0.0  ;;  %v3119_v0 = vrot.slane %v2386_v6, %v8449_v36  ;;  %v2357_v24 = vcombine.high %v2355_v40, %v2355_v40  ;;  %v8510_v42 = vpop.f32.mrf.mxu0 }
 0x493   : > { %6683 = vmatprep.mubr.bf16.mxu0 %v3974_v4  ;;  %v2371_v3 = vrot.slane %v2355_v40, %v8445_v12  ;;  %v3123_v41 = vrot.slane %v2388_v17, %v8449_v36  ;;  %v2405_v25 = vcombine.high %v2397_v1, %v2397_v1  ;;  %v2413_v39 = vrot.slane %v2397_v1, %v8445_v12 }
 0x494   : > { %v3975_v38 = vpack.c.bf16 %v3851_v14, %v3850_v63  ;;  %v3976_v9 = vpack.c.bf16 %v3853_v15, %v3852_v2  ;;  %v3726_v51 = vadd.f32 %v3119_v0, %v8429_v10  ;;  %v2385_v18 = vrot.slane %v2357_v24, %v8445_v12  ;;  %v2153_v2 = vpop.f32.mrf.mxu0 }
 0x495   : > { %v3727_v44 = vadd.f32 %v3123_v41, %v8429_v10  ;;  %v3127_v22 = vrot.slane %v2371_v3, %v8449_v36  ;;  %v2387_v62 = vcombine.high %v2371_v3, %v2371_v3  ;;  %v2427_v16 = vrot.slane %v2405_v25, %v8445_v12 }
 0x496   : > { %v3854_v33 = vmax.f32 %v3726_v51, 0.0  ;;  %v3131_v13 = vrot.slane %v2385_v18, %v8449_v36  ;;  %v3143_v49 = vrot.slane %v2413_v39, %v8449_v36  ;;  %v2389_v19 = vcombine.high %v2385_v18, %v2385_v18 }
 0x497   : > { %v3855_v21 = vmax.f32 %v3727_v44, 0.0  ;;  %v3728_v34 = vadd.f32 %v3127_v22, %v8429_v10  ;;  %v3135_v23 = vrot.slane %v2387_v62, %v8449_v36  ;;  %v3147_v56 = vrot.slane %v2427_v16, %v8449_v36 }
 0x498   : > { %v3729_v20 = vadd.f32 %v3131_v13, %v8429_v10  ;;  %v3139_v35 = vrot.slane %v2389_v19, %v8449_v36  ;;  %v3732_v7 = vadd.f32 %v3143_v49, %v8429_v10  ;;  %v2390_v28 = vcombine.high %v2146_v46, %v2146_v46 }
 0x499   : > { %v3977_v48 = vpack.c.bf16 %v3855_v21, %v3854_v33  ;;  %v3856_v31 = vmax.f32 %v3728_v34, 0.0  ;;  %v3730_v37 = vadd.f32 %v3135_v23, %v8429_v10  ;;  %v3733_v45 = vadd.f32 %v3147_v56, %v8429_v10 }
 0x49a   : > { %6684 = vmatmul.mubr.bf16.gmra.mxu0 %v3975_v38  ;;  %v3857_v52 = vmax.f32 %v3729_v20, 0.0  ;;  %v3731_v8 = vadd.f32 %v3139_v35, %v8429_v10  ;;  %v3860_v57 = vmax.f32 %v3732_v7, 0.0  ;;  %v2149_v58 = vadd.f32 %v8453_v50, %v8442_v43  ;;  %v8538_v7 = vpop.f32.mrf.mxu0 }
 0x49b   : > { %6687 = vmatprep.mubr.bf16.mxu0 %v3976_v9  ;;  %v3858_v30 = vmax.f32 %v3730_v37, 0.0  ;;  %v3861_v54 = vmax.f32 %v3733_v45, 0.0  ;;  %v2435_v5 = vcombine.high %v2413_v39, %v2413_v39  ;;  %v2404_v26 = vrot.slane %v2390_v28, %v8445_v12 }
 0x49c   : > { %v3978_v59 = vpack.c.bf16 %v3857_v52, %v3856_v31  ;;  %v3859_v47 = vmax.f32 %v3731_v8, 0.0  ;;  %v2439_v4 = vcombine.high %v2149_v58, %v2149_v58  ;;  %v2437_v27 = vcombine.high %v2427_v16, %v2427_v16 }
 0x49d   : > { %v3980_v61 = vpack.c.bf16 %v3861_v54, %v3860_v57  ;;  %v2446_v29 = vrot.slane %v2149_v58, %v8445_v12  ;;  %v3151_v32 = vrot.slane %v2435_v5, %v8449_v36  ;;  %v2406_v53 = vcombine.high %v2404_v26, %v2404_v26 }
 0x49e   : > { %v3979_v60 = vpack.c.bf16 %v3859_v47, %v3858_v30  ;;  %v2453_v11 = vrot.slane %v2439_v4, %v8445_v12  ;;  %v2420_v50 = vrot.slane %v2404_v26, %v8445_v12  ;;  %v3155_v63 = vrot.slane %v2437_v27, %v8449_v36 }
 0x49f   : > { %v2454_v55 = vcombine.high %v2446_v29, %v2446_v29  ;;  %v3734_v14 = vadd.f32 %v3151_v32, %v8429_v10  ;;  %v2434_v15 = vrot.slane %v2406_v53, %v8445_v12  ;;  %v2462_v9 = vrot.slane %v2446_v29, %v8445_v12  ;;  %v2156_v29 = vpop.f32.mrf.mxu0 }
 0x4a0   : > { %v3735_v38 = vadd.f32 %v3155_v63, %v8429_v10  ;;  %v2455_v6 = vcombine.high %v2453_v11, %v2453_v11  ;;  %v3159_v0 = vrot.slane %v2420_v50, %v8449_v36  ;;  %v2436_v24 = vcombine.high %v2420_v50, %v2420_v50 }
 0x4a1   : > { %v2476_v40 = vrot.slane %v2454_v55, %v8445_v12  ;;  %v3862_v46 = vmax.f32 %v3734_v14, 0.0  ;;  %v2154_v1 = vadd.f32 %v8442_v43, %v2153_v2  ;;  %v3163_v3 = vrot.slane %v2434_v15, %v8449_v36 }
 0x4a2   : > { %6688 = vmatmul.mubr.bf16.gmra.mxu0 %v3977_v48  ;;  %v3863_v17 = vmax.f32 %v3735_v38, 0.0  ;;  %v3736_v51 = vadd.f32 %v3159_v0, %v8429_v10  ;;  %v3175_v18 = vrot.slane %v2462_v9, %v8449_v36  ;;  %v2483_v44 = vrot.slane %v2455_v6, %v8445_v12 }
 0x4a3   : > { %6691 = vmatprep.mubr.bf16.mxu0 %v3978_v59  ;;  %v3737_v25 = vadd.f32 %v3163_v3, %v8429_v10  ;;  %v2486_v39 = vcombine.high %v2476_v40, %v2476_v40  ;;  %v2438_v33 = vcombine.high %v2434_v15, %v2434_v15  ;;  %v2495_v21 = vrot.slane %v2154_v1, %v8445_v12 }
 0x4a4   : > { %v3981_v41 = vpack.c.bf16 %v3863_v17, %v3862_v46  ;;  %v3864_v22 = vmax.f32 %v3736_v51, 0.0  ;;  %v3167_v13 = vrot.slane %v2436_v24, %v8449_v36  ;;  %v2484_v16 = vcombine.high %v2462_v9, %v2462_v9 }
 0x4a5   : > { %v3865_v62 = vmax.f32 %v3737_v25, 0.0  ;;  %v3171_v48 = vrot.slane %v2438_v33, %v8449_v36  ;;  %v3179_v34 = vrot.slane %v2476_v40, %v8449_v36  ;;  %v2469_v49 = vrot.slane %v2453_v11, %v8445_v12 }
 0x4a6   : > { %v3738_v19 = vadd.f32 %v3167_v13, %v8429_v10  ;;  %v3740_v31 = vadd.f32 %v3175_v18, %v8429_v10  ;;  %v3187_v35 = vrot.slane %v2486_v39, %v8449_v36  ;;  %v2488_v56 = vcombine.high %v2154_v1, %v2154_v1 }
 0x4a7   : > { %v3982_v20 = vpack.c.bf16 %v3865_v62, %v3864_v22  ;;  %v3739_v52 = vadd.f32 %v3171_v48, %v8429_v10  ;;  %v3741_v23 = vadd.f32 %v3179_v34, %v8429_v10  ;;  %v2503_v59 = vcombine.high %v2495_v21, %v2495_v21 }
 0x4a8   : > { %v3195_v37 = vrot.slane %v2483_v44, %v8449_v36  ;;  %v3866_v8 = vmax.f32 %v3738_v19, 0.0  ;;  %v3183_v30 = vrot.slane %v2484_v16, %v8449_v36  ;;  %v3868_v47 = vmax.f32 %v3740_v31, 0.0 }
 0x4a9   : > { %v3867_v45 = vmax.f32 %v3739_v52, 0.0  ;;  %v3869_v28 = vmax.f32 %v3741_v23, 0.0  ;;  %v3191_v54 = vrot.slane %v2469_v49, %v8449_v36  ;;  %v3743_v58 = vadd.f32 %v3187_v35, %v8429_v10 }
 0x4aa   : > { %6692 = vmatmul.mubr.bf16.gmra.mxu0 %v3979_v60  ;;  %v2487_v60 = vcombine.high %v2483_v44, %v2483_v44  ;;  %v2502_v5 = vrot.slane %v2488_v56, %v8445_v12  ;;  %v3745_v4 = vadd.f32 %v3195_v37, %v8429_v10  ;;  %v2485_v27 = vcombine.high %v2469_v49, %v2469_v49 }
 0x4ab   : > { %6695 = vmatprep.mubr.bf16.mxu0 %v3980_v61  ;;  %v3983_v57 = vpack.c.bf16 %v3867_v45, %v3866_v8  ;;  %v2525_v61 = vrot.slane %v2503_v59, %v8445_v12  ;;  %v3984_v26 = vpack.c.bf16 %v3869_v28, %v3868_v47  ;;  %v3742_v32 = vadd.f32 %v3183_v30, %v8429_v10  ;;  %v7266_v28 = vld [vmem:[#allocation20 + $0x18] sm:$0xff]  }
 0x4ac   : > { %v2511_v53 = vrot.slane %v2495_v21, %v8445_v12  ;;  %v3744_v11 = vadd.f32 %v3191_v54, %v8429_v10  ;;  %v3871_v50 = vmax.f32 %v3743_v58, 0.0  ;;  %v3203_v55 = vrot.slane %v2487_v60, %v8449_v36  ;;  %6807 = vmatprep.subr.bf16.mxu1 %v7266_v28 }
 0x4ad   : > { %v2504_v63 = vcombine.high %v2502_v5, %v2502_v5  ;;  %v2157_v14 = vadd.f32 %v8442_v43, %v2156_v29  ;;  %v3873_v15 = vmax.f32 %v3745_v4, 0.0  ;;  %v3211_v2 = vrot.slane %v2525_v61, %v8449_v36  ;;  %6808 = vmatpush3.bf16.msra.mxu1 %v7266_v28 }
 0x4ae   : > { %v3870_v38 = vmax.f32 %v3742_v32, 0.0  ;;  %v3199_v6 = vrot.slane %v2485_v27, %v8449_v36  ;;  %v3207_v9 = vrot.slane %v2511_v53, %v8449_v36  ;;  %v3872_v40 = vmax.f32 %v3744_v11, 0.0 }
 0x4af   : > { %v2535_v46 = vcombine.high %v2525_v61, %v2525_v61  ;;  %v3747_v0 = vadd.f32 %v3203_v55, %v8429_v10  ;;  %v2532_v24 = vrot.slane %v2504_v63, %v8445_v12  ;;  %v2544_v1 = vrot.slane %v2157_v14, %v8445_v12 }
 0x4b0   : > { %v3985_v17 = vpack.c.bf16 %v3871_v50, %v3870_v38  ;;  %v3986_v3 = vpack.c.bf16 %v3873_v15, %v3872_v40  ;;  %v2533_v51 = vcombine.high %v2511_v53, %v2511_v53  ;;  %v3746_v18 = vadd.f32 %v3199_v6, %v8429_v10  ;;  %v7268_v38 = vld [vmem:[#allocation20 + $0x8] sm:$0xff]  }
 0x4b1   : > { %v2518_v25 = vrot.slane %v2502_v5, %v8445_v12  ;;  %v3748_v44 = vadd.f32 %v3207_v9, %v8429_v10  ;;  %v3219_v39 = vrot.slane %v2535_v46, %v8449_v36  ;;  %v3875_v33 = vmax.f32 %v3747_v0, 0.0 }
 0x4b2   : > { %6696 = vmatmul.mubr.bf16.gmra.mxu0 %v3981_v41  ;;  %v3749_v41 = vadd.f32 %v3211_v2, %v8429_v10  ;;  %v2537_v21 = vcombine.high %v2157_v14, %v2157_v14  ;;  %v2552_v22 = vcombine.high %v2544_v1, %v2544_v1  ;;  %v3227_v13 = vrot.slane %v2532_v24, %v8449_v36  ;;  %v7267_v2 = vld [vmem:[#allocation20 + $0x10] sm:$0xff]  }
 0x4b3   : > { %6699 = vmatprep.mubr.bf16.mxu0 %v3982_v20  ;;  %v3215_v16 = vrot.slane %v2533_v51, %v8449_v36  ;;  %v3874_v48 = vmax.f32 %v3746_v18, 0.0  ;;  %v3876_v34 = vmax.f32 %v3748_v44, 0.0  ;;  %v3223_v49 = vrot.slane %v2518_v25, %v8449_v36  ;;  %6809 = vmatprep.subr.bf16.mxu1 %v7267_v2 }
 0x4b4   : > { %v3877_v62 = vmax.f32 %v3749_v41, 0.0  ;;  %v2536_v20 = vcombine.high %v2532_v24, %v2532_v24  ;;  %v3751_v31 = vadd.f32 %v3219_v39, %v8429_v10  ;;  %v2551_v52 = vrot.slane %v2537_v21, %v8445_v12  ;;  %6810 = vmatpush3.bf16.msra.mxu1 %v7267_v2 }
 0x4b5   : > { %v3987_v19 = vpack.c.bf16 %v3875_v33, %v3874_v48  ;;  %v2574_v23 = vrot.slane %v2552_v22, %v8445_v12  ;;  %v3753_v56 = vadd.f32 %v3227_v13, %v8429_v10  ;;  %v2534_v59 = vcombine.high %v2518_v25, %v2518_v25  ;;  %6811 = vmatprep.subr.bf16.mxu1 %v7268_v38  ;;  %v7269_v48 = vld [vmem:[#allocation20] sm:$0xff]  }
 0x4b6   : > { %v3988_v35 = vpack.c.bf16 %v3877_v62, %v3876_v34  ;;  %v3750_v37 = vadd.f32 %v3215_v16, %v8429_v10  ;;  %v2560_v8 = vrot.slane %v2544_v1, %v8445_v12  ;;  %v3752_v45 = vadd.f32 %v3223_v49, %v8429_v10 }
 0x4b7   : > { %v3879_v30 = vmax.f32 %v3751_v31, 0.0  ;;  %v3235_v47 = vrot.slane %v2536_v20, %v8449_v36  ;;  %v2162_v54 = vadd.f32 %v8510_v42, %v8442_v43  ;;  %v3881_v58 = vmax.f32 %v3753_v56, 0.0 }
 0x4b8   : > { %v3243_v60 = vrot.slane %v2574_v23, %v8449_v36  ;;  %v3231_v5 = vrot.slane %v2534_v59, %v8449_v36  ;;  %v3878_v61 = vmax.f32 %v3750_v37, 0.0  ;;  %v3880_v4 = vmax.f32 %v3752_v45, 0.0  ;;  %6812 = vmatpush3.bf16.msra.mxu1 %v7268_v38 }
 0x4b9   : > { %v2584_v27 = vcombine.high %v2574_v23, %v2574_v23  ;;  %v3755_v32 = vadd.f32 %v3235_v47, %v8429_v10  ;;  %v2593_v53 = vrot.slane %v2162_v54, %v8445_v12  ;;  %v2582_v55 = vcombine.high %v2560_v8, %v2560_v8  ;;  %6813 = vmatprep.subr.bf16.mxu1 %v7269_v48 }
 0x4ba   : > { %6700 = vmatmul.mubr.bf16.gmra.mxu0 %v3983_v57  ;;  %v2553_v57 = vcombine.high %v2551_v52, %v2551_v52  ;;  %v3989_v29 = vpack.c.bf16 %v3879_v30, %v3878_v61  ;;  %v3990_v11 = vpack.c.bf16 %v3881_v58, %v3880_v4  ;;  %v3757_v50 = vadd.f32 %v3243_v60, %v8429_v10 }
 0x4bb   : > { %6703 = vmatprep.mubr.bf16.mxu0 %v3984_v26  ;;  %v3239_v26 = vrot.slane %v2560_v8, %v8449_v36  ;;  %v3754_v63 = vadd.f32 %v3231_v5, %v8429_v10  ;;  %v2567_v14 = vrot.slane %v2551_v52, %v8445_v12  ;;  %v3251_v6 = vrot.slane %v2584_v27, %v8449_v36 }
 0x4bc   : > { %v2581_v42 = vrot.slane %v2553_v57, %v8445_v12  ;;  %v3883_v9 = vmax.f32 %v3755_v32, 0.0  ;;  %v2586_v40 = vcombine.high %v2162_v54, %v2162_v54  ;;  %v2601_v46 = vcombine.high %v2593_v53, %v2593_v53  ;;  %6814 = vmatpush3.bf16.msra.mxu1 %v7269_v48 }
 0x4bd   : > { %v3756_v15 = vadd.f32 %v3239_v26, %v8429_v10  ;;  %v3247_v24 = vrot.slane %v2582_v55, %v8449_v36  ;;  %v3882_v1 = vmax.f32 %v3754_v63, 0.0  ;;  %v3255_v41 = vrot.slane %v2567_v14, %v8449_v36 }
 0x4be   : > { %v3259_v0 = vrot.slane %v2581_v42, %v8449_v36  ;;  %v2585_v51 = vcombine.high %v2581_v42, %v2581_v42  ;;  %v3759_v25 = vadd.f32 %v3251_v6, %v8429_v10  ;;  %v2600_v44 = vrot.slane %v2586_v40, %v8445_v12 }
 0x4bf   : > { %v3991_v18 = vpack.c.bf16 %v3883_v9, %v3882_v1  ;;  %v2623_v39 = vrot.slane %v2601_v46, %v8445_v12  ;;  %v2583_v22 = vcombine.high %v2567_v14, %v2567_v14  ;;  %v3758_v62 = vadd.f32 %v3247_v24, %v8429_v10 }
 0x4c0   : > { %v3761_v21 = vadd.f32 %v3259_v0, %v8429_v10  ;;  %v2609_v13 = vrot.slane %v2593_v53, %v8445_v12  ;;  %v3760_v16 = vadd.f32 %v3255_v41, %v8429_v10  ;;  %v3887_v34 = vmax.f32 %v3759_v25, 0.0  ;;  %v8612_v53 = vpop.f32.mrf.mxu0 }
 0x4c1   : > { %v3267_v49 = vrot.slane %v2585_v51, %v8449_v36  ;;  %v2602_v20 = vcombine.high %v2600_v44, %v2600_v44  ;;  %v3275_v52 = vrot.slane %v2623_v39, %v8449_v36  ;;  %v3263_v23 = vrot.slane %v2583_v22, %v8449_v36 }
 0x4c2   : > { %6704 = vmatmul.mubr.bf16.gmra.mxu0 %v3985_v17  ;;  %v3885_v17 = vmax.f32 %v3757_v50, 0.0  ;;  %v3889_v31 = vmax.f32 %v3761_v21, 0.0  ;;  %v3271_v56 = vrot.slane %v2609_v13, %v8449_v36  ;;  %v3888_v59 = vmax.f32 %v3760_v16, 0.0  ;;  %v2169_v40 = vpop.f32.mrf.mxu0 }
 0x4c3   : > { %6707 = vmatprep.mubr.bf16.mxu0 %v3986_v3  ;;  %v3884_v3 = vmax.f32 %v3756_v15, 0.0  ;;  %v2633_v37 = vcombine.high %v2623_v39, %v2623_v39  ;;  %v3763_v45 = vadd.f32 %v3267_v49, %v8429_v10  ;;  %v2630_v28 = vrot.slane %v2602_v20, %v8445_v12 }
 0x4c4   : > { %v3765_v47 = vadd.f32 %v3275_v52, %v8429_v10  ;;  %v2631_v54 = vcombine.high %v2609_v13, %v2609_v13  ;;  %v3762_v57 = vadd.f32 %v3263_v23, %v8429_v10  ;;  %v2616_v58 = vrot.slane %v2600_v44, %v8445_v12 }
 0x4c5   : > { %v3992_v33 = vpack.c.bf16 %v3885_v17, %v3884_v3  ;;  %v3764_v60 = vadd.f32 %v3271_v56, %v8429_v10  ;;  %v3283_v5 = vrot.slane %v2633_v37, %v8449_v36  ;;  %v3891_v61 = vmax.f32 %v3763_v45, 0.0  ;;  %v8637_v45 = vpop.f32.mrf.mxu0 }
 0x4c6   : > { %v3893_v27 = vmax.f32 %v3765_v47, 0.0  ;;  %v3279_v32 = vrot.slane %v2631_v54, %v8449_v36  ;;  %v3890_v42 = vmax.f32 %v3762_v57, 0.0  ;;  %v3287_v50 = vrot.slane %v2616_v58, %v8449_v36 }
 0x4c7   : > { %v2634_v55 = vcombine.high %v2630_v28, %v2630_v28  ;;  %v3767_v14 = vadd.f32 %v3283_v5, %v8429_v10  ;;  %v2632_v9 = vcombine.high %v2616_v58, %v2616_v58  ;;  %v2170_v41 = vadd.f32 %v8442_v43, %v2169_v40 }
 0x4c8   : > { %v3995_v63 = vpack.c.bf16 %v3891_v61, %v3890_v42  ;;  %v3766_v46 = vadd.f32 %v3279_v32, %v8429_v10  ;;  %v3768_v0 = vadd.f32 %v3287_v50, %v8429_v10 }
 0x4c9   : > { %v3895_v24 = vmax.f32 %v3767_v14, 0.0  ;;  %v3299_v1 = vrot.slane %v2634_v55, %v8449_v36  ;;  %v3295_v25 = vrot.slane %v2632_v9, %v8449_v36  ;;  %v2691_v16 = vrot.slane %v2170_v41, %v8445_v12 }
 0x4ca   : > { %6708 = vmatmul.mubr.bf16.gmra.mxu0 %v3987_v19  ;;  %v2165_v19 = vadd.f32 %v8538_v7, %v8442_v43  ;;  %v3994_v7 = vpack.c.bf16 %v3889_v31, %v3888_v59  ;;  %v3894_v44 = vmax.f32 %v3766_v46, 0.0 }
 0x4cb   : > { %6711 = vmatprep.mubr.bf16.mxu0 %v3988_v35  ;;  %v3886_v35 = vmax.f32 %v3758_v62, 0.0  ;;  %v3771_v62 = vadd.f32 %v3299_v1, %v8429_v10  ;;  %v3770_v20 = vadd.f32 %v3295_v25, %v8429_v10  ;;  %v2699_v56 = vcombine.high %v2691_v16, %v2691_v16 }
 0x4cc   : > { %v2642_v30 = vrot.slane %v2165_v19, %v8445_v12  ;;  %v2635_v26 = vcombine.high %v2165_v19, %v2165_v19  ;;  %v3997_v22 = vpack.c.bf16 %v3895_v24, %v3894_v44 }
 0x4cd   : > { %v3993_v8 = vpack.c.bf16 %v3887_v34, %v3886_v35  ;;  %v3899_v23 = vmax.f32 %v3771_v62, 0.0  ;;  %v2684_v35 = vcombine.high %v2170_v41, %v2170_v41 }
 0x4ce   : > { %v2650_v4 = vcombine.high %v2642_v30, %v2642_v30  ;;  %v2649_v15 = vrot.slane %v2635_v26, %v8445_v12  ;;  %v2658_v17 = vrot.slane %v2642_v30, %v8445_v12 }
 0x4cf   : > { %v2698_v58 = vrot.slane %v2684_v35, %v8445_v12 }
 0x4d0   : > { %v2672_v2 = vrot.slane %v2650_v4, %v8445_v12  ;;  %v2651_v3 = vcombine.high %v2649_v15, %v2649_v15  ;;  %v3303_v39 = vrot.slane %v2658_v17, %v8449_v36  ;;  %v2680_v49 = vcombine.high %v2658_v17, %v2658_v17  ;;  %v2172_v4 = vpop.f32.mrf.mxu0 }
 0x4d1   : > { %v2665_v19 = vrot.slane %v2649_v15, %v8445_v12  ;;  %v2700_v50 = vcombine.high %v2698_v58, %v2698_v58  ;;  %v2173_v55 = vadd.f32 %v8442_v43, %v2172_v4 }
 0x4d2   : > { %6712 = vmatmul.mubr.bf16.gmra.mxu0 %v3989_v29  ;;  %v3291_v29 = vrot.slane %v2630_v28, %v8449_v36  ;;  %v2682_v21 = vcombine.high %v2672_v2, %v2672_v2  ;;  %v2679_v13 = vrot.slane %v2651_v3, %v8445_v12  ;;  %v3772_v31 = vadd.f32 %v3303_v39, %v8429_v10 }
 0x4d3   : > { %6715 = vmatprep.mubr.bf16.mxu0 %v3990_v11  ;;  %v3892_v11 = vmax.f32 %v3764_v60, 0.0  ;;  %v3898_v28 = vmax.f32 %v3770_v20, 0.0  ;;  %v2721_v60 = vrot.slane %v2699_v56, %v8445_v12  ;;  %v2681_v26 = vcombine.high %v2665_v19, %v2665_v19 }
 0x4d4   : > { %v3769_v6 = vadd.f32 %v3291_v29, %v8429_v10  ;;  %v3315_v52 = vrot.slane %v2682_v21, %v8449_v36  ;;  %v3323_v37 = vrot.slane %v2679_v13, %v8449_v36  ;;  %v3900_v30 = vmax.f32 %v3772_v31, 0.0 }
 0x4d5   : > { %v3996_v38 = vpack.c.bf16 %v3893_v27, %v3892_v11  ;;  %v2683_v47 = vcombine.high %v2679_v13, %v2679_v13  ;;  %v3999_v54 = vpack.c.bf16 %v3899_v23, %v3898_v28  ;;  %v2707_v29 = vrot.slane %v2691_v16, %v8445_v12 }
 0x4d6   : > { %v3897_v51 = vmax.f32 %v3769_v6, 0.0  ;;  %v3775_v57 = vadd.f32 %v3315_v52, %v8429_v10  ;;  %v3777_v61 = vadd.f32 %v3323_v37, %v8429_v10  ;;  %v3339_v14 = vrot.slane %v2721_v60, %v8449_v36 }
 0x4d7   : > { %v3331_v11 = vrot.slane %v2683_v47, %v8449_v36  ;;  %v3327_v15 = vrot.slane %v2681_v26, %v8449_v36  ;;  %v2731_v9 = vcombine.high %v2721_v60, %v2721_v60  ;;  %v2728_v17 = vrot.slane %v2700_v50, %v8445_v12 }
 0x4d8   : > { %v3903_v42 = vmax.f32 %v3775_v57, 0.0  ;;  %v3781_v1 = vadd.f32 %v3339_v14, %v8429_v10  ;;  %v2729_v3 = vcombine.high %v2707_v29, %v2707_v29  ;;  %v2733_v39 = vcombine.high %v2173_v55, %v2173_v55 }
 0x4d9   : > { %v3779_v46 = vadd.f32 %v3331_v11, %v8429_v10  ;;  %v3778_v41 = vadd.f32 %v3327_v15, %v8429_v10  ;;  %v3347_v25 = vrot.slane %v2731_v9, %v8449_v36 }
 0x4da   : > { %6716 = vmatmul.mubr.bf16.gmra.mxu0 %v3991_v18  ;;  %v3307_v18 = vrot.slane %v2672_v2, %v8449_v36  ;;  %v3909_v21 = vmax.f32 %v3781_v1, 0.0  ;;  %v3343_v62 = vrot.slane %v2729_v3, %v8449_v36 }
 0x4db   : > { %6719 = vmatprep.mubr.bf16.mxu0 %v3992_v33  ;;  %v3896_v33 = vmax.f32 %v3768_v0, 0.0  ;;  %v2740_v0 = vrot.slane %v2173_v55, %v8445_v12  ;;  %v3907_v44 = vmax.f32 %v3779_v46, 0.0  ;;  %v3906_v13 = vmax.f32 %v3778_v41, 0.0 }
 0x4dc   : > { %v3773_v34 = vadd.f32 %v3307_v18, %v8429_v10  ;;  %v3783_v20 = vadd.f32 %v3347_v25, %v8429_v10  ;;  %v3782_v56 = vadd.f32 %v3343_v62, %v8429_v10 }
 0x4dd   : > { %v3998_v48 = vpack.c.bf16 %v3897_v51, %v3896_v33  ;;  %v2714_v51 = vrot.slane %v2698_v58, %v8445_v12  ;;  %v2748_v33 = vcombine.high %v2740_v0, %v2740_v0 }
 0x4de   : > { %v3901_v59 = vmax.f32 %v3773_v34, 0.0  ;;  %v2732_v34 = vcombine.high %v2728_v17, %v2728_v17  ;;  %v3910_v58 = vmax.f32 %v3782_v56, 0.0 }
 0x4df   : > { %v2770_v31 = vrot.slane %v2748_v33, %v8445_v12  ;;  %v2730_v35 = vcombine.high %v2714_v51, %v2714_v51 }
 0x4e0   : > { %v4000_v5 = vpack.c.bf16 %v3901_v59, %v3900_v30  ;;  %v2756_v59 = vrot.slane %v2740_v0, %v8445_v12  ;;  %v3363_v28 = vrot.slane %v2732_v34, %v8449_v36  ;;  %v2178_v30 = vadd.f32 %v8612_v53, %v8442_v43 }
 0x4e1   : > { %v3359_v57 = vrot.slane %v2730_v35, %v8449_v36 }
 0x4e2   : > { %6720 = vmatmul.mubr.bf16.gmra.mxu0 %v3993_v8  ;;  %v3311_v8 = vrot.slane %v2680_v49, %v8449_v36  ;;  %v4003_v49 = vpack.c.bf16 %v3907_v44, %v3906_v13  ;;  %v3367_v60 = vrot.slane %v2756_v59, %v8449_v36  ;;  %v3787_v4 = vadd.f32 %v3363_v28, %v8429_v10 }
 0x4e3   : > { %6723 = vmatprep.mubr.bf16.mxu0 %v3994_v7  ;;  %v3319_v7 = vrot.slane %v2665_v19, %v8449_v36  ;;  %v2747_v19 = vrot.slane %v2733_v39, %v8445_v12  ;;  %v3786_v11 = vadd.f32 %v3359_v57, %v8429_v10  ;;  %v2782_v15 = vcombine.high %v2178_v30, %v2178_v30 }
 0x4e4   : > { %v3774_v27 = vadd.f32 %v3311_v8, %v8429_v10  ;;  %v3911_v8 = vmax.f32 %v3783_v20, 0.0  ;;  %v3788_v55 = vadd.f32 %v3367_v60, %v8429_v10  ;;  %v3915_v14 = vmax.f32 %v3787_v4, 0.0 }
 0x4e5   : > { %v3776_v32 = vadd.f32 %v3319_v7, %v8429_v10  ;;  %v2749_v7 = vcombine.high %v2747_v19, %v2747_v19  ;;  %v2763_v50 = vrot.slane %v2747_v19, %v8445_v12  ;;  %v2796_v3 = vrot.slane %v2782_v15, %v8445_v12 }
 0x4e6   : > { %v3902_v2 = vmax.f32 %v3774_v27, 0.0  ;;  %v4005_v26 = vpack.c.bf16 %v3911_v8, %v3910_v58  ;;  %v2789_v27 = vrot.slane %v2178_v30, %v8445_v12  ;;  %v3916_v46 = vmax.f32 %v3788_v55, 0.0 }
 0x4e7   : > { %v3904_v6 = vmax.f32 %v3776_v32, 0.0  ;;  %v2779_v25 = vcombine.high %v2763_v50, %v2763_v50  ;;  %v2798_v62 = vcombine.high %v2796_v3, %v2796_v3  ;;  %v2181_v13 = vadd.f32 %v8637_v45, %v8442_v43 }
 0x4e8   : > { %v4001_v40 = vpack.c.bf16 %v3903_v42, %v3902_v2  ;;  %v2778_v42 = vcombine.high %v2756_v59, %v2756_v59  ;;  %v2797_v2 = vcombine.high %v2789_v27, %v2789_v27  ;;  %v2805_v39 = vrot.slane %v2789_v27, %v8445_v12 }
 0x4e9   : > { %v3391_v34 = vrot.slane %v2779_v25, %v8449_v36  ;;  %v2826_v35 = vrot.slane %v2798_v62, %v8445_v12  ;;  %v2838_v56 = vrot.slane %v2181_v13, %v8445_v12  ;;  %v2812_v8 = vrot.slane %v2796_v3, %v8445_v12 }
 0x4ea   : > { %6724 = vmatmul.mubr.bf16.gmra.mxu0 %v3995_v63  ;;  %v3905_v63 = vmax.f32 %v3777_v61, 0.0  ;;  %v2780_v61 = vcombine.high %v2770_v31, %v2770_v31  ;;  %v3375_v9 = vrot.slane %v2778_v42, %v8449_v36  ;;  %v2819_v41 = vrot.slane %v2797_v2, %v8445_v12 }
 0x4eb   : > { %6727 = vmatprep.mubr.bf16.mxu0 %v3996_v38  ;;  %v3335_v38 = vrot.slane %v2707_v29, %v8449_v36  ;;  %v2777_v29 = vrot.slane %v2749_v7, %v8445_v12  ;;  %v3399_v20 = vrot.slane %v2805_v39, %v8449_v36  ;;  %v2827_v45 = vcombine.high %v2805_v39, %v2805_v39 }
 0x4ec   : > { %v4002_v24 = vpack.c.bf16 %v3905_v63, %v3904_v6  ;;  %v3379_v63 = vrot.slane %v2780_v61, %v8449_v36  ;;  %v3790_v44 = vadd.f32 %v3375_v9, %v8429_v10  ;;  %v3419_v58 = vrot.slane %v2826_v35, %v8449_v36 }
 0x4ed   : > { %v3780_v18 = vadd.f32 %v3335_v38, %v8429_v10  ;;  %v3387_v6 = vrot.slane %v2777_v29, %v8449_v36  ;;  %v2781_v0 = vcombine.high %v2777_v29, %v2777_v29  ;;  %v3796_v28 = vadd.f32 %v3399_v20, %v8429_v10 }
 0x4ee   : > { %v3791_v1 = vadd.f32 %v3379_v63, %v8429_v10  ;;  %v3407_v60 = vrot.slane %v2827_v45, %v8449_v36  ;;  %v3415_v4 = vrot.slane %v2812_v8, %v8449_v36  ;;  %v2830_v27 = vcombine.high %v2826_v35, %v2826_v35 }
 0x4ef   : > { %v3908_v16 = vmax.f32 %v3780_v18, 0.0  ;;  %v3793_v18 = vadd.f32 %v3387_v6, %v8429_v10  ;;  %v2828_v55 = vcombine.high %v2812_v8, %v2812_v8  ;;  %v2854_v15 = vrot.slane %v2838_v56, %v8445_v12 }
 0x4f0   : > { %v3800_v2 = vadd.f32 %v3415_v4, %v8429_v10  ;;  %v3427_v6 = vrot.slane %v2830_v27, %v8449_v36 }
 0x4f1   : > { %v4004_v52 = vpack.c.bf16 %v3909_v21, %v3908_v16  ;;  %v3919_v21 = vmax.f32 %v3791_v1, 0.0  ;;  %v3921_v16 = vmax.f32 %v3793_v18, 0.0  ;;  %v3431_v3 = vrot.slane %v2854_v15, %v8449_v36 }
 0x4f2   : > { %6728 = vmatmul.mubr.bf16.gmra.mxu0 %v3997_v22  ;;  %v3355_v22 = vrot.slane %v2728_v17, %v8449_v36  ;;  %v3383_v17 = vrot.slane %v2763_v50, %v8449_v36  ;;  %v3801_v50 = vadd.f32 %v3419_v58, %v8429_v10  ;;  %v3803_v25 = vadd.f32 %v3427_v6, %v8429_v10 }
 0x4f3   : > { %6731 = vmatprep.mubr.bf16.mxu0 %v3998_v48  ;;  %v3351_v48 = vrot.slane %v2714_v51, %v8449_v36 }
 0x4f4   : > { %v3785_v23 = vadd.f32 %v3355_v22, %v8429_v10  ;;  %v3792_v33 = vadd.f32 %v3383_v17, %v8429_v10  ;;  %v3395_v22 = vrot.slane %v2781_v0, %v8449_v36  ;;  %v3929_v17 = vmax.f32 %v3801_v50, 0.0 }
 0x4f5   : > { %v3784_v37 = vadd.f32 %v3351_v48, %v8429_v10  ;;  %v3403_v48 = vrot.slane %v2819_v41, %v8449_v36 }
 0x4f6   : > { %v3913_v47 = vmax.f32 %v3785_v23, 0.0  ;;  %v3920_v19 = vmax.f32 %v3792_v33, 0.0  ;;  %v3795_v23 = vadd.f32 %v3395_v22, %v8429_v10  ;;  %v2876_v22 = vcombine.high %v2854_v15, %v2854_v15 }
 0x4f7   : > { %v3797_v43 = vadd.f32 %v3403_v48, %v8429_v10  ;;  %v3804_v48 = vadd.f32 %v3431_v3, %v8429_v10 }
 0x4f8   : > { %v4010_v59 = vpack.c.bf16 %v3921_v16, %v3920_v19  ;;  %v3923_v7 = vmax.f32 %v3795_v23, 0.0  ;;  %v3439_v23 = vrot.slane %v2876_v22, %v8449_v36 }
 0x4f9   : > { %v3925_v57 = vmax.f32 %v3797_v43, 0.0 }
 0x4fa   : > { %6732 = vmatmul.mubr.bf16.gmra.mxu0 %v3999_v54  ;;  %v3371_v54 = vrot.slane %v2770_v31, %v8449_v36  ;;  %v2829_v31 = vcombine.high %v2819_v41, %v2819_v41  ;;  %v3928_v41 = vmax.f32 %v3800_v2, 0.0 }
 0x4fb   : > { %6735 = vmatprep.mubr.bf16.mxu0 %v4000_v5  ;;  %v3912_v5 = vmax.f32 %v3784_v37, 0.0  ;;  %v3794_v37 = vadd.f32 %v3391_v34, %v8429_v10 }
 0x4fc   : > { %v3789_v53 = vadd.f32 %v3371_v54, %v8429_v10  ;;  %v3411_v30 = vrot.slane %v2829_v31, %v8449_v36  ;;  %v2846_v54 = vcombine.high %v2838_v56, %v2838_v56  ;;  %v4014_v33 = vpack.c.bf16 %v3929_v17, %v3928_v41 }
 0x4fd   : > { %v4006_v32 = vpack.c.bf16 %v3913_v47, %v3912_v5  ;;  %v2831_v47 = vcombine.high %v2181_v13, %v2181_v13  ;;  %v8710_v5 = vpop.f32.mrf.mxu0  ;;  %v3922_v61 = vmax.f32 %v3794_v37, 0.0 }
 0x4fe   : > { %v3917_v38 = vmax.f32 %v3789_v53, 0.0  ;;  %v2868_v42 = vrot.slane %v2846_v54, %v8445_v12 }
 0x4ff   : > { %v4011_v29 = vpack.c.bf16 %v3923_v7, %v3922_v61  ;;  %v2845_v53 = vrot.slane %v2831_v47, %v8445_v12  ;;  %v2185_v63 = vpop.f32.mrf.mxu0 }
 0x500   : > { %v4008_v51 = vpack.c.bf16 %v3917_v38, %v3916_v46  ;;  %v3435_v0 = vrot.slane %v2868_v42, %v8449_v36 }
 0x501   : > { %v2847_v9 = vcombine.high %v2845_v53, %v2845_v53  ;;  %v2861_v13 = vrot.slane %v2845_v53, %v8445_v12  ;;  %v8735_v19 = vpop.f32.mrf.mxu0 }
 0x502   : > { %6736 = vmatmul.mubr.bf16.gmra.mxu0 %v4001_v40  ;;  %v3914_v40 = vmax.f32 %v3786_v11, 0.0 }
 0x503   : > { %6739 = vmatprep.mubr.bf16.mxu0 %v4002_v24  ;;  %v3447_v43 = vrot.slane %v2861_v13, %v8449_v36  ;;  %v2877_v54 = vcombine.high %v2861_v13, %v2861_v13 }
 0x504   : > { %v4007_v24 = vpack.c.bf16 %v3915_v14, %v3914_v40  ;;  %v3798_v14 = vadd.f32 %v3407_v60, %v8429_v10  ;;  %v8721_v40 = vld [vmem:[#allocation17] ss:$0 sm:$0xff] }
 0x505   : > { %v2186_v46 = vadd.f32 %v8721_v40, %v2185_v63  ;;  %v3808_v61 = vadd.f32 %v3447_v43, %v8429_v10 }
 0x506   : > { %v3926_v1 = vmax.f32 %v3798_v14, 0.0 }
 0x507   : > { %v2887_v39 = vrot.slane %v2186_v46, %v8445_v12  ;;  %v2880_v16 = vcombine.high %v2186_v46, %v2186_v46  ;;  %v3936_v2 = vmax.f32 %v3808_v61, 0.0 }
 0x509   : > { %v2895_v20 = vcombine.high %v2887_v39, %v2887_v39  ;;  %v2894_v56 = vrot.slane %v2880_v16, %v8445_v12  ;;  %v2903_v60 = vrot.slane %v2887_v39, %v8445_v12 }
 0x50a   : > { %6740 = vmatmul.mubr.bf16.gmra.mxu0 %v4003_v49  ;;  %v3918_v49 = vmax.f32 %v3790_v44, 0.0  ;;  %v2875_v44 = vrot.slane %v2847_v9, %v8445_v12 }
 0x50b   : > { %6743 = vmatprep.mubr.bf16.mxu0 %v4004_v52  ;;  %v2896_v58 = vcombine.high %v2894_v56, %v2894_v56  ;;  %v3463_v15 = vrot.slane %v2903_v60, %v8449_v36 }
 0x50c   : > { %v4009_v52 = vpack.c.bf16 %v3919_v21, %v3918_v49  ;;  %v3805_v21 = vadd.f32 %v3435_v0, %v8429_v10  ;;  %v3931_v49 = vmax.f32 %v3803_v25, 0.0  ;;  %v2879_v45 = vcombine.high %v2875_v44, %v2875_v44 }
 0x50d   : > { %v2924_v63 = vrot.slane %v2896_v58, %v8445_v12 }
 0x50e   : > { %v3933_v31 = vmax.f32 %v3805_v21, 0.0  ;;  %v3459_v27 = vrot.slane %v2879_v45, %v8449_v36 }
 0x50f   : > { %v2928_v45 = vcombine.high %v2924_v63, %v2924_v63 }
 0x510   : > { %v3811_v9 = vadd.f32 %v3459_v27, %v8429_v10 }
 0x512   : > { %6744 = vmatmul.mubr.bf16.gmra.mxu0 %v4005_v26  ;;  %v3924_v26 = vmax.f32 %v3796_v28, 0.0  ;;  %v2917_v28 = vrot.slane %v2895_v20, %v8445_v12  ;;  %v3483_v20 = vrot.slane %v2924_v63, %v8449_v36 }
 0x513   : > { %6747 = vmatprep.mubr.bf16.mxu0 %v4006_v32  ;;  %v3799_v32 = vadd.f32 %v3411_v30, %v8429_v10  ;;  %v2188_v30 = vpop.f32.mrf.mxu0 }
 0x514   : > { %v4012_v11 = vpack.c.bf16 %v3925_v57, %v3924_v26  ;;  %v3806_v57 = vadd.f32 %v3439_v23, %v8429_v10  ;;  %v3467_v53 = vrot.slane %v2917_v28, %v8449_v36  ;;  %v2927_v14 = vcombine.high %v2917_v28, %v2917_v28 }
 0x515   : > { %v3927_v38 = vmax.f32 %v3799_v32, 0.0 }
 0x516   : > { %v3934_v50 = vmax.f32 %v3806_v57, 0.0  ;;  %v3475_v22 = vrot.slane %v2927_v14, %v8449_v36 }
 0x517   : > { %v4013_v18 = vpack.c.bf16 %v3927_v38, %v3926_v1  ;;  %v3813_v1 = vadd.f32 %v3467_v53, %v8429_v10 }
 0x51a   : > { %6748 = vmatmul.mubr.bf16.gmra.mxu0 %v4007_v24  ;;  %v3423_v24 = vrot.slane %v2828_v55, %v8449_v36  ;;  %v8751_v55 = vld [vmem:[#allocation19] ss:$0 sm:$0xff] }
 0x51b   : > { %6751 = vmatprep.mubr.bf16.mxu0 %v4008_v51  ;;  %v2878_v51 = vcombine.high %v2868_v42, %v2868_v42 }
 0x51c   : > { %v3802_v62 = vadd.f32 %v3423_v24, %v8429_v10 }
 0x51d   : > { %v3443_v34 = vrot.slane %v2878_v51, %v8449_v36  ;;  %v2925_v51 = vcombine.high %v2903_v60, %v2903_v60 }
 0x51e   : > { %v3930_v35 = vmax.f32 %v3802_v62, 0.0  ;;  %v3939_v62 = vmax.f32 %v3811_v9, 0.0 }
 0x51f   : > { %v3807_v8 = vadd.f32 %v3443_v34, %v8429_v10  ;;  %v3941_v34 = vmax.f32 %v3813_v1, 0.0 }
 0x520   : > { %v4015_v37 = vpack.c.bf16 %v3931_v49, %v3930_v35 }
 0x521   : > { %v3935_v4 = vmax.f32 %v3807_v8, 0.0  ;;  %v3815_v8 = vadd.f32 %v3475_v22, %v8429_v10 }
 0x522   : > { %6752 = vmatmul.mubr.bf16.gmra.mxu0 %v4009_v52  ;;  %v3451_v52 = vrot.slane %v2875_v44, %v8449_v36  ;;  %v2910_v44 = vrot.slane %v2894_v56, %v8445_v12 }
 0x523   : > { %6755 = vmatprep.mubr.bf16.mxu0 %v4010_v59  ;;  %v3932_v59 = vmax.f32 %v3804_v48, 0.0  ;;  %v4017_v6 = vpack.c.bf16 %v3935_v4, %v3934_v50  ;;  %v3943_v27 = vmax.f32 %v3815_v8, 0.0 }
 0x524   : > { %v3809_v47 = vadd.f32 %v3451_v52, %v8429_v10  ;;  %v2926_v57 = vcombine.high %v2910_v44, %v2910_v44 }
 0x525   : > { %v4016_v7 = vpack.c.bf16 %v3933_v31, %v3932_v59  ;;  %v3471_v31 = vrot.slane %v2925_v51, %v8449_v36  ;;  %v3479_v59 = vrot.slane %v2910_v44, %v8449_v36 }
 0x526   : > { %v3937_v32 = vmax.f32 %v3809_v47, 0.0  ;;  %v3817_v47 = vadd.f32 %v3483_v20, %v8429_v10  ;;  %v3487_v63 = vrot.slane %v2926_v57, %v8449_v36 }
 0x527   : > { %v3814_v58 = vadd.f32 %v3471_v31, %v8429_v10  ;;  %v3816_v4 = vadd.f32 %v3479_v59, %v8429_v10 }
 0x528   : > { %v4018_v24 = vpack.c.bf16 %v3937_v32, %v3936_v2  ;;  %v3945_v53 = vmax.f32 %v3817_v47, 0.0  ;;  %v2197_v47 = vadd.f32 %v8721_v40, %v8735_v19 }
 0x529   : > { %v3942_v14 = vmax.f32 %v3814_v58, 0.0  ;;  %v3944_v9 = vmax.f32 %v3816_v4, 0.0 }
 0x52a   : > { %6756 = vmatmul.mubr.bf16.gmra.mxu0 %v4011_v29  ;;  %v2189_v29 = vadd.f32 %v8721_v40, %v2188_v30 }
 0x52b   : > { %6759 = vmatprep.mubr.bf16.mxu0 %v4012_v11  ;;  %v3455_v11 = vrot.slane %v2877_v54, %v8449_v36  ;;  %v2194_v54 = vadd.f32 %v8721_v40, %v8710_v5 }
 0x52c   : > { %v2936_v0 = vrot.slane %v2189_v29, %v8445_v12  ;;  %v2929_v39 = vcombine.high %v2189_v29, %v2189_v29  ;;  %v3491_v29 = vrot.slane %v2928_v45, %v8449_v36 }
 0x52d   : > { %v2985_v50 = vrot.slane %v2194_v54, %v8445_v12 }
 0x52e   : > { %v2944_v48 = vcombine.high %v2936_v0, %v2936_v0  ;;  %v2943_v35 = vrot.slane %v2929_v39, %v8445_v12  ;;  %v3818_v39 = vadd.f32 %v3487_v63, %v8429_v10 }
 0x52f   : > { %v3001_v58 = vrot.slane %v2985_v50, %v8445_v12 }
 0x530   : > { %v2966_v30 = vrot.slane %v2944_v48, %v8445_v12  ;;  %v2945_v61 = vcombine.high %v2943_v35, %v2943_v35  ;;  %v2978_v48 = vcombine.high %v2194_v54, %v2194_v54 }
 0x532   : > { %6760 = vmatmul.mubr.bf16.gmra.mxu0 %v4013_v18  ;;  %v3810_v18 = vadd.f32 %v3455_v11, %v8429_v10 }
 0x533   : > { %6763 = vmatprep.mubr.bf16.mxu0 %v4014_v33  ;;  %v3812_v33 = vadd.f32 %v3463_v15, %v8429_v10 }
 0x534   : > { %v3938_v52 = vmax.f32 %v3810_v18, 0.0 }
 0x535   : > { %v3940_v56 = vmax.f32 %v3812_v33, 0.0  ;;  %v2959_v33 = vrot.slane %v2943_v35, %v8445_v12 }
 0x537   : > { %v2975_v54 = vcombine.high %v2959_v33, %v2959_v33 }
 0x53a   : > { %6764 = vmatmul.mubr.bf16.gmra.mxu0 %v4015_v37  ;;  %v4019_v37 = vpack.c.bf16 %v3939_v62, %v3938_v52  ;;  %v3946_v52 = vmax.f32 %v3818_v39, 0.0  ;;  %v3027_v39 = vcombine.high %v2197_v47, %v2197_v47 }
 0x53b   : > { %6767 = vmatprep.mubr.bf16.mxu0 %v4016_v7  ;;  %v4020_v7 = vpack.c.bf16 %v3941_v34, %v3940_v56  ;;  %v2993_v34 = vcombine.high %v2985_v50, %v2985_v50  ;;  %v3511_v56 = vrot.slane %v2959_v33, %v8449_v36 }
 0x53d   : > { %v3015_v8 = vrot.slane %v2993_v34, %v8445_v12 }
 0x542   : > { %6768 = vmatmul.mubr.bf16.gmra.mxu0 %v4017_v6 }
 0x543   : > { %6771 = vmatprep.mubr.bf16.mxu0 %v4018_v24  ;;  %v3819_v24 = vadd.f32 %v3491_v29, %v8429_v10 }
 0x54a   : > { %6772 = vmatmul.mubr.bf16.gmra.mxu0 %v4019_v37  ;;  %v2992_v37 = vrot.slane %v2978_v48, %v8445_v12 }
 0x54b   : > { %6775 = vmatprep.mubr.bf16.mxu0 %v4020_v7 }
 0x552   : > { %v6681_v26 = vpop.f32.mrf.mxu0 }
 0x553   : > { %v4150_v3 = vadd.f32 %v6681_v26, %v8751_v55  ;;  %v2952_v26 = vrot.slane %v2936_v0, %v8445_v12  ;;  %v4021_v0 = vpack.c.bf16 %v3943_v27, %v3942_v14  ;;  %v3025_v14 = vcombine.high %v3015_v8, %v3015_v8 }
 0x554   : > { %v4141_v42 = vpop.f32.mrf.mxu0 }
 0x555   : > { %v4142_v46 = vadd.f32 %v8751_v55, %v4141_v42  ;;  %v4654_v49 = vmax.f32 %v4150_v3, 0.0  ;;  %v3499_v42 = vrot.slane %v2966_v30, %v8449_v36  ;;  %v3495_v6 = vrot.slane %v2952_v26, %v8449_v36  ;;  %6776 = vmatmul.mubr.bf16.gmra.mxu0 %v4021_v0 }
 0x556   : > { %v6682_v38 = vpop.f32.mrf.mxu0  ;;  %v4022_v3 = vpack.c.bf16 %v3945_v53, %v3944_v9 }
 0x557   : > { %v4153_v17 = vadd.f32 %v6682_v38, %v8751_v55  ;;  %v4652_v13 = vmax.f32 %v4142_v46, 0.0  ;;  %v2973_v38 = vrot.slane %v2945_v61, %v8445_v12 }
 0x558   : > { %v4144_v41 = vpop.f32.mrf.mxu0  ;;  %6779 = vmatprep.mubr.bf16.mxu0 %v4022_v3 }
 0x559   : > { %v4145_v25 = vadd.f32 %v8751_v55, %v4144_v41  ;;  %v4655_v21 = vmax.f32 %v4153_v17, 0.0  ;;  %v2976_v17 = vcombine.high %v2966_v30, %v2966_v30  ;;  %v3821_v41 = vadd.f32 %v3499_v42, %v8429_v10 }
 0x55a   : > { %v6685_v28 = vpop.f32.mrf.mxu0  ;;  %v3515_v20 = vrot.slane %v2973_v38, %v8449_v36  ;;  %v2977_v59 = vcombine.high %v2973_v38, %v2973_v38  ;;  %v3531_v42 = vrot.slane %v3015_v8, %v8449_v36 }
 0x55b   : > { %v4653_v16 = vmax.f32 %v4145_v25, 0.0  ;;  %v4781_v43 = vpack.c.bf16 %v4655_v21, %v4654_v49  ;;  %v4166_v15 = vadd.f32 %v6685_v28, %v8751_v55  ;;  %v2974_v25 = vcombine.high %v2952_v26, %v2952_v26 }
 0x55c   : > { %v4157_v60 = vpop.f32.mrf.mxu0  ;;  %v3820_v21 = vadd.f32 %v3495_v6, %v8429_v10  ;;  %v3507_v62 = vrot.slane %v2976_v17, %v8449_v36  ;;  %v3949_v49 = vmax.f32 %v3821_v41, 0.0  ;;  %v3825_v30 = vadd.f32 %v3515_v20, %v8429_v10 }
 0x55d   : > { %v4780_v23 = vpack.c.bf16 %v4653_v16, %v4652_v13  ;;  %v4158_v5 = vadd.f32 %v8751_v55, %v4157_v60  ;;  %v4658_v44 = vmax.f32 %v4166_v15, 0.0  ;;  %v3947_v13 = vmax.f32 %v3819_v24, 0.0 }
 0x55e   : > { %v6686_v32 = vpop.f32.mrf.mxu0  ;;  %v3503_v31 = vrot.slane %v2974_v25, %v8449_v36  ;;  %v3823_v45 = vadd.f32 %v3507_v62, %v8429_v10  ;;  %v3824_v60 = vadd.f32 %v3511_v56, %v8429_v10  ;;  %v3523_v29 = vrot.slane %v2977_v59, %v8449_v36 }
 0x55f   : > { %6815 = vmatprep.mubr.msk.bf16.mxu1 %vm1710_vm0, %v4780_v23  ;;  %v4169_v11 = vadd.f32 %v6686_v32, %v8751_v55  ;;  %v4656_v51 = vmax.f32 %v4158_v5, 0.0  ;;  %v3948_v23 = vmax.f32 %v3820_v21, 0.0  ;;  %v2994_v32 = vcombine.high %v2992_v37, %v2992_v37 }
 0x560   : > { %6816 = vmatmul.mubr.msk.bf16.vlgmr.msra.gmra.mxu1 %vm1710_vm0, %v4781_v43  ;;  %v4160_v2 = vpop.f32.mrf.mxu0  ;;  %v4023_v43 = vpack.c.bf16 %v3947_v13, %v3946_v52  ;;  %v3822_v57 = vadd.f32 %v3503_v31, %v8429_v10  ;;  %v3951_v26 = vmax.f32 %v3823_v45, 0.0  ;;  %v3953_v19 = vmax.f32 %v3825_v30, 0.0 }
 0x561   : > { %v4161_v46 = vadd.f32 %v8751_v55, %v4160_v2  ;;  %v4659_v1 = vmax.f32 %v4169_v11, 0.0  ;;  %v4024_v28 = vpack.c.bf16 %v3949_v49, %v3948_v23  ;;  %v3034_v5 = vrot.slane %v2197_v47, %v8445_v12 }
 0x562   : > { %v6689_v35 = vpop.f32.mrf.mxu0  ;;  %6780 = vmatmul.mubr.bf16.gmra.mxu0 %v4023_v43  ;;  %v3519_v11 = vrot.slane %v2975_v54, %v8449_v36  ;;  %v3950_v50 = vmax.f32 %v3822_v57, 0.0  ;;  %v3527_v15 = vrot.slane %v3001_v58, %v8449_v36  ;;  %v3952_v2 = vmax.f32 %v3824_v60, 0.0 }
 0x563   : > { %v4657_v18 = vmax.f32 %v4161_v46, 0.0  ;;  %v4783_v16 = vpack.c.bf16 %v4659_v1, %v4658_v44  ;;  %6783 = vmatprep.mubr.bf16.mxu0 %v4024_v28  ;;  %v4182_v40 = vadd.f32 %v6689_v35, %v8751_v55  ;;  %v3827_v17 = vadd.f32 %v3523_v29, %v8429_v10 }
 0x564   : > { %v4173_v7 = vpop.f32.mrf.mxu0  ;;  %v4025_v6 = vpack.c.bf16 %v3951_v26, %v3950_v50  ;;  %v3022_v0 = vrot.slane %v2994_v32, %v8445_v12  ;;  %v4026_v1 = vpack.c.bf16 %v3953_v19, %v3952_v2  ;;  %v3829_v41 = vadd.f32 %v3531_v42, %v8429_v10 }
 0x565   : > { %v4782_v22 = vpack.c.bf16 %v4657_v18, %v4656_v51  ;;  %v4174_v4 = vadd.f32 %v8751_v55, %v4173_v7  ;;  %v4662_v24 = vmax.f32 %v4182_v40, 0.0  ;;  %v3023_v51 = vcombine.high %v3001_v58, %v3001_v58 }
 0x566   : > { %v6690_v61 = vpop.f32.mrf.mxu0  ;;  %v3826_v25 = vadd.f32 %v3519_v11, %v8429_v10  ;;  %v3008_v44 = vrot.slane %v2992_v37, %v8445_v12  ;;  %v3828_v21 = vadd.f32 %v3527_v15, %v8429_v10  ;;  %v3539_v62 = vrot.slane %v3025_v14, %v8449_v36 }
 0x567   : > { %6819 = vmatprep.mubr.msk.bf16.mxu1 %vm1710_vm0, %v4782_v22  ;;  %v4185_v27 = vadd.f32 %v6690_v61, %v8751_v55  ;;  %v4660_v9 = vmax.f32 %v4174_v4, 0.0  ;;  %v3955_v13 = vmax.f32 %v3827_v17, 0.0  ;;  %v3957_v48 = vmax.f32 %v3829_v41, 0.0 }
 0x568   : > { %6820 = vmatmul.mubr.msk.bf16.gmra.mxu1 %vm1710_vm0, %v4783_v16  ;;  %v4176_v53 = vpop.f32.mrf.mxu0  ;;  %v3042_v16 = vcombine.high %v3034_v5, %v3034_v5  ;;  %v3547_v49 = vrot.slane %v3022_v0, %v8449_v36  ;;  %v3535_v20 = vrot.slane %v3023_v51, %v8449_v36  ;;  %v3954_v31 = vmax.f32 %v3826_v25, 0.0 }
 0x569   : > { %v4177_v63 = vadd.f32 %v8751_v55, %v4176_v53  ;;  %v4663_v38 = vmax.f32 %v4185_v27, 0.0  ;;  %v3041_v35 = vrot.slane %v3027_v39, %v8445_v12  ;;  %v3956_v59 = vmax.f32 %v3828_v21, 0.0 }
 0x56a   : > { %v6693_v3 = vpop.f32.mrf.mxu0  ;;  %6784 = vmatmul.mubr.bf16.gmra.mxu0 %v4025_v6  ;;  %v3543_v45 = vrot.slane %v3008_v44, %v8449_v36  ;;  %v3026_v37 = vcombine.high %v3022_v0, %v3022_v0  ;;  %v4027_v8 = vpack.c.bf16 %v3955_v13, %v3954_v31  ;;  %v3831_v30 = vadd.f32 %v3539_v62, %v8429_v10 }
 0x56b   : > { %v4661_v46 = vmax.f32 %v4177_v63, 0.0  ;;  %6787 = vmatprep.mubr.bf16.mxu0 %v4026_v1  ;;  %v4785_v33 = vpack.c.bf16 %v4663_v38, %v4662_v24  ;;  %v4198_v56 = vadd.f32 %v6693_v3, %v8751_v55  ;;  %v3064_v7 = vrot.slane %v3042_v16, %v8445_v12 }
 0x56c   : > { %v4189_v22 = vpop.f32.mrf.mxu0  ;;  %v4028_v47 = vpack.c.bf16 %v3957_v48, %v3956_v59  ;;  %v3833_v57 = vadd.f32 %v3547_v49, %v8429_v10  ;;  %v3024_v58 = vcombine.high %v3008_v44, %v3008_v44  ;;  %v3830_v26 = vadd.f32 %v3535_v20, %v8429_v10 }
 0x56d   : > { %v4784_v18 = vpack.c.bf16 %v4661_v46, %v4660_v9  ;;  %v4190_v52 = vadd.f32 %v8751_v55, %v4189_v22  ;;  %v3050_v4 = vrot.slane %v3034_v5, %v8445_v12  ;;  %v4666_v27 = vmax.f32 %v4198_v56, 0.0 }
 0x56e   : > { %v6694_v34 = vpop.f32.mrf.mxu0  ;;  %v3832_v29 = vadd.f32 %v3543_v45, %v8429_v10  ;;  %v3959_v40 = vmax.f32 %v3831_v30, 0.0  ;;  %v3555_v19 = vrot.slane %v3026_v37, %v8449_v36  ;;  %v3043_v53 = vcombine.high %v3041_v35, %v3041_v35 }
 0x56f   : > { %6823 = vmatprep.mubr.msk.bf16.mxu1 %vm1710_vm0, %v4784_v18  ;;  %v4201_v23 = vadd.f32 %v6694_v34, %v8751_v55  ;;  %v4664_v60 = vmax.f32 %v4190_v52, 0.0  ;;  %v3961_v11 = vmax.f32 %v3833_v57, 0.0  ;;  %v3563_v50 = vrot.slane %v3064_v7, %v8449_v36 }
 0x570   : > { %6824 = vmatmul.mubr.msk.bf16.gmra.mxu1 %vm1710_vm0, %v4785_v33  ;;  %v4192_v43 = vpop.f32.mrf.mxu0  ;;  %v3551_v63 = vrot.slane %v3024_v58, %v8449_v36  ;;  %v3958_v14 = vmax.f32 %v3830_v26, 0.0  ;;  %v3559_v5 = vrot.slane %v3050_v4, %v8449_v36  ;;  %v3960_v15 = vmax.f32 %v3832_v29, 0.0 }
 0x571   : > { %v4193_v28 = vadd.f32 %v8751_v55, %v4192_v43  ;;  %v4667_v54 = vmax.f32 %v4201_v23, 0.0  ;;  %v3074_v2 = vcombine.high %v3064_v7, %v3064_v7  ;;  %v3835_v9 = vadd.f32 %v3555_v19, %v8429_v10 }
 0x572   : > { %6788 = vmatmul.mubr.bf16.gmra.mxu0 %v4027_v8  ;;  %v6697_v38 = vpop.f32.mrf.mxu0  ;;  %v4029_v6 = vpack.c.bf16 %v3959_v40, %v3958_v14  ;;  %v3071_v46 = vrot.slane %v3043_v53, %v8445_v12  ;;  %v4030_v17 = vpack.c.bf16 %v3961_v11, %v3960_v15  ;;  %v3837_v0 = vadd.f32 %v3563_v50, %v8429_v10 }
 0x573   : > { %v4665_v61 = vmax.f32 %v4193_v28, 0.0  ;;  %6791 = vmatprep.mubr.bf16.mxu0 %v4028_v47  ;;  %v4787_v42 = vpack.c.bf16 %v4667_v54, %v4666_v27  ;;  %v3072_v24 = vcombine.high %v3050_v4, %v3050_v4  ;;  %v3834_v3 = vadd.f32 %v3551_v63, %v8429_v10 }
 0x574   : > { %v4205_v1 = vpop.f32.mrf.mxu0  ;;  %v3057_v41 = vrot.slane %v3041_v35, %v8445_v12  ;;  %v3836_v51 = vadd.f32 %v3559_v5, %v8429_v10  ;;  %v3571_v18 = vrot.slane %v3074_v2, %v8449_v36  ;;  %v3963_v44 = vmax.f32 %v3835_v9, 0.0 }
 0x575   : > { %v4786_v32 = vpack.c.bf16 %v4665_v61, %v4664_v60  ;;  %v4206_v39 = vadd.f32 %v8751_v55, %v4205_v1  ;;  %v3965_v21 = vmax.f32 %v3837_v0, 0.0  ;;  %v3579_v22 = vrot.slane %v3071_v46, %v8449_v36 }
 0x576   : > { %v6698_v25 = vpop.f32.mrf.mxu0  ;;  %v3567_v62 = vrot.slane %v3072_v24, %v8449_v36  ;;  %v4214_v13 = vadd.f32 %v6697_v38, %v8751_v55  ;;  %v3962_v12 = vmax.f32 %v3834_v3, 0.0  ;;  %v3964_v34 = vmax.f32 %v3836_v51, 0.0 }
 0x577   : > { %6827 = vmatprep.mubr.msk.bf16.mxu1 %vm1710_vm0, %v4786_v32  ;;  %v4217_v33 = vadd.f32 %v6698_v25, %v8751_v55  ;;  %v3575_v49 = vrot.slane %v3057_v41, %v8449_v36  ;;  %v3075_v20 = vcombine.high %v3071_v46, %v3071_v46  ;;  %v3839_v23 = vadd.f32 %v3571_v18, %v8429_v10 }
 0x578   : > { %6828 = vmatmul.mubr.msk.bf16.gmra.mxu1 %vm1710_vm0, %v4787_v42  ;;  %v4208_v16 = vpop.f32.mrf.mxu0  ;;  %v4031_v52 = vpack.c.bf16 %v3963_v44, %v3962_v12  ;;  %v4668_v35 = vmax.f32 %v4206_v39, 0.0  ;;  %v4032_v59 = vpack.c.bf16 %v3965_v21, %v3964_v34  ;;  %v3841_v43 = vadd.f32 %v3579_v22, %v8429_v10 }
 0x579   : > { %v4209_v48 = vadd.f32 %v8751_v55, %v4208_v16  ;;  %v4671_v31 = vmax.f32 %v4217_v33, 0.0  ;;  %v3073_v45 = vcombine.high %v3057_v41, %v3057_v41  ;;  %v4670_v37 = vmax.f32 %v4214_v13, 0.0 }
 0x57a   : > { %6792 = vmatmul.mubr.bf16.gmra.mxu0 %v4029_v6  ;;  %v6701_v8 = vpop.f32.mrf.mxu0  ;;  %v3838_v28 = vadd.f32 %v3567_v62, %v8429_v10  ;;  %v3840_v7 = vadd.f32 %v3575_v49, %v8429_v10  ;;  %v3967_v57 = vmax.f32 %v3839_v23, 0.0  ;;  %v3587_v58 = vrot.slane %v3075_v20, %v8449_v36 }
 0x57b   : > { %6795 = vmatprep.mubr.bf16.mxu0 %v4030_v17  ;;  %v4669_v56 = vmax.f32 %v4209_v48, 0.0  ;;  %v4789_v47 = vpack.c.bf16 %v4671_v31, %v4670_v37  ;;  %v3969_v60 = vmax.f32 %v3841_v43, 0.0  ;;  %v3583_v61 = vrot.slane %v3073_v45, %v8449_v36 }
 0x57c   : > { %v4221_v54 = vpop.f32.mrf.mxu0  ;;  %v3966_v4 = vmax.f32 %v3838_v28, 0.0  ;;  %v3968_v32 = vmax.f32 %v3840_v7, 0.0  ;;  %v4230_v40 = vadd.f32 %v6701_v8, %v8751_v55  ;;  %v3843_v42 = vadd.f32 %v3587_v58, %v8429_v10 }
 0x57d   : > { %v4788_v30 = vpack.c.bf16 %v4669_v56, %v4668_v35  ;;  %v4222_v27 = vadd.f32 %v8751_v55, %v4221_v54  ;;  %v3842_v14 = vadd.f32 %v3583_v61, %v8429_v10 }
 0x57e   : > { %v6702_v26 = vpop.f32.mrf.mxu0  ;;  %v4033_v53 = vpack.c.bf16 %v3967_v57, %v3966_v4  ;;  %v4034_v50 = vpack.c.bf16 %v3969_v60, %v3968_v32  ;;  %v4674_v2 = vmax.f32 %v4230_v40, 0.0  ;;  %v3971_v6 = vmax.f32 %v3843_v42, 0.0 }
 0x57f   : > { %6831 = vmatprep.mubr.msk.bf16.mxu1 %vm1710_vm0, %v4788_v30  ;;  %v4233_v29 = vadd.f32 %v6702_v26, %v8751_v55  ;;  %v4672_v5 = vmax.f32 %v4222_v27, 0.0  ;;  %v3970_v0 = vmax.f32 %v3842_v14, 0.0 }
 0x580   : > { %6832 = vmatmul.mubr.msk.bf16.gmra.mxu1 %vm1710_vm0, %v4789_v47  ;;  %v4224_v19 = vpop.f32.mrf.mxu0 }
 0x581   : > { %v4225_v11 = vadd.f32 %v8751_v55, %v4224_v19  ;;  %v4675_v63 = vmax.f32 %v4233_v29, 0.0  ;;  %v4035_v10 = vpack.c.bf16 %v3971_v6, %v3970_v0 }
 0x582   : > { %6796 = vmatmul.mubr.bf16.gmra.mxu0 %v4031_v52  ;;  %v6705_v36 = vpop.f32.mrf.mxu0 }
 0x583   : > { %6799 = vmatprep.mubr.bf16.mxu0 %v4032_v59  ;;  %v4673_v15 = vmax.f32 %v4225_v11, 0.0  ;;  %v4791_v46 = vpack.c.bf16 %v4675_v63, %v4674_v2  ;;  %v4246_v3 = vadd.f32 %v6705_v36, %v8751_v55 }
 0x584   : > { %v4237_v38 = vpop.f32.mrf.mxu0 }
 0x585   : > { %v4790_v9 = vpack.c.bf16 %v4673_v15, %v4672_v5  ;;  %v4238_v24 = vadd.f32 %v8751_v55, %v4237_v38  ;;  %v4678_v33 = vmax.f32 %v4246_v3, 0.0 }
 0x586   : > { %v6706_v17 = vpop.f32.mrf.mxu0 }
 0x587   : > { %v4249_v1 = vadd.f32 %v6706_v17, %v8751_v55  ;;  %6835 = vmatprep.mubr.msk.bf16.mxu1 %vm1710_vm0, %v4790_v9  ;;  %v4676_v44 = vmax.f32 %v4238_v24, 0.0 }
 0x588   : > { %v4240_v41 = vpop.f32.mrf.mxu0  ;;  %6836 = vmatmul.mubr.msk.bf16.gmra.mxu1 %vm1710_vm0, %v4791_v46 }
 0x589   : > { %v4241_v51 = vadd.f32 %v8751_v55, %v4240_v41  ;;  %v4679_v18 = vmax.f32 %v4249_v1, 0.0 }
 0x58a   : > { %6800 = vmatmul.mubr.bf16.gmra.mxu0 %v4033_v53  ;;  %v6709_v25 = vpop.f32.mrf.mxu0 }
 0x58b   : > { %6803 = vmatprep.mubr.bf16.mxu0 %v4034_v50  ;;  %v4677_v39 = vmax.f32 %v4241_v51, 0.0  ;;  %v4793_v62 = vpack.c.bf16 %v4679_v18, %v4678_v33  ;;  %v4262_v48 = vadd.f32 %v6709_v25, %v8751_v55 }
 0x58c   : > { %v4253_v21 = vpop.f32.mrf.mxu0 }
 0x58d   : > { %v4792_v22 = vpack.c.bf16 %v4677_v39, %v4676_v44  ;;  %v4254_v16 = vadd.f32 %v8751_v55, %v4253_v21  ;;  %v4682_v35 = vmax.f32 %v4262_v48, 0.0 }
 0x58e   : > { %v6710_v13 = vpop.f32.mrf.mxu0 }
 0x58f   : > { %v4265_v12 = vadd.f32 %v6710_v13, %v8751_v55  ;;  %6839 = vmatprep.mubr.msk.bf16.mxu1 %vm1710_vm0, %v4792_v22  ;;  %v4680_v52 = vmax.f32 %v4254_v16, 0.0 }
 0x590   : > { %v4256_v34 = vpop.f32.mrf.mxu0  ;;  %6840 = vmatmul.mubr.msk.bf16.gmra.mxu1 %vm1710_vm0, %v4793_v62 }
 0x591   : > { %v4257_v49 = vadd.f32 %v8751_v55, %v4256_v34  ;;  %v4683_v20 = vmax.f32 %v4265_v12, 0.0 }
 0x592   : > { %6804 = vmatmul.mubr.bf16.gmra.mxu0 %v4035_v10  ;;  %v6713_v31 = vpop.f32.mrf.mxu0 }
 0x593   : > { %v4681_v23 = vmax.f32 %v4257_v49, 0.0  ;;  %v4795_v43 = vpack.c.bf16 %v4683_v20, %v4682_v35  ;;  %v4278_v28 = vadd.f32 %v6713_v31, %v8751_v55 }
 0x594   : > { %v4269_v56 = vpop.f32.mrf.mxu0 }
 0x595   : > { %v4794_v59 = vpack.c.bf16 %v4681_v23, %v4680_v52  ;;  %v4270_v37 = vadd.f32 %v8751_v55, %v4269_v56  ;;  %v4686_v60 = vmax.f32 %v4278_v28, 0.0 }
 0x596   : > { %v6714_v45 = vpop.f32.mrf.mxu0 }
 0x597   : > { %v4281_v8 = vadd.f32 %v6714_v45, %v8751_v55  ;;  %6843 = vmatprep.mubr.msk.bf16.mxu1 %vm1710_vm0, %v4794_v59  ;;  %v4684_v57 = vmax.f32 %v4270_v37, 0.0 }
 0x598   : > { %v4272_v30 = vpop.f32.mrf.mxu0  ;;  %6844 = vmatmul.mubr.msk.bf16.gmra.mxu1 %vm1710_vm0, %v4795_v43 }
 0x599   : > { %v4273_v7 = vadd.f32 %v8751_v55, %v4272_v30  ;;  %v4687_v47 = vmax.f32 %v4281_v8, 0.0 }
 0x59a   : > { %v6717_v54 = vpop.f32.mrf.mxu0 }
 0x59b   : > { %v4685_v58 = vmax.f32 %v4273_v7, 0.0  ;;  %v4797_v4 = vpack.c.bf16 %v4687_v47, %v4686_v60  ;;  %v4294_v40 = vadd.f32 %v6717_v54, %v8751_v55 }
 0x59c   : > { %v4285_v61 = vpop.f32.mrf.mxu0 }
 0x59d   : > { %v4796_v26 = vpack.c.bf16 %v4685_v58, %v4684_v57  ;;  %v4286_v29 = vadd.f32 %v8751_v55, %v4285_v61  ;;  %v4690_v36 = vmax.f32 %v4294_v40, 0.0 }
 0x59e   : > { %v6718_v27 = vpop.f32.mrf.mxu0 }
 0x59f   : > { %v4297_v32 = vadd.f32 %v6718_v27, %v8751_v55  ;;  %6847 = vmatprep.mubr.msk.bf16.mxu1 %vm1710_vm0, %v4796_v26  ;;  %v4688_v50 = vmax.f32 %v4286_v29, 0.0 }
 0x5a0   : > { %v4288_v19 = vpop.f32.mrf.mxu0  ;;  %6848 = vmatmul.mubr.msk.bf16.gmra.mxu1 %vm1710_vm0, %v4797_v4 }
 0x5a1   : > { %v4289_v53 = vadd.f32 %v8751_v55, %v4288_v19  ;;  %v4691_v42 = vmax.f32 %v4297_v32, 0.0 }
 0x5a2   : > { %v6721_v11 = vpop.f32.mrf.mxu0 }
 0x5a3   : > { %v4689_v63 = vmax.f32 %v4289_v53, 0.0  ;;  %v4799_v15 = vpack.c.bf16 %v4691_v42, %v4690_v36  ;;  %v4310_v9 = vadd.f32 %v6721_v11, %v8751_v55 }
 0x5a4   : > { %v4301_v14 = vpop.f32.mrf.mxu0 }
 0x5a5   : > { %v4798_v5 = vpack.c.bf16 %v4689_v63, %v4688_v50  ;;  %v4302_v38 = vadd.f32 %v8751_v55, %v4301_v14  ;;  %v4694_v41 = vmax.f32 %v4310_v9, 0.0 }
 0x5a6   : > { %v6722_v2 = vpop.f32.mrf.mxu0 }
 0x5a7   : > { %v4313_v6 = vadd.f32 %v6722_v2, %v8751_v55  ;;  %6851 = vmatprep.mubr.msk.bf16.mxu1 %vm1710_vm0, %v4798_v5  ;;  %v4692_v1 = vmax.f32 %v4302_v38, 0.0 }
 0x5a8   : > { %v4304_v46 = vpop.f32.mrf.mxu0  ;;  %6852 = vmatmul.mubr.msk.bf16.gmra.mxu1 %vm1710_vm0, %v4799_v15 }
 0x5a9   : > { %v4305_v17 = vadd.f32 %v8751_v55, %v4304_v46  ;;  %v4695_v0 = vmax.f32 %v4313_v6, 0.0 }
 0x5aa   : > { %v6725_v24 = vpop.f32.mrf.mxu0 }
 0x5ab   : > { %v4693_v3 = vmax.f32 %v4305_v17, 0.0  ;;  %v4801_v18 = vpack.c.bf16 %v4695_v0, %v4694_v41  ;;  %v4326_v33 = vadd.f32 %v6725_v24, %v8751_v55 }
 0x5ac   : > { %v4317_v10 = vpop.f32.mrf.mxu0 }
 0x5ad   : > { %v4800_v51 = vpack.c.bf16 %v4693_v3, %v4692_v1  ;;  %v4318_v44 = vadd.f32 %v8751_v55, %v4317_v10  ;;  %v4698_v48 = vmax.f32 %v4326_v33, 0.0 }
 0x5ae   : > { %v6726_v25 = vpop.f32.mrf.mxu0 }
 0x5af   : > { %v4329_v39 = vadd.f32 %v6726_v25, %v8751_v55  ;;  %6855 = vmatprep.mubr.msk.bf16.mxu1 %vm1710_vm0, %v4800_v51  ;;  %v4696_v16 = vmax.f32 %v4318_v44, 0.0 }
 0x5b0   : > { %v4320_v21 = vpop.f32.mrf.mxu0  ;;  %6856 = vmatmul.mubr.msk.bf16.gmra.mxu1 %vm1710_vm0, %v4801_v18 }
 0x5b1   : > { %v4321_v22 = vadd.f32 %v8751_v55, %v4320_v21  ;;  %v4699_v62 = vmax.f32 %v4329_v39, 0.0 }
 0x5b2   : > { %v6729_v13 = vpop.f32.mrf.mxu0 }
 0x5b3   : > { %v4697_v12 = vmax.f32 %v4321_v22, 0.0  ;;  %v4803_v20 = vpack.c.bf16 %v4699_v62, %v4698_v48  ;;  %v4342_v35 = vadd.f32 %v6729_v13, %v8751_v55 }
 0x5b4   : > { %v4333_v34 = vpop.f32.mrf.mxu0 }
 0x5b5   : > { %v4802_v49 = vpack.c.bf16 %v4697_v12, %v4696_v16  ;;  %v4334_v52 = vadd.f32 %v8751_v55, %v4333_v34  ;;  %v4702_v28 = vmax.f32 %v4342_v35, 0.0 }
 0x5b6   : > { %v6730_v31 = vpop.f32.mrf.mxu0 }
 0x5b7   : > { %v4345_v23 = vadd.f32 %v6730_v31, %v8751_v55  ;;  %6859 = vmatprep.mubr.msk.bf16.mxu1 %vm1710_vm0, %v4802_v49  ;;  %v4700_v37 = vmax.f32 %v4334_v52, 0.0 }
 0x5b8   : > { %v4336_v56 = vpop.f32.mrf.mxu0  ;;  %6860 = vmatmul.mubr.msk.bf16.gmra.mxu1 %vm1710_vm0, %v4803_v20 }
 0x5b9   : > { %v4337_v59 = vadd.f32 %v8751_v55, %v4336_v56  ;;  %v4703_v43 = vmax.f32 %v4345_v23, 0.0 }
 0x5ba   : > { %v6733_v45 = vpop.f32.mrf.mxu0 }
 0x5bb   : > { %v4701_v8 = vmax.f32 %v4337_v59, 0.0  ;;  %v4805_v47 = vpack.c.bf16 %v4703_v43, %v4702_v28  ;;  %v4358_v60 = vadd.f32 %v6733_v45, %v8751_v55 }
 0x5bc   : > { %v4349_v30 = vpop.f32.mrf.mxu0 }
 0x5bd   : > { %v4804_v7 = vpack.c.bf16 %v4701_v8, %v4700_v37  ;;  %v4350_v57 = vadd.f32 %v8751_v55, %v4349_v30  ;;  %v4706_v40 = vmax.f32 %v4358_v60, 0.0 }
 0x5be   : > { %v6734_v54 = vpop.f32.mrf.mxu0 }
 0x5bf   : > { %v4361_v58 = vadd.f32 %v6734_v54, %v8751_v55  ;;  %6863 = vmatprep.mubr.msk.bf16.mxu1 %vm1710_vm0, %v4804_v7  ;;  %v4704_v29 = vmax.f32 %v4350_v57, 0.0 }
 0x5c0   : > { %v4352_v61 = vpop.f32.mrf.mxu0  ;;  %6864 = vmatmul.mubr.msk.bf16.gmra.mxu1 %vm1710_vm0, %v4805_v47 }
 0x5c1   : > { %v4353_v26 = vadd.f32 %v8751_v55, %v4352_v61  ;;  %v4707_v4 = vmax.f32 %v4361_v58, 0.0 }
 0x5c2   : > { %v6737_v27 = vpop.f32.mrf.mxu0 }
 0x5c3   : > { %v4705_v32 = vmax.f32 %v4353_v26, 0.0  ;;  %v4807_v42 = vpack.c.bf16 %v4707_v4, %v4706_v40  ;;  %v4374_v36 = vadd.f32 %v6737_v27, %v8751_v55 }
 0x5c4   : > { %v4365_v19 = vpop.f32.mrf.mxu0 }
 0x5c5   : > { %v4806_v53 = vpack.c.bf16 %v4705_v32, %v4704_v29  ;;  %v4366_v50 = vadd.f32 %v8751_v55, %v4365_v19  ;;  %v4710_v9 = vmax.f32 %v4374_v36, 0.0 }
 0x5c6   : > { %v6738_v11 = vpop.f32.mrf.mxu0 }
 0x5c7   : > { %v4377_v63 = vadd.f32 %v6738_v11, %v8751_v55  ;;  %6867 = vmatprep.mubr.msk.bf16.mxu1 %vm1710_vm0, %v4806_v53  ;;  %v4708_v38 = vmax.f32 %v4366_v50, 0.0 }
 0x5c8   : > { %v4368_v14 = vpop.f32.mrf.mxu0  ;;  %6868 = vmatmul.mubr.msk.bf16.gmra.mxu1 %vm1710_vm0, %v4807_v42 }
 0x5c9   : > { %v4369_v5 = vadd.f32 %v8751_v55, %v4368_v14  ;;  %v4711_v15 = vmax.f32 %v4377_v63, 0.0 }
 0x5ca   : > { %v6741_v2 = vpop.f32.mrf.mxu0 }
 0x5cb   : > { %v4709_v6 = vmax.f32 %v4369_v5, 0.0  ;;  %v4809_v0 = vpack.c.bf16 %v4711_v15, %v4710_v9  ;;  %v4390_v41 = vadd.f32 %v6741_v2, %v8751_v55 }
 0x5cc   : > { %v4381_v46 = vpop.f32.mrf.mxu0 }
 0x5cd   : > { %v4808_v17 = vpack.c.bf16 %v4709_v6, %v4708_v38  ;;  %v4382_v1 = vadd.f32 %v8751_v55, %v4381_v46  ;;  %v4714_v33 = vmax.f32 %v4390_v41, 0.0 }
 0x5ce   : > { %v6742_v24 = vpop.f32.mrf.mxu0 }
 0x5cf   : > { %v4393_v3 = vadd.f32 %v6742_v24, %v8751_v55  ;;  %6871 = vmatprep.mubr.msk.bf16.mxu1 %vm1710_vm0, %v4808_v17  ;;  %v4712_v44 = vmax.f32 %v4382_v1, 0.0 }
 0x5d0   : > { %v4384_v10 = vpop.f32.mrf.mxu0  ;;  %6872 = vmatmul.mubr.msk.bf16.gmra.mxu1 %vm1710_vm0, %v4809_v0 }
 0x5d1   : > { %v4385_v51 = vadd.f32 %v8751_v55, %v4384_v10  ;;  %v4715_v18 = vmax.f32 %v4393_v3, 0.0 }
 0x5d2   : > { %v6745_v25 = vpop.f32.mrf.mxu0 }
 0x5d3   : > { %v4713_v39 = vmax.f32 %v4385_v51, 0.0  ;;  %v4811_v62 = vpack.c.bf16 %v4715_v18, %v4714_v33  ;;  %v4406_v48 = vadd.f32 %v6745_v25, %v8751_v55 }
 0x5d4   : > { %v4397_v21 = vpop.f32.mrf.mxu0 }
 0x5d5   : > { %v4810_v22 = vpack.c.bf16 %v4713_v39, %v4712_v44  ;;  %v4398_v16 = vadd.f32 %v8751_v55, %v4397_v21  ;;  %v4718_v35 = vmax.f32 %v4406_v48, 0.0 }
 0x5d6   : > { %v6746_v13 = vpop.f32.mrf.mxu0 }
 0x5d7   : > { %v4409_v12 = vadd.f32 %v6746_v13, %v8751_v55  ;;  %6875 = vmatprep.mubr.msk.bf16.mxu1 %vm1710_vm0, %v4810_v22  ;;  %v4716_v52 = vmax.f32 %v4398_v16, 0.0 }
 0x5d8   : > { %v4400_v34 = vpop.f32.mrf.mxu0  ;;  %6876 = vmatmul.mubr.msk.bf16.gmra.mxu1 %vm1710_vm0, %v4811_v62 }
 0x5d9   : > { %v4401_v49 = vadd.f32 %v8751_v55, %v4400_v34  ;;  %v4719_v20 = vmax.f32 %v4409_v12, 0.0 }
 0x5da   : > { %v6749_v31 = vpop.f32.mrf.mxu0 }
 0x5db   : > { %v4717_v23 = vmax.f32 %v4401_v49, 0.0  ;;  %v4813_v43 = vpack.c.bf16 %v4719_v20, %v4718_v35  ;;  %v4422_v28 = vadd.f32 %v6749_v31, %v8751_v55 }
 0x5dc   : > { %v4413_v56 = vpop.f32.mrf.mxu0 }
 0x5dd   : > { %v4812_v59 = vpack.c.bf16 %v4717_v23, %v4716_v52  ;;  %v4414_v37 = vadd.f32 %v8751_v55, %v4413_v56  ;;  %v4722_v60 = vmax.f32 %v4422_v28, 0.0  ;;  %v8966_v52 = vld [vmem:[#allocation19] ss:$0 sm:$0xff] }
 0x5de   : > { %v6750_v45 = vpop.f32.mrf.mxu0 }
 0x5df   : > { %v4425_v8 = vadd.f32 %v6750_v45, %v8751_v55  ;;  %6879 = vmatprep.mubr.msk.bf16.mxu1 %vm1710_vm0, %v4812_v59  ;;  %v4720_v57 = vmax.f32 %v4414_v37, 0.0 }
 0x5e0   : > { %v4416_v30 = vpop.f32.mrf.mxu0  ;;  %6880 = vmatmul.mubr.msk.bf16.gmra.mxu1 %vm1710_vm0, %v4813_v43 }
 0x5e1   : > { %v4417_v7 = vadd.f32 %v8751_v55, %v4416_v30  ;;  %v4723_v47 = vmax.f32 %v4425_v8, 0.0 }
 0x5e2   : > { %v6753_v54 = vpop.f32.mrf.mxu0 }
 0x5e3   : > { %v4721_v58 = vmax.f32 %v4417_v7, 0.0  ;;  %v4815_v4 = vpack.c.bf16 %v4723_v47, %v4722_v60  ;;  %v4438_v40 = vadd.f32 %v6753_v54, %v8751_v55  ;;  %v8978_v60 = vld [vmem:[#allocation22] ss:$0 sm:$0xff] }
 0x5e4   : > { %v4429_v61 = vpop.f32.mrf.mxu0 }
 0x5e5   : > { %v4814_v26 = vpack.c.bf16 %v4721_v58, %v4720_v57  ;;  %v4430_v29 = vadd.f32 %v8751_v55, %v4429_v61  ;;  %v4726_v36 = vmax.f32 %v4438_v40, 0.0 }
 0x5e6   : > { %v6754_v27 = vpop.f32.mrf.mxu0 }
 0x5e7   : > { %v4441_v32 = vadd.f32 %v6754_v27, %v8751_v55  ;;  %6883 = vmatprep.mubr.msk.bf16.mxu1 %vm1710_vm0, %v4814_v26  ;;  %v4724_v50 = vmax.f32 %v4430_v29, 0.0 }
 0x5e8   : > { %v4432_v19 = vpop.f32.mrf.mxu0  ;;  %6884 = vmatmul.mubr.msk.bf16.gmra.mxu1 %vm1710_vm0, %v4815_v4 }
 0x5e9   : > { %v4433_v53 = vadd.f32 %v8751_v55, %v4432_v19  ;;  %v4727_v42 = vmax.f32 %v4441_v32, 0.0 }
 0x5ea   : > { %v6757_v11 = vpop.f32.mrf.mxu0 }
 0x5eb   : > { %v4725_v63 = vmax.f32 %v4433_v53, 0.0  ;;  %v4817_v15 = vpack.c.bf16 %v4727_v42, %v4726_v36  ;;  %v4454_v9 = vadd.f32 %v6757_v11, %v8751_v55 }
 0x5ec   : > { %v4445_v14 = vpop.f32.mrf.mxu0 }
 0x5ed   : > { %v4816_v5 = vpack.c.bf16 %v4725_v63, %v4724_v50  ;;  %v4446_v38 = vadd.f32 %v8751_v55, %v4445_v14  ;;  %v4730_v41 = vmax.f32 %v4454_v9, 0.0 }
 0x5ee   : > { %v6758_v2 = vpop.f32.mrf.mxu0 }
 0x5ef   : > { %v4457_v6 = vadd.f32 %v6758_v2, %v8751_v55  ;;  %6887 = vmatprep.mubr.msk.bf16.mxu1 %vm1710_vm0, %v4816_v5  ;;  %v4728_v1 = vmax.f32 %v4446_v38, 0.0 }
 0x5f0   : > { %v4448_v46 = vpop.f32.mrf.mxu0  ;;  %6888 = vmatmul.mubr.msk.bf16.gmra.mxu1 %vm1710_vm0, %v4817_v15 }
 0x5f1   : > { %v4449_v17 = vadd.f32 %v8751_v55, %v4448_v46  ;;  %v4731_v0 = vmax.f32 %v4457_v6, 0.0 }
 0x5f2   : > { %v6761_v24 = vpop.f32.mrf.mxu0 }
 0x5f3   : > { %v4729_v3 = vmax.f32 %v4449_v17, 0.0  ;;  %v4819_v18 = vpack.c.bf16 %v4731_v0, %v4730_v41  ;;  %v4470_v33 = vadd.f32 %v6761_v24, %v8751_v55 }
 0x5f4   : > { %v4461_v10 = vpop.f32.mrf.mxu0 }
 0x5f5   : > { %v4818_v51 = vpack.c.bf16 %v4729_v3, %v4728_v1  ;;  %v4462_v44 = vadd.f32 %v8751_v55, %v4461_v10  ;;  %v4734_v48 = vmax.f32 %v4470_v33, 0.0 }
 0x5f6   : > { %v6762_v25 = vpop.f32.mrf.mxu0 }
 0x5f7   : > { %v4473_v39 = vadd.f32 %v6762_v25, %v8751_v55  ;;  %6891 = vmatprep.mubr.msk.bf16.mxu1 %vm1710_vm0, %v4818_v51  ;;  %v4732_v16 = vmax.f32 %v4462_v44, 0.0 }
 0x5f8   : > { %v4464_v21 = vpop.f32.mrf.mxu0  ;;  %6892 = vmatmul.mubr.msk.bf16.gmra.mxu1 %vm1710_vm0, %v4819_v18 }
 0x5f9   : > { %v4465_v22 = vadd.f32 %v8751_v55, %v4464_v21  ;;  %v4735_v62 = vmax.f32 %v4473_v39, 0.0 }
 0x5fa   : > { %v6765_v13 = vpop.f32.mrf.mxu0 }
 0x5fb   : > { %v4733_v12 = vmax.f32 %v4465_v22, 0.0  ;;  %v4821_v20 = vpack.c.bf16 %v4735_v62, %v4734_v48  ;;  %v4486_v55 = vadd.f32 %v8966_v52, %v6765_v13 }
 0x5fc   : > { %v4477_v34 = vpop.f32.mrf.mxu0 }
 0x5fd   : > { %v4820_v49 = vpack.c.bf16 %v4733_v12, %v4732_v16  ;;  %v4478_v23 = vadd.f32 %v8966_v52, %v4477_v34  ;;  %v4738_v28 = vmax.f32 %v4486_v55, 0.0 }
 0x5fe   : > { %v6766_v31 = vpop.f32.mrf.mxu0 }
 0x5ff   : > { %v4489_v35 = vadd.f32 %v8966_v52, %v6766_v31  ;;  %6895 = vmatprep.mubr.msk.bf16.mxu1 %vm1710_vm0, %v4820_v49  ;;  %v4736_v37 = vmax.f32 %v4478_v23, 0.0 }
 0x600   : > { %v4480_v56 = vpop.f32.mrf.mxu0  ;;  %6896 = vmatmul.mubr.msk.bf16.gmra.mxu1 %vm1710_vm0, %v4821_v20 }
 0x601   : > { %v4481_v59 = vadd.f32 %v8966_v52, %v4480_v56  ;;  %v4739_v43 = vmax.f32 %v4489_v35, 0.0 }
 0x602   : > { %v6769_v45 = vpop.f32.mrf.mxu0 }
 0x603   : > { %v4737_v8 = vmax.f32 %v4481_v59, 0.0  ;;  %v4823_v47 = vpack.c.bf16 %v4739_v43, %v4738_v28  ;;  %v4502_v61 = vadd.f32 %v8966_v52, %v6769_v45 }
 0x604   : > { %v4493_v30 = vpop.f32.mrf.mxu0 }
 0x605   : > { %v4822_v7 = vpack.c.bf16 %v4737_v8, %v4736_v37  ;;  %v4494_v57 = vadd.f32 %v8966_v52, %v4493_v30  ;;  %v4742_v11 = vmax.f32 %v4502_v61, 0.0 }
 0x606   : > { %v6770_v54 = vpop.f32.mrf.mxu0 }
 0x607   : > { %v4505_v58 = vadd.f32 %v8966_v52, %v6770_v54  ;;  %6899 = vmatprep.mubr.msk.bf16.mxu1 %vm1710_vm0, %v4822_v7  ;;  %v4740_v19 = vmax.f32 %v4494_v57, 0.0 }
 0x608   : > { %v4496_v26 = vpop.f32.mrf.mxu0  ;;  %6900 = vmatmul.mubr.msk.bf16.gmra.mxu1 %vm1710_vm0, %v4823_v47 }
 0x609   : > { %v4497_v4 = vadd.f32 %v8966_v52, %v4496_v26  ;;  %v4743_v29 = vmax.f32 %v4505_v58, 0.0 }
 0x60a   : > { %v6773_v32 = vpop.f32.mrf.mxu0 }
 0x60b   : > { %v4741_v53 = vmax.f32 %v4497_v4, 0.0  ;;  %v4825_v5 = vpack.c.bf16 %v4743_v29, %v4742_v11  ;;  %v4518_v46 = vadd.f32 %v8966_v52, %v6773_v32 }
 0x60c   : > { %v4509_v50 = vpop.f32.mrf.mxu0 }
 0x60d   : > { %v4824_v36 = vpack.c.bf16 %v4741_v53, %v4740_v19  ;;  %v4510_v38 = vadd.f32 %v8966_v52, %v4509_v50  ;;  %v4746_v51 = vmax.f32 %v4518_v46, 0.0 }
 0x60e   : > { %v6774_v15 = vpop.f32.mrf.mxu0 }
 0x60f   : > { %v4521_v6 = vadd.f32 %v8966_v52, %v6774_v15  ;;  %6903 = vmatprep.mubr.msk.bf16.mxu1 %vm1710_vm0, %v4824_v36  ;;  %v4744_v41 = vmax.f32 %v4510_v38, 0.0 }
 0x610   : > { %v4512_v17 = vpop.f32.mrf.mxu0  ;;  %6904 = vmatmul.mubr.msk.bf16.gmra.mxu1 %vm1710_vm0, %v4825_v5 }
 0x611   : > { %v4513_v24 = vadd.f32 %v8966_v52, %v4512_v17  ;;  %v4747_v1 = vmax.f32 %v4521_v6, 0.0 }
 0x613   : > { %v4745_v10 = vmax.f32 %v4513_v24, 0.0  ;;  %v4827_v44 = vpack.c.bf16 %v4747_v1, %v4746_v51 }
 0x615   : > { %v6777_v3 = vpop.f32.mrf.mxu0  ;;  %v4826_v25 = vpack.c.bf16 %v4745_v10, %v4744_v41 }
 0x616   : > { %v4534_v13 = vadd.f32 %v8966_v52, %v6777_v3 }
 0x617   : > { %v4525_v18 = vpop.f32.mrf.mxu0  ;;  %6907 = vmatprep.mubr.msk.bf16.mxu1 %vm1710_vm0, %v4826_v25 }
 0x618   : > { %v4526_v21 = vadd.f32 %v8966_v52, %v4525_v18  ;;  %6908 = vmatmul.mubr.msk.bf16.gmra.mxu1 %vm1710_vm0, %v4827_v44  ;;  %v4750_v56 = vmax.f32 %v4534_v13, 0.0 }
 0x619   : > { %v6778_v39 = vpop.f32.mrf.mxu0 }
 0x61a   : > { %v4537_v22 = vadd.f32 %v8966_v52, %v6778_v39  ;;  %v4748_v23 = vmax.f32 %v4526_v21, 0.0 }
 0x61b   : > { %v4528_v16 = vpop.f32.mrf.mxu0 }
 0x61c   : > { %v4529_v48 = vadd.f32 %v8966_v52, %v4528_v16  ;;  %v4751_v49 = vmax.f32 %v4537_v22, 0.0 }
 0x61e   : > { %v4749_v35 = vmax.f32 %v4529_v48, 0.0  ;;  %v4829_v8 = vpack.c.bf16 %v4751_v49, %v4750_v56 }
 0x620   : > { %v6817_v27 = vpop.f32.mrf.mxu1  ;;  %v4828_v45 = vpack.c.bf16 %v4749_v35, %v4748_v23 }
 0x621   : > { %v5118_v40 = vadd.f32 %v6817_v27, %v8978_v60 }
 0x622   : > { %v5109_v42 = vpop.f32.mrf.mxu1  ;;  %v6781_v20 = vpop.f32.mrf.mxu0  ;;  %6911 = vmatprep.mubr.msk.bf16.mxu1 %vm1710_vm0, %v4828_v45 }
 0x623   : > { %5622 = vst [vmem:[%s8984_s6 + $0x10] sm:$0xff] %v5118_v40  ;;  %v5110_v63 = vadd.f32 %v8978_v60, %v5109_v42  ;;  %v4550_v47 = vadd.f32 %v8966_v52, %v6781_v20  ;;  %6912 = vmatmul.mubr.msk.bf16.gmra.mxu1 %vm1710_vm0, %v4829_v8 }
 0x624   : > { %v6818_v14 = vpop.f32.mrf.mxu1  ;;  %v4541_v59 = vpop.f32.mrf.mxu0 }
 0x625   : > { %5620 = vst [vmem:[%s8984_s6] sm:$0xff] %v5110_v63  ;;  %v5121_v2 = vadd.f32 %v6818_v14, %v8978_v60  ;;  %v4542_v30 = vadd.f32 %v8966_v52, %v4541_v59  ;;  %v4754_v27 = vmax.f32 %v4550_v47, 0.0 }
 0x626   : > { %v5112_v9 = vpop.f32.mrf.mxu1  ;;  %v6782_v28 = vpop.f32.mrf.mxu0 }
 0x627   : > { %5623 = vst [vmem:[%s8984_s6 + $0x18] sm:$0xff] %v5121_v2  ;;  %v5113_v0 = vadd.f32 %v8978_v60, %v5112_v9  ;;  %v4553_v7 = vadd.f32 %v8966_v52, %v6782_v28  ;;  %v4752_v26 = vmax.f32 %v4542_v30, 0.0 }
 0x628   : > { %v6821_v33 = vpop.f32.mrf.mxu1  ;;  %v4544_v54 = vpop.f32.mrf.mxu0 }
 0x629   : > { %5621 = vst [vmem:[%s8984_s6 + $0x8] sm:$0xff] %v5113_v0  ;;  %v5134_v62 = vadd.f32 %v6821_v33, %v8978_v60  ;;  %v4545_v57 = vadd.f32 %v8966_v52, %v4544_v54  ;;  %v4755_v58 = vmax.f32 %v4553_v7, 0.0 }
 0x62a   : > { %v5125_v12 = vpop.f32.mrf.mxu1  ;;  %v6785_v61 = vpop.f32.mrf.mxu0 }
 0x62b   : > { %5626 = vst [vmem:[%s8984_s6 + $0x30] sm:$0xff] %v5134_v62  ;;  %v5126_v34 = vadd.f32 %v8978_v60, %v5125_v12  ;;  %v4753_v4 = vmax.f32 %v4545_v57, 0.0  ;;  %v4831_v19 = vpack.c.bf16 %v4755_v58, %v4754_v27  ;;  %v4566_v36 = vadd.f32 %v8966_v52, %v6785_v61 }
 0x62c   : > { %v6822_v31 = vpop.f32.mrf.mxu1  ;;  %v4557_v29 = vpop.f32.mrf.mxu0 }
 0x62d   : > { %5624 = vst [vmem:[%s8984_s6 + $0x20] sm:$0xff] %v5126_v34  ;;  %v5137_v55 = vadd.f32 %v6822_v31, %v8978_v60  ;;  %v4830_v32 = vpack.c.bf16 %v4753_v4, %v4752_v26  ;;  %v4558_v11 = vadd.f32 %v8966_v52, %v4557_v29  ;;  %v4758_v24 = vmax.f32 %v4566_v36, 0.0 }
 0x62e   : > { %v5128_v43 = vpop.f32.mrf.mxu1  ;;  %v6786_v53 = vpop.f32.mrf.mxu0 }
 0x62f   : > { %5627 = vst [vmem:[%s8984_s6 + $0x38] sm:$0xff] %v5137_v55  ;;  %v5129_v37 = vadd.f32 %v8978_v60, %v5128_v43  ;;  %v4569_v50 = vadd.f32 %v8966_v52, %v6786_v53  ;;  %6915 = vmatprep.mubr.msk.bf16.mxu1 %vm1710_vm0, %v4830_v32  ;;  %v4756_v46 = vmax.f32 %v4558_v11, 0.0 }
 0x630   : > { %v6825_v40 = vpop.f32.mrf.mxu1  ;;  %v4560_v14 = vpop.f32.mrf.mxu0  ;;  %6916 = vmatmul.mubr.msk.bf16.gmra.mxu1 %vm1710_vm0, %v4831_v19 }
 0x631   : > { %5625 = vst [vmem:[%s8984_s6 + $0x28] sm:$0xff] %v5129_v37  ;;  %v5150_v42 = vadd.f32 %v6825_v40, %v8978_v60  ;;  %v4561_v15 = vadd.f32 %v8966_v52, %v4560_v14  ;;  %v4759_v38 = vmax.f32 %v4569_v50, 0.0 }
 0x632   : > { %v5141_v63 = vpop.f32.mrf.mxu1  ;;  %v6789_v6 = vpop.f32.mrf.mxu0 }
 0x633   : > { %5630 = vst [vmem:[%s8984_s6 + $0x50] sm:$0xff] %v5150_v42  ;;  %v5142_v5 = vadd.f32 %v8978_v60, %v5141_v63  ;;  %v4757_v17 = vmax.f32 %v4561_v15, 0.0  ;;  %v4833_v10 = vpack.c.bf16 %v4759_v38, %v4758_v24  ;;  %v4582_v39 = vadd.f32 %v8966_v52, %v6789_v6 }
 0x634   : > { %v6826_v2 = vpop.f32.mrf.mxu1  ;;  %v4573_v1 = vpop.f32.mrf.mxu0 }
 0x635   : > { %5628 = vst [vmem:[%s8984_s6 + $0x40] sm:$0xff] %v5142_v5  ;;  %v5153_v9 = vadd.f32 %v6826_v2, %v8978_v60  ;;  %v4832_v41 = vpack.c.bf16 %v4757_v17, %v4756_v46  ;;  %v4574_v18 = vadd.f32 %v8966_v52, %v4573_v1  ;;  %v4762_v20 = vmax.f32 %v4582_v39, 0.0 }
 0x636   : > { %v5144_v0 = vpop.f32.mrf.mxu1  ;;  %v6790_v51 = vpop.f32.mrf.mxu0 }
 0x637   : > { %5631 = vst [vmem:[%s8984_s6 + $0x58] sm:$0xff] %v5153_v9  ;;  %v5145_v3 = vadd.f32 %v8978_v60, %v5144_v0  ;;  %v4585_v25 = vadd.f32 %v8966_v52, %v6790_v51  ;;  %6919 = vmatprep.mubr.msk.bf16.mxu1 %vm1710_vm0, %v4832_v41  ;;  %v4760_v48 = vmax.f32 %v4574_v18, 0.0 }
 0x638   : > { %v6829_v44 = vpop.f32.mrf.mxu1  ;;  %v4576_v33 = vpop.f32.mrf.mxu0  ;;  %6920 = vmatmul.mubr.msk.bf16.gmra.mxu1 %vm1710_vm0, %v4833_v10 }
 0x639   : > { %5629 = vst [vmem:[%s8984_s6 + $0x48] sm:$0xff] %v5145_v3  ;;  %v5166_v21 = vadd.f32 %v6829_v44, %v8978_v60  ;;  %v4577_v22 = vadd.f32 %v8966_v52, %v4576_v33  ;;  %v4763_v13 = vmax.f32 %v4585_v25, 0.0 }
 0x63a   : > { %v5157_v62 = vpop.f32.mrf.mxu1  ;;  %v6793_v16 = vpop.f32.mrf.mxu0 }
 0x63b   : > { %5634 = vst [vmem:[%s8984_s6 + $0x70] sm:$0xff] %v5166_v21  ;;  %v5158_v12 = vadd.f32 %v8978_v60, %v5157_v62  ;;  %v4761_v34 = vmax.f32 %v4577_v22, 0.0  ;;  %v4835_v56 = vpack.c.bf16 %v4763_v13, %v4762_v20  ;;  %v4598_v8 = vadd.f32 %v8966_v52, %v6793_v16 }
 0x63c   : > { %v6830_v49 = vpop.f32.mrf.mxu1  ;;  %v4589_v31 = vpop.f32.mrf.mxu0 }
 0x63d   : > { %5632 = vst [vmem:[%s8984_s6 + $0x60] sm:$0xff] %v5158_v12  ;;  %v5169_v23 = vadd.f32 %v6830_v49, %v8978_v60  ;;  %v4834_v35 = vpack.c.bf16 %v4761_v34, %v4760_v48  ;;  %v4590_v45 = vadd.f32 %v8966_v52, %v4589_v31  ;;  %v4766_v58 = vmax.f32 %v4598_v8, 0.0 }
 0x63e   : > { %v5160_v55 = vpop.f32.mrf.mxu1  ;;  %v6794_v59 = vpop.f32.mrf.mxu0 }
 0x63f   : > { %5635 = vst [vmem:[%s8984_s6 + $0x78] sm:$0xff] %v5169_v23  ;;  %v5161_v43 = vadd.f32 %v8978_v60, %v5160_v55  ;;  %v4601_v37 = vadd.f32 %v8966_v52, %v6794_v59  ;;  %6923 = vmatprep.mubr.msk.bf16.mxu1 %vm1710_vm0, %v4834_v35  ;;  %v4764_v54 = vmax.f32 %v4590_v45, 0.0 }
 0x640   : > { %v4592_v28 = vpop.f32.mrf.mxu0  ;;  %6924 = vmatmul.mubr.msk.bf16.gmra.mxu1 %vm1710_vm0, %v4835_v56  ;;  %v6833_v29 = vpop.f32.mrf.mxu1 }
 0x641   : > { %5633 = vst [vmem:[%s8984_s6 + $0x68] sm:$0xff] %v5161_v43  ;;  %v4593_v30 = vadd.f32 %v8966_v52, %v4592_v28  ;;  %v4767_v7 = vmax.f32 %v4601_v37, 0.0  ;;  %v5182_v19 = vadd.f32 %v6833_v29, %v8978_v60 }
 0x642   : > { %v6797_v47 = vpop.f32.mrf.mxu0  ;;  %v5173_v11 = vpop.f32.mrf.mxu1 }
 0x643   : > { %v4765_v57 = vmax.f32 %v4593_v30, 0.0  ;;  %v4837_v4 = vpack.c.bf16 %v4767_v7, %v4766_v58  ;;  %v4614_v53 = vadd.f32 %v8966_v52, %v6797_v47  ;;  %5638 = vst [vmem:[%s8984_s6 + $0x90] sm:$0xff] %v5182_v19  ;;  %v5174_v63 = vadd.f32 %v8978_v60, %v5173_v11 }
 0x644   : > { %v4605_v61 = vpop.f32.mrf.mxu0  ;;  %v6834_v5 = vpop.f32.mrf.mxu1 }
 0x645   : > { %v4836_v26 = vpack.c.bf16 %v4765_v57, %v4764_v54  ;;  %v4606_v32 = vadd.f32 %v8966_v52, %v4605_v61  ;;  %5636 = vst [vmem:[%s8984_s6 + $0x80] sm:$0xff] %v5174_v63  ;;  %v5185_v38 = vadd.f32 %v6834_v5, %v8978_v60  ;;  %v4770_v6 = vmax.f32 %v4614_v53, 0.0 }
 0x646   : > { %v6798_v27 = vpop.f32.mrf.mxu0  ;;  %v5176_v46 = vpop.f32.mrf.mxu1 }
 0x647   : > { %v4617_v40 = vadd.f32 %v8966_v52, %v6798_v27  ;;  %6927 = vmatprep.mubr.msk.bf16.mxu1 %vm1710_vm0, %v4836_v26  ;;  %v4768_v15 = vmax.f32 %v4606_v32, 0.0  ;;  %5639 = vst [vmem:[%s8984_s6 + $0x98] sm:$0xff] %v5185_v38  ;;  %v5177_v0 = vadd.f32 %v8978_v60, %v5176_v46 }
 0x648   : > { %v4608_v42 = vpop.f32.mrf.mxu0  ;;  %6928 = vmatmul.mubr.msk.bf16.gmra.mxu1 %vm1710_vm0, %v4837_v4  ;;  %v6837_v18 = vpop.f32.mrf.mxu1 }
 0x649   : > { %v4609_v50 = vadd.f32 %v8966_v52, %v4608_v42  ;;  %v4771_v36 = vmax.f32 %v4617_v40, 0.0  ;;  %5637 = vst [vmem:[%s8984_s6 + $0x88] sm:$0xff] %v5177_v0  ;;  %v5198_v44 = vadd.f32 %v6837_v18, %v8978_v60 }
 0x64a   : > { %v6801_v14 = vpop.f32.mrf.mxu0  ;;  %v5189_v21 = vpop.f32.mrf.mxu1 }
 0x64b   : > { %v4769_v2 = vmax.f32 %v4609_v50, 0.0  ;;  %v4839_v24 = vpack.c.bf16 %v4771_v36, %v4770_v6  ;;  %v4630_v10 = vadd.f32 %v8966_v52, %v6801_v14  ;;  %5642 = vst [vmem:[%s8984_s6 + $0xb0] sm:$0xff] %v5198_v44  ;;  %v5190_v13 = vadd.f32 %v8978_v60, %v5189_v21 }
 0x64c   : > { %v4621_v9 = vpop.f32.mrf.mxu0  ;;  %v6838_v48 = vpop.f32.mrf.mxu1 }
 0x64d   : > { %v4838_v17 = vpack.c.bf16 %v4769_v2, %v4768_v15  ;;  %v4622_v3 = vadd.f32 %v8966_v52, %v4621_v9  ;;  %v4774_v16 = vmax.f32 %v4630_v10, 0.0  ;;  %5640 = vst [vmem:[%s8984_s6 + $0xa0] sm:$0xff] %v5190_v13  ;;  %v5201_v49 = vadd.f32 %v6838_v48, %v8978_v60 }
 0x64e   : > { %v6802_v1 = vpop.f32.mrf.mxu0  ;;  %v5192_v23 = vpop.f32.mrf.mxu1 }
 0x64f   : > { %v4633_v41 = vadd.f32 %v8966_v52, %v6802_v1  ;;  %6931 = vmatprep.mubr.msk.bf16.mxu1 %vm1710_vm0, %v4838_v17  ;;  %v4772_v22 = vmax.f32 %v4622_v3, 0.0  ;;  %5643 = vst [vmem:[%s8984_s6 + $0xb8] sm:$0xff] %v5201_v49  ;;  %v5193_v56 = vadd.f32 %v8978_v60, %v5192_v23 }
 0x650   : > { %v4624_v51 = vpop.f32.mrf.mxu0  ;;  %6932 = vmatmul.mubr.msk.bf16.gmra.mxu1 %vm1710_vm0, %v4839_v24  ;;  %v6841_v45 = vpop.f32.mrf.mxu1 }
 0x651   : > { %v4625_v25 = vadd.f32 %v8966_v52, %v4624_v51  ;;  %v4775_v39 = vmax.f32 %v4633_v41, 0.0  ;;  %5641 = vst [vmem:[%s8984_s6 + $0xa8] sm:$0xff] %v5193_v56  ;;  %v5214_v8 = vadd.f32 %v6841_v45, %v8978_v60 }
 0x652   : > { %v6805_v33 = vpop.f32.mrf.mxu0  ;;  %v5205_v30 = vpop.f32.mrf.mxu1 }
 0x653   : > { %v4773_v62 = vmax.f32 %v4625_v25, 0.0  ;;  %v4841_v20 = vpack.c.bf16 %v4775_v39, %v4774_v16  ;;  %v4646_v59 = vadd.f32 %v8966_v52, %v6805_v33  ;;  %5646 = vst [vmem:[%s8984_s6 + $0xd0] sm:$0xff] %v5214_v8  ;;  %v5206_v54 = vadd.f32 %v8978_v60, %v5205_v30 }
 0x654   : > { %v4637_v12 = vpop.f32.mrf.mxu0  ;;  %v6842_v58 = vpop.f32.mrf.mxu1 }
 0x655   : > { %v4840_v34 = vpack.c.bf16 %v4773_v62, %v4772_v22  ;;  %v4638_v35 = vadd.f32 %v8966_v52, %v4637_v12  ;;  %v4778_v57 = vmax.f32 %v4646_v59, 0.0  ;;  %5644 = vst [vmem:[%s8984_s6 + $0xc0] sm:$0xff] %v5206_v54  ;;  %v5217_v26 = vadd.f32 %v6842_v58, %v8978_v60 }
 0x656   : > { %v6806_v31 = vpop.f32.mrf.mxu0 }
 0x657   : > { %v4649_v55 = vadd.f32 %v8966_v52, %v6806_v31  ;;  %6935 = vmatprep.mubr.msk.bf16.mxu1 %vm1710_vm0, %v4840_v34  ;;  %v4776_v7 = vmax.f32 %v4638_v35, 0.0  ;;  %5647 = vst [vmem:[%s8984_s6 + $0xd8] sm:$0xff] %v5217_v26 }
 0x658   : > { %v4640_v43 = vpop.f32.mrf.mxu0  ;;  %6936 = vmatmul.mubr.msk.bf16.gmra.mxu1 %vm1710_vm0, %v4841_v20 }
 0x659   : > { %v4641_v37 = vadd.f32 %v8966_v52, %v4640_v43  ;;  %v4779_v28 = vmax.f32 %v4649_v55, 0.0  ;;  %v5208_v52 = vpop.f32.mrf.mxu1 }
 0x65a   : > { %v5209_v27 = vadd.f32 %v8978_v60, %v5208_v52 }
 0x65b   : > { %v4777_v47 = vmax.f32 %v4641_v37, 0.0  ;;  %v4843_v4 = vpack.c.bf16 %v4779_v28, %v4778_v57  ;;  %v6845_v29 = vpop.f32.mrf.mxu1 }
 0x65c   : > { %5645 = vst [vmem:[%s8984_s6 + $0xc8] sm:$0xff] %v5209_v27  ;;  %v5230_v32 = vadd.f32 %v6845_v29, %v8978_v60 }
 0x65d   : > { %v4842_v61 = vpack.c.bf16 %v4777_v47, %v4776_v7  ;;  %v5221_v40 = vpop.f32.mrf.mxu1 }
 0x65e   : > { %5650 = vst [vmem:[%s8984_s6 + $0xf0] sm:$0xff] %v5230_v32  ;;  %v5222_v19 = vadd.f32 %v8978_v60, %v5221_v40 }
 0x65f   : > { %6939 = vmatprep.mubr.msk.bf16.mxu1 %vm1710_vm0, %v4842_v61  ;;  %v6846_v53 = vpop.f32.mrf.mxu1 }
 0x660   : > { %6940 = vmatmul.mubr.msk.bf16.gmra.mxu1 %vm1710_vm0, %v4843_v4  ;;  %5648 = vst [vmem:[%s8984_s6 + $0xe0] sm:$0xff] %v5222_v19  ;;  %v5233_v42 = vadd.f32 %v6846_v53, %v8978_v60 }
 0x661   : > { %v5224_v11 = vpop.f32.mrf.mxu1 }
 0x662   : > { %5651 = vst [vmem:[%s8984_s6 + $0xf8] sm:$0xff] %v5233_v42  ;;  %v5225_v50 = vadd.f32 %v8978_v60, %v5224_v11 }
 0x663   : > { %v6849_v63 = vpop.f32.mrf.mxu1 }
 0x664   : > { %5649 = vst [vmem:[%s8984_s6 + $0xe8] sm:$0xff] %v5225_v50  ;;  %v5246_v36 = vadd.f32 %v6849_v63, %v8978_v60 }
 0x665   : > { %v5237_v14 = vpop.f32.mrf.mxu1 }
 0x666   : > { %5654 = vst [vmem:[%s8984_s6 + $0x110] sm:$0xff] %v5246_v36  ;;  %v5238_v5 = vadd.f32 %v8978_v60, %v5237_v14 }
 0x667   : > { %v6850_v15 = vpop.f32.mrf.mxu1 }
 0x668   : > { %5652 = vst [vmem:[%s8984_s6 + $0x100] sm:$0xff] %v5238_v5  ;;  %v5249_v2 = vadd.f32 %v6850_v15, %v8978_v60 }
 0x669   : > { %v5240_v38 = vpop.f32.mrf.mxu1 }
 0x66a   : > { %5655 = vst [vmem:[%s8984_s6 + $0x118] sm:$0xff] %v5249_v2  ;;  %v5241_v6 = vadd.f32 %v8978_v60, %v5240_v38 }
 0x66b   : > { %v6853_v9 = vpop.f32.mrf.mxu1 }
 0x66c   : > { %5653 = vst [vmem:[%s8984_s6 + $0x108] sm:$0xff] %v5241_v6  ;;  %v5262_v46 = vadd.f32 %v6853_v9, %v8978_v60 }
 0x66d   : > { %v5253_v17 = vpop.f32.mrf.mxu1 }
 0x66e   : > { %5658 = vst [vmem:[%s8984_s6 + $0x130] sm:$0xff] %v5262_v46  ;;  %v5254_v0 = vadd.f32 %v8978_v60, %v5253_v17 }
 0x66f   : > { %v6854_v24 = vpop.f32.mrf.mxu1 }
 0x670   : > { %5656 = vst [vmem:[%s8984_s6 + $0x120] sm:$0xff] %v5254_v0  ;;  %v5265_v1 = vadd.f32 %v6854_v24, %v8978_v60 }
 0x671   : > { %v5256_v3 = vpop.f32.mrf.mxu1 }
 0x672   : > { %5659 = vst [vmem:[%s8984_s6 + $0x138] sm:$0xff] %v5265_v1  ;;  %v5257_v41 = vadd.f32 %v8978_v60, %v5256_v3 }
 0x673   : > { %v6857_v10 = vpop.f32.mrf.mxu1 }
 0x674   : > { %5657 = vst [vmem:[%s8984_s6 + $0x128] sm:$0xff] %v5257_v41  ;;  %v5278_v51 = vadd.f32 %v6857_v10, %v8978_v60 }
 0x675   : > { %v5269_v18 = vpop.f32.mrf.mxu1 }
 0x676   : > { %5662 = vst [vmem:[%s8984_s6 + $0x150] sm:$0xff] %v5278_v51  ;;  %v5270_v25 = vadd.f32 %v8978_v60, %v5269_v18 }
 0x677   : > { %v6858_v44 = vpop.f32.mrf.mxu1 }
 0x678   : > { %5660 = vst [vmem:[%s8984_s6 + $0x140] sm:$0xff] %v5270_v25  ;;  %v5281_v39 = vadd.f32 %v6858_v44, %v8978_v60 }
 0x679   : > { %v5272_v33 = vpop.f32.mrf.mxu1 }
 0x67a   : > { %5663 = vst [vmem:[%s8984_s6 + $0x158] sm:$0xff] %v5281_v39  ;;  %v5273_v21 = vadd.f32 %v8978_v60, %v5272_v33 }
 0x67b   : > { %v6861_v22 = vpop.f32.mrf.mxu1 }
 0x67c   : > { %5661 = vst [vmem:[%s8984_s6 + $0x148] sm:$0xff] %v5273_v21  ;;  %v5294_v62 = vadd.f32 %v6861_v22, %v8978_v60 }
 0x67d   : > { %v5285_v13 = vpop.f32.mrf.mxu1 }
 0x67e   : > { %5666 = vst [vmem:[%s8984_s6 + $0x170] sm:$0xff] %v5294_v62  ;;  %v5286_v16 = vadd.f32 %v8978_v60, %v5285_v13 }
 0x67f   : > { %v6862_v12 = vpop.f32.mrf.mxu1 }
 0x680   : > { %5664 = vst [vmem:[%s8984_s6 + $0x160] sm:$0xff] %v5286_v16  ;;  %v5297_v48 = vadd.f32 %v6862_v12, %v8978_v60 }
 0x681   : > { %v5288_v34 = vpop.f32.mrf.mxu1 }
 0x682   : > { %5667 = vst [vmem:[%s8984_s6 + $0x178] sm:$0xff] %v5297_v48  ;;  %v5289_v49 = vadd.f32 %v8978_v60, %v5288_v34 }
 0x683   : > { %v6865_v20 = vpop.f32.mrf.mxu1 }
 0x684   : > { %5665 = vst [vmem:[%s8984_s6 + $0x168] sm:$0xff] %v5289_v49  ;;  %v5310_v31 = vadd.f32 %v6865_v20, %v8978_v60 }
 0x685   : > { %v5301_v23 = vpop.f32.mrf.mxu1 }
 0x686   : > { %5670 = vst [vmem:[%s8984_s6 + $0x190] sm:$0xff] %v5310_v31  ;;  %v5302_v35 = vadd.f32 %v8978_v60, %v5301_v23 }
 0x687   : > { %v6866_v55 = vpop.f32.mrf.mxu1 }
 0x688   : > { %5668 = vst [vmem:[%s8984_s6 + $0x180] sm:$0xff] %v5302_v35  ;;  %v5313_v56 = vadd.f32 %v6866_v55, %v8978_v60 }
 0x689   : > { %v5304_v59 = vpop.f32.mrf.mxu1 }
 0x68a   : > { %5671 = vst [vmem:[%s8984_s6 + $0x198] sm:$0xff] %v5313_v56  ;;  %v5305_v43 = vadd.f32 %v8978_v60, %v5304_v59 }
 0x68b   : > { %v6869_v45 = vpop.f32.mrf.mxu1 }
 0x68c   : > { %5669 = vst [vmem:[%s8984_s6 + $0x188] sm:$0xff] %v5305_v43  ;;  %v5326_v37 = vadd.f32 %v6869_v45, %v8978_v60 }
 0x68d   : > { %v5317_v8 = vpop.f32.mrf.mxu1 }
 0x68e   : > { %5674 = vst [vmem:[%s8984_s6 + $0x1b0] sm:$0xff] %v5326_v37  ;;  %v5318_v28 = vadd.f32 %v8978_v60, %v5317_v8 }
 0x68f   : > { %v6870_v30 = vpop.f32.mrf.mxu1 }
 0x690   : > { %5672 = vst [vmem:[%s8984_s6 + $0x1a0] sm:$0xff] %v5318_v28  ;;  %v5329_v7 = vadd.f32 %v6870_v30, %v8978_v60 }
 0x691   : > { %v5320_v47 = vpop.f32.mrf.mxu1 }
 0x692   : > { %5675 = vst [vmem:[%s8984_s6 + $0x1b8] sm:$0xff] %v5329_v7  ;;  %v5321_v54 = vadd.f32 %v8978_v60, %v5320_v47 }
 0x693   : > { %v6873_v57 = vpop.f32.mrf.mxu1 }
 0x694   : > { %5673 = vst [vmem:[%s8984_s6 + $0x1a8] sm:$0xff] %v5321_v54  ;;  %v5342_v58 = vadd.f32 %v6873_v57, %v8978_v60 }
 0x695   : > { %v5333_v61 = vpop.f32.mrf.mxu1 }
 0x696   : > { %5678 = vst [vmem:[%s8984_s6 + $0x1d0] sm:$0xff] %v5342_v58  ;;  %v5334_v26 = vadd.f32 %v8978_v60, %v5333_v61 }
 0x697   : > { %v6874_v4 = vpop.f32.mrf.mxu1 }
 0x698   : > { %5676 = vst [vmem:[%s8984_s6 + $0x1c0] sm:$0xff] %v5334_v26  ;;  %v5345_v52 = vadd.f32 %v6874_v4, %v8978_v60 }
 0x699   : > { %v5336_v27 = vpop.f32.mrf.mxu1 }
 0x69a   : > { %5679 = vst [vmem:[%s8984_s6 + $0x1d8] sm:$0xff] %v5345_v52  ;;  %v5337_v29 = vadd.f32 %v8978_v60, %v5336_v27 }
 0x69b   : > { %v6877_v32 = vpop.f32.mrf.mxu1 }
 0x69c   : > { %5677 = vst [vmem:[%s8984_s6 + $0x1c8] sm:$0xff] %v5337_v29  ;;  %v5358_v40 = vadd.f32 %v6877_v32, %v8978_v60 }
 0x69d   : > { %v5349_v19 = vpop.f32.mrf.mxu1 }
 0x69e   : > { %5682 = vst [vmem:[%s8984_s6 + $0x1f0] sm:$0xff] %v5358_v40  ;;  %v5350_v53 = vadd.f32 %v8978_v60, %v5349_v19 }
 0x69f   : > { %v6878_v42 = vpop.f32.mrf.mxu1 }
 0x6a0   : > { %5680 = vst [vmem:[%s8984_s6 + $0x1e0] sm:$0xff] %v5350_v53  ;;  %v5361_v11 = vadd.f32 %v6878_v42, %v8978_v60 }
 0x6a1   : > { %v5352_v50 = vpop.f32.mrf.mxu1 }
 0x6a2   : > { %5683 = vst [vmem:[%s8984_s6 + $0x1f8] sm:$0xff] %v5361_v11  ;;  %v5353_v63 = vadd.f32 %v8978_v60, %v5352_v50 }
 0x6a3   : > { %v6881_v36 = vpop.f32.mrf.mxu1 }
 0x6a4   : > { %5681 = vst [vmem:[%s8984_s6 + $0x1e8] sm:$0xff] %v5353_v63  ;;  %v5374_v14 = vadd.f32 %v6881_v36, %v8978_v60 }
 0x6a5   : > { %v5365_v5 = vpop.f32.mrf.mxu1 }
 0x6a6   : > { %5686 = vst [vmem:[%s8984_s6 + $0x210] sm:$0xff] %v5374_v14  ;;  %v5366_v15 = vadd.f32 %v8978_v60, %v5365_v5 }
 0x6a7   : > { %v6882_v2 = vpop.f32.mrf.mxu1 }
 0x6a8   : > { %5684 = vst [vmem:[%s8984_s6 + $0x200] sm:$0xff] %v5366_v15  ;;  %v5377_v38 = vadd.f32 %v6882_v2, %v8978_v60 }
 0x6a9   : > { %v5368_v6 = vpop.f32.mrf.mxu1 }
 0x6aa   : > { %5687 = vst [vmem:[%s8984_s6 + $0x218] sm:$0xff] %v5377_v38  ;;  %v5369_v9 = vadd.f32 %v8978_v60, %v5368_v6 }
 0x6ab   : > { %v6885_v46 = vpop.f32.mrf.mxu1 }
 0x6ac   : > { %5685 = vst [vmem:[%s8984_s6 + $0x208] sm:$0xff] %v5369_v9  ;;  %v5390_v17 = vadd.f32 %v6885_v46, %v8978_v60 }
 0x6ad   : > { %v5381_v0 = vpop.f32.mrf.mxu1 }
 0x6ae   : > { %5690 = vst [vmem:[%s8984_s6 + $0x230] sm:$0xff] %v5390_v17  ;;  %v5382_v24 = vadd.f32 %v8978_v60, %v5381_v0 }
 0x6af   : > { %v6886_v1 = vpop.f32.mrf.mxu1 }
 0x6b0   : > { %5688 = vst [vmem:[%s8984_s6 + $0x220] sm:$0xff] %v5382_v24  ;;  %v5393_v3 = vadd.f32 %v6886_v1, %v8978_v60 }
 0x6b1   : > { %v5384_v41 = vpop.f32.mrf.mxu1 }
 0x6b2   : > { %5691 = vst [vmem:[%s8984_s6 + $0x238] sm:$0xff] %v5393_v3  ;;  %v5385_v10 = vadd.f32 %v8978_v60, %v5384_v41 }
 0x6b3   : > { %v6889_v51 = vpop.f32.mrf.mxu1 }
 0x6b4   : > { %5689 = vst [vmem:[%s8984_s6 + $0x228] sm:$0xff] %v5385_v10  ;;  %v5406_v18 = vadd.f32 %v6889_v51, %v8978_v60 }
 0x6b5   : > { %v5397_v25 = vpop.f32.mrf.mxu1 }
 0x6b6   : > { %5694 = vst [vmem:[%s8984_s6 + $0x250] sm:$0xff] %v5406_v18  ;;  %v5398_v44 = vadd.f32 %v8978_v60, %v5397_v25 }
 0x6b7   : > { %v6890_v39 = vpop.f32.mrf.mxu1 }
 0x6b8   : > { %5692 = vst [vmem:[%s8984_s6 + $0x240] sm:$0xff] %v5398_v44  ;;  %v5409_v33 = vadd.f32 %v6890_v39, %v8978_v60 }
 0x6b9   : > { %v5400_v21 = vpop.f32.mrf.mxu1 }
 0x6ba   : > { %5695 = vst [vmem:[%s8984_s6 + $0x258] sm:$0xff] %v5409_v33  ;;  %v5401_v22 = vadd.f32 %v8978_v60, %v5400_v21 }
 0x6bb   : > { %v6893_v62 = vpop.f32.mrf.mxu1 }
 0x6bc   : > { %5693 = vst [vmem:[%s8984_s6 + $0x248] sm:$0xff] %v5401_v22  ;;  %v5422_v13 = vadd.f32 %v6893_v62, %v8978_v60 }
 0x6bd   : > { %v5413_v16 = vpop.f32.mrf.mxu1 }
 0x6be   : > { %5698 = vst [vmem:[%s8984_s6 + $0x270] sm:$0xff] %v5422_v13  ;;  %v5414_v12 = vadd.f32 %v8978_v60, %v5413_v16 }
 0x6bf   : > { %v6894_v48 = vpop.f32.mrf.mxu1 }
 0x6c0   : > { %5696 = vst [vmem:[%s8984_s6 + $0x260] sm:$0xff] %v5414_v12  ;;  %v5425_v34 = vadd.f32 %v6894_v48, %v8978_v60 }
 0x6c1   : > { %v5416_v49 = vpop.f32.mrf.mxu1 }
 0x6c2   : > { %5699 = vst [vmem:[%s8984_s6 + $0x278] sm:$0xff] %v5425_v34  ;;  %v5417_v20 = vadd.f32 %v8978_v60, %v5416_v49 }
 0x6c3   : > { %v6897_v31 = vpop.f32.mrf.mxu1 }
 0x6c4   : > { %5697 = vst [vmem:[%s8984_s6 + $0x268] sm:$0xff] %v5417_v20  ;;  %v5438_v23 = vadd.f32 %v6897_v31, %v8978_v60 }
 0x6c5   : > { %v5429_v35 = vpop.f32.mrf.mxu1 }
 0x6c6   : > { %5702 = vst [vmem:[%s8984_s6 + $0x290] sm:$0xff] %v5438_v23  ;;  %v5430_v55 = vadd.f32 %v8978_v60, %v5429_v35 }
 0x6c7   : > { %v6898_v56 = vpop.f32.mrf.mxu1 }
 0x6c8   : > { %5700 = vst [vmem:[%s8984_s6 + $0x280] sm:$0xff] %v5430_v55  ;;  %v5441_v59 = vadd.f32 %v6898_v56, %v8978_v60 }
 0x6c9   : > { %v5432_v43 = vpop.f32.mrf.mxu1 }
 0x6ca   : > { %5703 = vst [vmem:[%s8984_s6 + $0x298] sm:$0xff] %v5441_v59  ;;  %v5433_v45 = vadd.f32 %v8978_v60, %v5432_v43 }
 0x6cb   : > { %v6901_v37 = vpop.f32.mrf.mxu1 }
 0x6cc   : > { %5701 = vst [vmem:[%s8984_s6 + $0x288] sm:$0xff] %v5433_v45  ;;  %v5454_v8 = vadd.f32 %v6901_v37, %v8978_v60 }
 0x6cd   : > { %v5445_v28 = vpop.f32.mrf.mxu1 }
 0x6ce   : > { %5706 = vst [vmem:[%s8984_s6 + $0x2b0] sm:$0xff] %v5454_v8  ;;  %v5446_v30 = vadd.f32 %v8978_v60, %v5445_v28 }
 0x6cf   : > { %v6902_v7 = vpop.f32.mrf.mxu1 }
 0x6d0   : > { %5704 = vst [vmem:[%s8984_s6 + $0x2a0] sm:$0xff] %v5446_v30  ;;  %v5457_v47 = vadd.f32 %v6902_v7, %v8978_v60 }
 0x6d1   : > { %v5448_v54 = vpop.f32.mrf.mxu1 }
 0x6d2   : > { %5707 = vst [vmem:[%s8984_s6 + $0x2b8] sm:$0xff] %v5457_v47  ;;  %v5449_v57 = vadd.f32 %v8978_v60, %v5448_v54  ;;  %v7272_v54 = vld [vmem:[#allocation22] ss:$0 sm:$0xff] }
 0x6d3   : > { %v6905_v58 = vpop.f32.mrf.mxu1 }
 0x6d4   : > { %5705 = vst [vmem:[%s8984_s6 + $0x2a8] sm:$0xff] %v5449_v57  ;;  %v5470_v61 = vadd.f32 %v6905_v58, %v8978_v60 }
 0x6d5   : > { %v5461_v26 = vpop.f32.mrf.mxu1 }
 0x6d6   : > { %5710 = vst [vmem:[%s8984_s6 + $0x2d0] sm:$0xff] %v5470_v61  ;;  %v5462_v4 = vadd.f32 %v8978_v60, %v5461_v26 }
 0x6d7   : > { %v6906_v52 = vpop.f32.mrf.mxu1 }
 0x6d8   : > { %5708 = vst [vmem:[%s8984_s6 + $0x2c0] sm:$0xff] %v5462_v4  ;;  %v5473_v27 = vadd.f32 %v6906_v52, %v8978_v60 }
 0x6d9   : > { %v5464_v29 = vpop.f32.mrf.mxu1 }
 0x6da   : > { %5711 = vst [vmem:[%s8984_s6 + $0x2d8] sm:$0xff] %v5473_v27  ;;  %v5465_v32 = vadd.f32 %v8978_v60, %v5464_v29 }
 0x6db   : > { %v6909_v40 = vpop.f32.mrf.mxu1 }
 0x6dc   : > { %5709 = vst [vmem:[%s8984_s6 + $0x2c8] sm:$0xff] %v5465_v32  ;;  %v5486_v19 = vadd.f32 %v6909_v40, %v8978_v60 }
 0x6dd   : > { %v5477_v53 = vpop.f32.mrf.mxu1 }
 0x6de   : > { %5714 = vst [vmem:[%s8984_s6 + $0x2f0] sm:$0xff] %v5486_v19  ;;  %v5478_v42 = vadd.f32 %v8978_v60, %v5477_v53 }
 0x6df   : > { %v6910_v11 = vpop.f32.mrf.mxu1 }
 0x6e0   : > { %5712 = vst [vmem:[%s8984_s6 + $0x2e0] sm:$0xff] %v5478_v42  ;;  %v5489_v50 = vadd.f32 %v6910_v11, %v8978_v60 }
 0x6e1   : > { %v5480_v63 = vpop.f32.mrf.mxu1 }
 0x6e2   : > { %5715 = vst [vmem:[%s8984_s6 + $0x2f8] sm:$0xff] %v5489_v50  ;;  %v5481_v36 = vadd.f32 %v8978_v60, %v5480_v63 }
 0x6e3   : > { %v6913_v14 = vpop.f32.mrf.mxu1 }
 0x6e4   : > { %5713 = vst [vmem:[%s8984_s6 + $0x2e8] sm:$0xff] %v5481_v36  ;;  %v5502_v5 = vadd.f32 %v6913_v14, %v8978_v60 }
 0x6e5   : > { %v5493_v15 = vpop.f32.mrf.mxu1 }
 0x6e6   : > { %5718 = vst [vmem:[%s8984_s6 + $0x310] sm:$0xff] %v5502_v5  ;;  %v5494_v2 = vadd.f32 %v8978_v60, %v5493_v15 }
 0x6e7   : > { %v6914_v38 = vpop.f32.mrf.mxu1 }
 0x6e8   : > { %5716 = vst [vmem:[%s8984_s6 + $0x300] sm:$0xff] %v5494_v2  ;;  %v5505_v6 = vadd.f32 %v6914_v38, %v8978_v60 }
 0x6e9   : > { %v5496_v9 = vpop.f32.mrf.mxu1 }
 0x6ea   : > { %5719 = vst [vmem:[%s8984_s6 + $0x318] sm:$0xff] %v5505_v6  ;;  %v5497_v46 = vadd.f32 %v8978_v60, %v5496_v9 }
 0x6ec   : > { %5717 = vst [vmem:[%s8984_s6 + $0x308] sm:$0xff] %v5497_v46 }
 0x6f0   : > { %v6917_v17 = vpop.f32.mrf.mxu1 }
 0x6f1   : > { %v5518_v0 = vadd.f32 %v6917_v17, %v8978_v60 }
 0x6f2   : > { %v5509_v24 = vpop.f32.mrf.mxu1 }
 0x6f3   : > { %5722 = vst [vmem:[%s8984_s6 + $0x330] sm:$0xff] %v5518_v0  ;;  %v5510_v1 = vadd.f32 %v8978_v60, %v5509_v24 }
 0x6f4   : > { %v6918_v3 = vpop.f32.mrf.mxu1 }
 0x6f5   : > { %5720 = vst [vmem:[%s8984_s6 + $0x320] sm:$0xff] %v5510_v1  ;;  %v5521_v41 = vadd.f32 %v6918_v3, %v8978_v60 }
 0x6f6   : > { %v5512_v10 = vpop.f32.mrf.mxu1 }
 0x6f7   : > { %5723 = vst [vmem:[%s8984_s6 + $0x338] sm:$0xff] %v5521_v41  ;;  %v5513_v51 = vadd.f32 %v8978_v60, %v5512_v10 }
 0x6f8   : > { %v6921_v18 = vpop.f32.mrf.mxu1 }
 0x6f9   : > { %5721 = vst [vmem:[%s8984_s6 + $0x328] sm:$0xff] %v5513_v51  ;;  %v5534_v25 = vadd.f32 %v6921_v18, %v8978_v60 }
 0x6fa   : > { %v5525_v44 = vpop.f32.mrf.mxu1 }
 0x6fb   : > { %5726 = vst [vmem:[%s8984_s6 + $0x350] sm:$0xff] %v5534_v25  ;;  %v5526_v39 = vadd.f32 %v8978_v60, %v5525_v44 }
 0x6fc   : > { %v6922_v33 = vpop.f32.mrf.mxu1 }
 0x6fd   : > { %5724 = vst [vmem:[%s8984_s6 + $0x340] sm:$0xff] %v5526_v39  ;;  %v5537_v21 = vadd.f32 %v6922_v33, %v8978_v60 }
 0x6fe   : > { %v5528_v22 = vpop.f32.mrf.mxu1 }
 0x6ff   : > { %5727 = vst [vmem:[%s8984_s6 + $0x358] sm:$0xff] %v5537_v21  ;;  %v5529_v62 = vadd.f32 %v8978_v60, %v5528_v22 }
 0x700   : > { %v6925_v13 = vpop.f32.mrf.mxu1 }
 0x701   : > { %5725 = vst [vmem:[%s8984_s6 + $0x348] sm:$0xff] %v5529_v62  ;;  %v5550_v16 = vadd.f32 %v6925_v13, %v8978_v60 }
 0x702   : > { %v5541_v12 = vpop.f32.mrf.mxu1 }
 0x703   : > { %5730 = vst [vmem:[%s8984_s6 + $0x370] sm:$0xff] %v5550_v16  ;;  %v5542_v48 = vadd.f32 %v8978_v60, %v5541_v12 }
 0x704   : > { %v6926_v34 = vpop.f32.mrf.mxu1 }
 0x705   : > { %5728 = vst [vmem:[%s8984_s6 + $0x360] sm:$0xff] %v5542_v48  ;;  %v5553_v49 = vadd.f32 %v6926_v34, %v8978_v60 }
 0x706   : > { %v5544_v20 = vpop.f32.mrf.mxu1 }
 0x707   : > { %5731 = vst [vmem:[%s8984_s6 + $0x378] sm:$0xff] %v5553_v49  ;;  %v5545_v31 = vadd.f32 %v8978_v60, %v5544_v20 }
 0x708   : > { %v6929_v23 = vpop.f32.mrf.mxu1 }
 0x709   : > { %5729 = vst [vmem:[%s8984_s6 + $0x368] sm:$0xff] %v5545_v31  ;;  %v5566_v35 = vadd.f32 %v6929_v23, %v8978_v60 }
 0x70a   : > { %v5557_v55 = vpop.f32.mrf.mxu1 }
 0x70b   : > { %5734 = vst [vmem:[%s8984_s6 + $0x390] sm:$0xff] %v5566_v35  ;;  %v5558_v56 = vadd.f32 %v8978_v60, %v5557_v55 }
 0x70c   : > { %v6930_v59 = vpop.f32.mrf.mxu1 }
 0x70d   : > { %5732 = vst [vmem:[%s8984_s6 + $0x380] sm:$0xff] %v5558_v56  ;;  %v5569_v43 = vadd.f32 %v6930_v59, %v8978_v60 }
 0x70e   : > { %v5560_v45 = vpop.f32.mrf.mxu1 }
 0x70f   : > { %5735 = vst [vmem:[%s8984_s6 + $0x398] sm:$0xff] %v5569_v43  ;;  %v5561_v37 = vadd.f32 %v8978_v60, %v5560_v45 }
 0x710   : > { %v6933_v8 = vpop.f32.mrf.mxu1 }
 0x711   : > { %5733 = vst [vmem:[%s8984_s6 + $0x388] sm:$0xff] %v5561_v37  ;;  %v5582_v28 = vadd.f32 %v6933_v8, %v8978_v60 }
 0x712   : > { %v5573_v30 = vpop.f32.mrf.mxu1 }
 0x713   : > { %5738 = vst [vmem:[%s8984_s6 + $0x3b0] sm:$0xff] %v5582_v28  ;;  %v5574_v7 = vadd.f32 %v8978_v60, %v5573_v30 }
 0x714   : > { %v6934_v47 = vpop.f32.mrf.mxu1 }
 0x715   : > { %5736 = vst [vmem:[%s8984_s6 + $0x3a0] sm:$0xff] %v5574_v7  ;;  %v5585_v57 = vadd.f32 %v7272_v54, %v6934_v47 }
 0x716   : > { %v5576_v58 = vpop.f32.mrf.mxu1 }
 0x717   : > { %5739 = vst [vmem:[%s8984_s6 + $0x3b8] sm:$0xff] %v5585_v57  ;;  %v5577_v61 = vadd.f32 %v7272_v54, %v5576_v58 }
 0x718   : > { %v6937_v26 = vpop.f32.mrf.mxu1 }
 0x719   : > { %5737 = vst [vmem:[%s8984_s6 + $0x3a8] sm:$0xff] %v5577_v61  ;;  %v5598_v4 = vadd.f32 %v7272_v54, %v6937_v26 }
 0x71a   : > { %v5589_v52 = vpop.f32.mrf.mxu1 }
 0x71b   : > { %5742 = vst [vmem:[%s8984_s6 + $0x3d0] sm:$0xff] %v5598_v4  ;;  %v5590_v27 = vadd.f32 %v7272_v54, %v5589_v52 }
 0x71c   : > { %v6938_v60 = vpop.f32.mrf.mxu1 }
 0x71d   : > { %5740 = vst [vmem:[%s8984_s6 + $0x3c0] sm:$0xff] %v5590_v27  ;;  %v5601_v29 = vadd.f32 %v7272_v54, %v6938_v60 }
 0x71e   : > { %v5592_v32 = vpop.f32.mrf.mxu1 }
 0x71f   : > { %5743 = vst [vmem:[%s8984_s6 + $0x3d8] sm:$0xff] %v5601_v29  ;;  %v5593_v40 = vadd.f32 %v7272_v54, %v5592_v32 }
 0x720   : > { %v6941_v19 = vpop.f32.mrf.mxu1 }
 0x721   : > { %5741 = vst [vmem:[%s8984_s6 + $0x3c8] sm:$0xff] %v5593_v40  ;;  %v5614_v53 = vadd.f32 %v7272_v54, %v6941_v19 }
 0x722   : > { %v5605_v42 = vpop.f32.mrf.mxu1 }
 0x723   : > { %5746 = vst [vmem:[%s8984_s6 + $0x3f0] sm:$0xff] %v5614_v53  ;;  %v5606_v11 = vadd.f32 %v7272_v54, %v5605_v42 }
 0x724   : > { %v6942_v50 = vpop.f32.mrf.mxu1 }
 0x725   : > { %5744 = vst [vmem:[%s8984_s6 + $0x3e0] sm:$0xff] %v5606_v11  ;;  %v5617_v63 = vadd.f32 %v7272_v54, %v6942_v50 }
 0x726   : > { %v5608_v36 = vpop.f32.mrf.mxu1 }
 0x727   : > { %5747 = vst [vmem:[%s8984_s6 + $0x3f8] sm:$0xff] %v5617_v63  ;;  %v5609_v14 = vadd.f32 %v7272_v54, %v5608_v36 }
 0x729   : > { %5745 = vst [vmem:[%s8984_s6 + $0x3e8] sm:$0xff] %v5609_v14 }
 0x72a   : > { %7626 = shalt.err (!%p7623_p10)
}
 0x72b   : > { %s7627_s4 = scalar_lea.hbm %s9290_s25, 16384  ;;  %s7631_s8 = scalar_lea.hbm %s9403_s5, 49152 }
 0x72c   : > { %p7628_p11 = scmp.ne.s32.totalorder %s9290_s25, %s7627_s4  ;;  %p7632_p12 = scmp.lt.s32.totalorder %s9290_s25, %s9403_s5 }
 0x72d   : > { %p7633_p4 = scmp.lt.s32.totalorder %s7631_s8, %s7627_s4 }
 0x72e   : > { %p7629_p5 = pnand %p7628_p11, %p9404_p1 }
 0x72f   : > { %p7634_p7 = por %p7633_p4, %p7632_p12 }
 0x730   : > { %p7630_p3 = pneg %p7629_p5 }
 0x732   : > { %p7635_p6 = pnand %p7634_p7, %p7630_p3 }
 0x734   : > { %7638 = shalt.err (!%p7635_p6)
}
 0x735   : > { %s7724_s24 = smov 128   ;;  %s7725_s27 = smov 8  }
 0x736   : > { %6996 = dma.vmem_to_hbm [thread:$0]  (%p9404_p1), %s9292_s17, 16384, %s9290_s25, %s5749_s29, %s7724_s24, %s7724_s24, %s7725_s27  }
 0x737 PF: > { %p7068_p13 = scmp.ge.s32.totalorder %s7701_s21, 2  ;;  %s5777_s22 = sand.u32 1, %s7689_s18  }
 0x738   : > { %p9405_p0 = scmp.ne.s32.totalorder %s9386_s2, 0  ;;  %s5778_s16 = scalar_lea.sflag [#allocation4], %s5777_s22 }
 0x73a   : > { %p7040_p2 = pnand %p7068_p13, %p9405_p0 }
 0x73c   : > { %p7041_p8 = pneg %p7040_p2 }
 0x73e   : > { %7684 = dma.done.wait (%p7041_p8), %s5778_s16, 16384  }
 0x73f   : > { %7686 = vsyncadd (%p7041_p8), %s5778_s16, 4294950912  ;;  %p34_p9 = scmp.ge.s32.totalorder %s7959_s30, 5   ;;  %s9406_s18 = smov %s7693_s19 }
 0x740   : > { %s9407_s19 = smov %s7697_s20  ;;  %s9408_s20 = smov %s7970_s28 }
 0x741   : > { %s9409_s21 = smov %s7959_s30  ;;  %36 = sbr.rel (!%p34_p9) target bundleno = 21 (0x15), region = 173 }
 0x746   :  { %5783 = vsyncpa [#allocation3], 1 }
 0x747   :  { %5785 = vsyncpa [#allocation3 + $0x1], 1 }
 0x748   :  { %5786 = vsyncpa [#allocation6], 1 }
 0x749   :  { %5787 = vsyncpa [#allocation9], 1 }
 0x74a   :  { %5788 = vsyncpa [#allocation12], 1 }
 0x74b   :  { %5789 = vsyncpa [#allocation15], 1 }
 0x74c   :  { %5790 = vsyncpa [#allocation18], 1 }
 0x74d   :  { %5791 = vsyncpa [#allocation21], 1 }
 0x74e   :  { %5792 = vsyncpa [#allocation4], 1 }
 0x74f   :  { %5794 = vsyncpa [#allocation4 + $0x1], 1 }

</bundles_post_ra>
